<compile_context>
chip_gen: v7x
topology: tpu7x:2x2x1
jax: 0.10.0
libtpu: 0.0.40
codegen_flags: <defaults>
</compile_context>

<pallas_src>
import jax
import jax.numpy as jnp
from jax.experimental import pallas as pl
from jax.experimental.pallas import tpu as pltpu

NUM_CLASSES = 4
H_IN = 60          # implied by fc: 32 * 52 features  =>  H_in - 2*(5-1) = 52
KH = 5
C1 = 16
C2 = 32
H1 = H_IN - KH + 1        # 56
H2 = H1 - KH + 1          # 52


def convnet_kernel(xw_ref, w1_ref, b1_ref, w2_ref, b2_ref, wf_ref, bf_ref, out_ref):
    # xw_ref : (1, KH, H1*TN)  conv1 im2col of this batch tile; column = h*TN + n (batch on lanes)
    # w1_ref : (C1, KH)
    # b1_ref : (C1, 1)
    # w2_ref : (C2, KH*C1)     column = k*C1 + c1
    # b2_ref : (C2, 1)
    # wf_ref : (NUM_CLASSES, H2*C2)  column = h*C2 + c2 (pre-permuted in wrapper)
    # bf_ref : (NUM_CLASSES, 1)
    # out_ref: (NUM_CLASSES, TN)     lane-dense output block
    tn = xw_ref.shape[2] // H1
    xw = xw_ref[0]                                                     # (KH, H1*TN)

    # ---- layer1: Conv2d(1,16,(5,1)) + Tanh  = one (C1 x KH)@(KH x H1*TN) matmul
    out1 = jnp.tanh(
        jnp.dot(w1_ref[...], xw, preferred_element_type=jnp.float32)
        + b1_ref[...])                                                 # (C1, H1*TN)

    # ---- layer2: Conv2d(16,32,(5,1)) + Tanh ------------------------------
    # The 5 taps are lane-tile-aligned windows of out1 (offset k*TN, TN%128==0);
    # stack them along sublanes (each piece is 16 rows = 2 aligned sublane tiles)
    # and contract with one K=80 MXU matmul.
    stacked = jnp.concatenate(
        [out1[:, k * tn:(k + H2) * tn] for k in range(KH)], axis=0)    # (KH*C1, H2*TN)
    out2 = jnp.tanh(
        jnp.dot(w2_ref[...], stacked, preferred_element_type=jnp.float32)
        + b2_ref[...])                                                 # (C2, H2*TN)

    # ---- fc: Linear(32*52 -> 4) -------------------------------------------
    # Flatten (h, c2) onto sublanes via aligned slice+concat (row = h*C2 + c2,
    # matching the pre-permuted wf); this is the only relayout and it is pure
    # aligned vreg copies.  Then one (4 x 1664)@(1664 x TN) matmul.
    flat = jnp.concatenate(
        [out2[:, h * tn:(h + 1) * tn] for h in range(H2)], axis=0)     # (H2*C2, TN)
    logits = jnp.dot(wf_ref[...], flat,
                     preferred_element_type=jnp.float32) + bf_ref[...]
    out_ref[...] = logits.astype(out_ref.dtype)                        # (4, TN)


def _round_up(x, m):
    return (x + m - 1) // m * m


def convnet_forward(x_nchw, params, *, tile_n=512):
    """x_nchw: (N, 1, 60, 1) float32, PyTorch NCHW layout. Returns (N, 4)."""
    w1_pt, b1_pt, w2_pt, b2_pt, wf_pt, bf_pt = params
    n = x_nchw.shape[0]

    # Batch tile sits on the lane axis => multiple of 128.  TN=512 keeps peak
    # VMEM (intermediates ~17 MB f32) well inside v7x's 64 MiB; 128 MiB parts
    # (v5e/v6e) have plenty of slack.
    tn = _round_up(min(max(tile_n, 128), _round_up(n, 128)), 128)
    n_pad = _round_up(n, tn)
    if n_pad // tn < 2 and tn % 256 == 0:
        tn //= 2          # same padded total, >=2 grid steps -> both v7x TCs busy
    num_tiles = n_pad // tn

    # ---- input: drop unit dims, pad batch, build conv1 im2col, batch on lanes.
    # (Layout plumbing only: tiny N x 280 floats of extra DMA, removes all
    #  in-kernel relayouts for conv1/conv2.)
    xh = x_nchw[:, 0, :, 0].astype(jnp.float32)                         # (N, 60)
    if n_pad != n:
        xh = jnp.pad(xh, ((0, n_pad - n), (0, 0)))
    xw = jnp.stack([xh[:, k:k + H1] for k in range(KH)], axis=1)        # (n_pad, KH, H1)
    xw = xw.reshape(num_tiles, tn, KH, H1).transpose(0, 2, 3, 1)        # (T, KH, H1, tn)
    xw = xw.reshape(num_tiles, KH, H1 * tn)                             # col = h*tn + n_local

    # ---- weights, reshaped once ------------------------------------------
    w1 = w1_pt[:, 0, :, 0].astype(jnp.float32)                          # (C1, KH)
    b1 = b1_pt.reshape(C1, 1).astype(jnp.float32)
    # conv2 weight (32,16,5,1) -> (C2, KH*C1), column = k*C1 + c1
    w2 = jnp.transpose(w2_pt[:, :, :, 0], (0, 2, 1)).reshape(C2, KH * C1).astype(jnp.float32)
    b2 = b2_pt.reshape(C2, 1).astype(jnp.float32)
    # fc: PyTorch flatten column = c2*52 + h ; kernel flatten row = h*32 + c2
    wf = jnp.transpose(wf_pt.reshape(NUM_CLASSES, C2, H2),
                       (0, 2, 1)).reshape(NUM_CLASSES, H2 * C2).astype(jnp.float32)
    bf = bf_pt.reshape(NUM_CLASSES, 1).astype(jnp.float32)

    cost = pl.CostEstimate(
        flops=2 * n_pad * (H1 * KH * C1 + H2 * KH * C1 * C2 + H2 * C2 * NUM_CLASSES),
        transcendentals=n_pad * (H1 * C1 + H2 * C2),
        bytes_accessed=4 * (n_pad * KH * H1 + n_pad * NUM_CLASSES + C1 * KH + C1
                            + C2 * KH * C1 + C2 + NUM_CLASSES * H2 * C2 + NUM_CLASSES),
    )

    out = pl.pallas_call(
        convnet_kernel,
        out_shape=jax.ShapeDtypeStruct((NUM_CLASSES, n_pad), jnp.float32),
        grid_spec=pltpu.PrefetchScalarGridSpec(
            num_scalar_prefetch=0,
            grid=(num_tiles,),
            in_specs=[
                pl.BlockSpec((1, KH, H1 * tn), lambda i: (i, 0, 0)),      # x windows (tiled)
                pl.BlockSpec((C1, KH), lambda i: (0, 0)),                 # w1 (replicated)
                pl.BlockSpec((C1, 1), lambda i: (0, 0)),                  # b1
                pl.BlockSpec((C2, KH * C1), lambda i: (0, 0)),            # w2 (fused taps)
                pl.BlockSpec((C2, 1), lambda i: (0, 0)),                  # b2
                pl.BlockSpec((NUM_CLASSES, H2 * C2), lambda i: (0, 0)),   # wf (lane-dense)
                pl.BlockSpec((NUM_CLASSES, 1), lambda i: (0, 0)),         # bf
            ],
            out_specs=pl.BlockSpec((NUM_CLASSES, tn), lambda i: (0, i)),
        ),
        compiler_params=pltpu.CompilerParams(
            dimension_semantics=("parallel",),
            vmem_limit_bytes=48 * 1024 * 1024,
        ),
        cost_estimate=cost,
    )(xw, w1, b1, w2, b2, wf, bf)

    return jnp.transpose(out)[:n]                                        # (N, 4)


def reference_forward(x_nchw, params):
    """Pure-JAX reference matching the PyTorch forward exactly (NCHW convs)."""
    w1_pt, b1_pt, w2_pt, b2_pt, wf_pt, bf_pt = params
    dn = ("NCHW", "OIHW", "NCHW")
    o1 = jax.lax.conv_general_dilated(x_nchw, w1_pt, (1, 1), "VALID",
                                      dimension_numbers=dn)
    o1 = jnp.tanh(o1 + b1_pt.reshape(1, -1, 1, 1))
    o2 = jax.lax.conv_general_dilated(o1, w2_pt, (1, 1), "VALID",
                                      dimension_numbers=dn)
    o2 = jnp.tanh(o2 + b2_pt.reshape(1, -1, 1, 1))
    flat = o2.reshape(o2.shape[0], -1)
    return flat @ wf_pt.T + bf_pt


def init_params(key):
    k1, k2, k3, k4, k5, k6 = jax.random.split(key, 6)
    w1 = 0.2 * jax.random.normal(k1, (C1, 1, KH, 1), jnp.float32)               # conv1.weight
    b1 = 0.1 * jax.random.normal(k2, (C1,), jnp.float32)                        # conv1.bias
    w2 = 0.1 * jax.random.normal(k3, (C2, C1, KH, 1), jnp.float32)              # conv2.weight
    b2 = 0.1 * jax.random.normal(k4, (C2,), jnp.float32)                        # conv2.bias
    wf = 0.05 * jax.random.normal(k5, (NUM_CLASSES, C2 * H2 * 1), jnp.float32)  # fc.weight
    bf = 0.05 * jax.random.normal(k6, (NUM_CLASSES,), jnp.float32)              # fc.bias
    return (w1, b1, w2, b2, wf, bf)


if __name__ == "__main__":
    key = jax.random.PRNGKey(0)
    kx, kp = jax.random.split(key)
    batch = 200   # -> tn=128, grid=(2,): exercises multi-tile + padded last tile
    x = jax.random.normal(kx, (batch, 1, H_IN, 1), jnp.float32)   # NCHW, as in PyTorch
    params = init_params(kp)

    out = convnet_forward(x, params)
    out = jax.block_until_ready(out)

    ref = reference_forward(x, params)
    assert out.shape == (batch, NUM_CLASSES)
    assert jnp.allclose(out, ref, atol=1e-3, rtol=1e-3), float(
        jnp.max(jnp.abs(out - ref)))

    print("KERNEL_OK")
</pallas_src>

<mosaic_0001>
module attributes {stable_mosaic.version = 11 : i64} {
  func.func @convnet_kernel(%arg0: i32, %arg1: memref<1x5x7168xf32, #tpu.memory_space<vmem>>, %arg2: memref<16x5xf32, #tpu.memory_space<vmem>>, %arg3: memref<16x1xf32, #tpu.memory_space<vmem>>, %arg4: memref<32x80xf32, #tpu.memory_space<vmem>>, %arg5: memref<32x1xf32, #tpu.memory_space<vmem>>, %arg6: memref<4x1664xf32, #tpu.memory_space<vmem>>, %arg7: memref<4x1xf32, #tpu.memory_space<vmem>>, %arg8: memref<4x128xf32, #tpu.memory_space<vmem>>) attributes {dimension_semantics = [#tpu.dimension_semantics<parallel>], iteration_bounds = array<i64: 2>, scalar_prefetch = 0 : i64, scratch_operands = 0 : i64, tpu.core_type = #tpu.core_type<tc>, window_params = [{transform_indices = @transform_0, window_bounds = array<i64: 1, 5, 7168>}, {pipeline_mode = #tpu.pipeline_mode<synchronous>, transform_indices = @transform_1, window_bounds = array<i64: 16, 5>}, {pipeline_mode = #tpu.pipeline_mode<synchronous>, transform_indices = @transform_2, window_bounds = array<i64: 16, 1>}, {pipeline_mode = #tpu.pipeline_mode<synchronous>, transform_indices = @transform_3, window_bounds = array<i64: 32, 80>}, {pipeline_mode = #tpu.pipeline_mode<synchronous>, transform_indices = @transform_4, window_bounds = array<i64: 32, 1>}, {pipeline_mode = #tpu.pipeline_mode<synchronous>, transform_indices = @transform_5, window_bounds = array<i64: 4, 1664>}, {pipeline_mode = #tpu.pipeline_mode<synchronous>, transform_indices = @transform_6, window_bounds = array<i64: 4, 1>}, {transform_indices = @transform_7, window_bounds = array<i64: 4, 128>}]} {
    %c0 = arith.constant 0 : index
    %c0_0 = arith.constant 0 : index
    %c0_1 = arith.constant 0 : index
    %0 = vector.load %arg1[%c0, %c0_0, %c0_1] : memref<1x5x7168xf32, #tpu.memory_space<vmem>>, vector<1x5x7168xf32>
    %1 = vector.shape_cast %0 : vector<1x5x7168xf32> to vector<5x7168xf32>
    %c0_2 = arith.constant 0 : index
    %c0_3 = arith.constant 0 : index
    %2 = vector.load %arg2[%c0_2, %c0_3] : memref<16x5xf32, #tpu.memory_space<vmem>>, vector<16x5xf32>
    %cst = arith.constant dense<0.000000e+00> : vector<16x7168xf32>
    %3 = tpu.matmul %2, %1, %cst {dimension_numbers = #tpu.dot_dimension_numbers<[1], [0], [0], [1], [0, 0, 1, 1], [], []>} : vector<16x5xf32>, vector<5x7168xf32>, vector<16x7168xf32> -> vector<16x7168xf32>
    %c0_4 = arith.constant 0 : index
    %c0_5 = arith.constant 0 : index
    %4 = vector.load %arg3[%c0_4, %c0_5] : memref<16x1xf32, #tpu.memory_space<vmem>>, vector<16x1xf32>
    %5 = vector.broadcast %4 : vector<16x1xf32> to vector<16x7168xf32>
    %6 = arith.addf %3, %5 : vector<16x7168xf32>
    %7 = math.tanh %6 : vector<16x7168xf32>
    %8 = vector.extract_strided_slice %7 {offsets = [0, 0], sizes = [16, 6656], strides = [1, 1]} : vector<16x7168xf32> to vector<16x6656xf32>
    %9 = vector.extract_strided_slice %7 {offsets = [0, 128], sizes = [16, 6656], strides = [1, 1]} : vector<16x7168xf32> to vector<16x6656xf32>
    %10 = vector.extract_strided_slice %7 {offsets = [0, 256], sizes = [16, 6656], strides = [1, 1]} : vector<16x7168xf32> to vector<16x6656xf32>
    %11 = vector.extract_strided_slice %7 {offsets = [0, 384], sizes = [16, 6656], strides = [1, 1]} : vector<16x7168xf32> to vector<16x6656xf32>
    %12 = vector.extract_strided_slice %7 {offsets = [0, 512], sizes = [16, 6656], strides = [1, 1]} : vector<16x7168xf32> to vector<16x6656xf32>
    %13 = tpu.concatenate %8, %9, %10, %11, %12 in 0 : vector<16x6656xf32>, vector<16x6656xf32>, vector<16x6656xf32>, vector<16x6656xf32>, vector<16x6656xf32> -> vector<80x6656xf32>
    %c0_6 = arith.constant 0 : index
    %c0_7 = arith.constant 0 : index
    %14 = vector.load %arg4[%c0_6, %c0_7] : memref<32x80xf32, #tpu.memory_space<vmem>>, vector<32x80xf32>
    %cst_8 = arith.constant dense<0.000000e+00> : vector<32x6656xf32>
    %15 = tpu.matmul %14, %13, %cst_8 {dimension_numbers = #tpu.dot_dimension_numbers<[1], [0], [0], [1], [0, 0, 1, 1], [], []>} : vector<32x80xf32>, vector<80x6656xf32>, vector<32x6656xf32> -> vector<32x6656xf32>
    %c0_9 = arith.constant 0 : index
    %c0_10 = arith.constant 0 : index
    %16 = vector.load %arg5[%c0_9, %c0_10] : memref<32x1xf32, #tpu.memory_space<vmem>>, vector<32x1xf32>
    %17 = vector.broadcast %16 : vector<32x1xf32> to vector<32x6656xf32>
    %18 = arith.addf %15, %17 : vector<32x6656xf32>
    %19 = math.tanh %18 : vector<32x6656xf32>
    %20 = vector.extract_strided_slice %19 {offsets = [0, 0], sizes = [32, 128], strides = [1, 1]} : vector<32x6656xf32> to vector<32x128xf32>
    %21 = vector.extract_strided_slice %19 {offsets = [0, 128], sizes = [32, 128], strides = [1, 1]} : vector<32x6656xf32> to vector<32x128xf32>
    %22 = vector.extract_strided_slice %19 {offsets = [0, 256], sizes = [32, 128], strides = [1, 1]} : vector<32x6656xf32> to vector<32x128xf32>
    %23 = vector.extract_strided_slice %19 {offsets = [0, 384], sizes = [32, 128], strides = [1, 1]} : vector<32x6656xf32> to vector<32x128xf32>
    %24 = vector.extract_strided_slice %19 {offsets = [0, 512], sizes = [32, 128], strides = [1, 1]} : vector<32x6656xf32> to vector<32x128xf32>
    %25 = vector.extract_strided_slice %19 {offsets = [0, 640], sizes = [32, 128], strides = [1, 1]} : vector<32x6656xf32> to vector<32x128xf32>
    %26 = vector.extract_strided_slice %19 {offsets = [0, 768], sizes = [32, 128], strides = [1, 1]} : vector<32x6656xf32> to vector<32x128xf32>
    %27 = vector.extract_strided_slice %19 {offsets = [0, 896], sizes = [32, 128], strides = [1, 1]} : vector<32x6656xf32> to vector<32x128xf32>
    %28 = vector.extract_strided_slice %19 {offsets = [0, 1024], sizes = [32, 128], strides = [1, 1]} : vector<32x6656xf32> to vector<32x128xf32>
    %29 = vector.extract_strided_slice %19 {offsets = [0, 1152], sizes = [32, 128], strides = [1, 1]} : vector<32x6656xf32> to vector<32x128xf32>
    %30 = vector.extract_strided_slice %19 {offsets = [0, 1280], sizes = [32, 128], strides = [1, 1]} : vector<32x6656xf32> to vector<32x128xf32>
    %31 = vector.extract_strided_slice %19 {offsets = [0, 1408], sizes = [32, 128], strides = [1, 1]} : vector<32x6656xf32> to vector<32x128xf32>
    %32 = vector.extract_strided_slice %19 {offsets = [0, 1536], sizes = [32, 128], strides = [1, 1]} : vector<32x6656xf32> to vector<32x128xf32>
    %33 = vector.extract_strided_slice %19 {offsets = [0, 1664], sizes = [32, 128], strides = [1, 1]} : vector<32x6656xf32> to vector<32x128xf32>
    %34 = vector.extract_strided_slice %19 {offsets = [0, 1792], sizes = [32, 128], strides = [1, 1]} : vector<32x6656xf32> to vector<32x128xf32>
    %35 = vector.extract_strided_slice %19 {offsets = [0, 1920], sizes = [32, 128], strides = [1, 1]} : vector<32x6656xf32> to vector<32x128xf32>
    %36 = vector.extract_strided_slice %19 {offsets = [0, 2048], sizes = [32, 128], strides = [1, 1]} : vector<32x6656xf32> to vector<32x128xf32>
    %37 = vector.extract_strided_slice %19 {offsets = [0, 2176], sizes = [32, 128], strides = [1, 1]} : vector<32x6656xf32> to vector<32x128xf32>
    %38 = vector.extract_strided_slice %19 {offsets = [0, 2304], sizes = [32, 128], strides = [1, 1]} : vector<32x6656xf32> to vector<32x128xf32>
    %39 = vector.extract_strided_slice %19 {offsets = [0, 2432], sizes = [32, 128], strides = [1, 1]} : vector<32x6656xf32> to vector<32x128xf32>
    %40 = vector.extract_strided_slice %19 {offsets = [0, 2560], sizes = [32, 128], strides = [1, 1]} : vector<32x6656xf32> to vector<32x128xf32>
    %41 = vector.extract_strided_slice %19 {offsets = [0, 2688], sizes = [32, 128], strides = [1, 1]} : vector<32x6656xf32> to vector<32x128xf32>
    %42 = vector.extract_strided_slice %19 {offsets = [0, 2816], sizes = [32, 128], strides = [1, 1]} : vector<32x6656xf32> to vector<32x128xf32>
    %43 = vector.extract_strided_slice %19 {offsets = [0, 2944], sizes = [32, 128], strides = [1, 1]} : vector<32x6656xf32> to vector<32x128xf32>
    %44 = vector.extract_strided_slice %19 {offsets = [0, 3072], sizes = [32, 128], strides = [1, 1]} : vector<32x6656xf32> to vector<32x128xf32>
    %45 = vector.extract_strided_slice %19 {offsets = [0, 3200], sizes = [32, 128], strides = [1, 1]} : vector<32x6656xf32> to vector<32x128xf32>
    %46 = vector.extract_strided_slice %19 {offsets = [0, 3328], sizes = [32, 128], strides = [1, 1]} : vector<32x6656xf32> to vector<32x128xf32>
    %47 = vector.extract_strided_slice %19 {offsets = [0, 3456], sizes = [32, 128], strides = [1, 1]} : vector<32x6656xf32> to vector<32x128xf32>
    %48 = vector.extract_strided_slice %19 {offsets = [0, 3584], sizes = [32, 128], strides = [1, 1]} : vector<32x6656xf32> to vector<32x128xf32>
    %49 = vector.extract_strided_slice %19 {offsets = [0, 3712], sizes = [32, 128], strides = [1, 1]} : vector<32x6656xf32> to vector<32x128xf32>
    %50 = vector.extract_strided_slice %19 {offsets = [0, 3840], sizes = [32, 128], strides = [1, 1]} : vector<32x6656xf32> to vector<32x128xf32>
    %51 = vector.extract_strided_slice %19 {offsets = [0, 3968], sizes = [32, 128], strides = [1, 1]} : vector<32x6656xf32> to vector<32x128xf32>
    %52 = vector.extract_strided_slice %19 {offsets = [0, 4096], sizes = [32, 128], strides = [1, 1]} : vector<32x6656xf32> to vector<32x128xf32>
    %53 = vector.extract_strided_slice %19 {offsets = [0, 4224], sizes = [32, 128], strides = [1, 1]} : vector<32x6656xf32> to vector<32x128xf32>
    %54 = vector.extract_strided_slice %19 {offsets = [0, 4352], sizes = [32, 128], strides = [1, 1]} : vector<32x6656xf32> to vector<32x128xf32>
    %55 = vector.extract_strided_slice %19 {offsets = [0, 4480], sizes = [32, 128], strides = [1, 1]} : vector<32x6656xf32> to vector<32x128xf32>
    %56 = vector.extract_strided_slice %19 {offsets = [0, 4608], sizes = [32, 128], strides = [1, 1]} : vector<32x6656xf32> to vector<32x128xf32>
    %57 = vector.extract_strided_slice %19 {offsets = [0, 4736], sizes = [32, 128], strides = [1, 1]} : vector<32x6656xf32> to vector<32x128xf32>
    %58 = vector.extract_strided_slice %19 {offsets = [0, 4864], sizes = [32, 128], strides = [1, 1]} : vector<32x6656xf32> to vector<32x128xf32>
    %59 = vector.extract_strided_slice %19 {offsets = [0, 4992], sizes = [32, 128], strides = [1, 1]} : vector<32x6656xf32> to vector<32x128xf32>
    %60 = vector.extract_strided_slice %19 {offsets = [0, 5120], sizes = [32, 128], strides = [1, 1]} : vector<32x6656xf32> to vector<32x128xf32>
    %61 = vector.extract_strided_slice %19 {offsets = [0, 5248], sizes = [32, 128], strides = [1, 1]} : vector<32x6656xf32> to vector<32x128xf32>
    %62 = vector.extract_strided_slice %19 {offsets = [0, 5376], sizes = [32, 128], strides = [1, 1]} : vector<32x6656xf32> to vector<32x128xf32>
    %63 = vector.extract_strided_slice %19 {offsets = [0, 5504], sizes = [32, 128], strides = [1, 1]} : vector<32x6656xf32> to vector<32x128xf32>
    %64 = vector.extract_strided_slice %19 {offsets = [0, 5632], sizes = [32, 128], strides = [1, 1]} : vector<32x6656xf32> to vector<32x128xf32>
    %65 = vector.extract_strided_slice %19 {offsets = [0, 5760], sizes = [32, 128], strides = [1, 1]} : vector<32x6656xf32> to vector<32x128xf32>
    %66 = vector.extract_strided_slice %19 {offsets = [0, 5888], sizes = [32, 128], strides = [1, 1]} : vector<32x6656xf32> to vector<32x128xf32>
    %67 = vector.extract_strided_slice %19 {offsets = [0, 6016], sizes = [32, 128], strides = [1, 1]} : vector<32x6656xf32> to vector<32x128xf32>
    %68 = vector.extract_strided_slice %19 {offsets = [0, 6144], sizes = [32, 128], strides = [1, 1]} : vector<32x6656xf32> to vector<32x128xf32>
    %69 = vector.extract_strided_slice %19 {offsets = [0, 6272], sizes = [32, 128], strides = [1, 1]} : vector<32x6656xf32> to vector<32x128xf32>
    %70 = vector.extract_strided_slice %19 {offsets = [0, 6400], sizes = [32, 128], strides = [1, 1]} : vector<32x6656xf32> to vector<32x128xf32>
    %71 = vector.extract_strided_slice %19 {offsets = [0, 6528], sizes = [32, 128], strides = [1, 1]} : vector<32x6656xf32> to vector<32x128xf32>
    %72 = tpu.concatenate %20, %21, %22, %23, %24, %25, %26, %27, %28, %29, %30, %31, %32, %33, %34, %35 in 0 : vector<32x128xf32>, vector<32x128xf32>, vector<32x128xf32>, vector<32x128xf32>, vector<32x128xf32>, vector<32x128xf32>, vector<32x128xf32>, vector<32x128xf32>, vector<32x128xf32>, vector<32x128xf32>, vector<32x128xf32>, vector<32x128xf32>, vector<32x128xf32>, vector<32x128xf32>, vector<32x128xf32>, vector<32x128xf32> -> vector<512x128xf32>
    %73 = tpu.concatenate %36, %37, %38, %39, %40, %41, %42, %43, %44, %45, %46, %47, %48, %49, %50, %51 in 0 : vector<32x128xf32>, vector<32x128xf32>, vector<32x128xf32>, vector<32x128xf32>, vector<32x128xf32>, vector<32x128xf32>, vector<32x128xf32>, vector<32x128xf32>, vector<32x128xf32>, vector<32x128xf32>, vector<32x128xf32>, vector<32x128xf32>, vector<32x128xf32>, vector<32x128xf32>, vector<32x128xf32>, vector<32x128xf32> -> vector<512x128xf32>
    %74 = tpu.concatenate %52, %53, %54, %55, %56, %57, %58, %59, %60, %61, %62, %63, %64, %65, %66, %67 in 0 : vector<32x128xf32>, vector<32x128xf32>, vector<32x128xf32>, vector<32x128xf32>, vector<32x128xf32>, vector<32x128xf32>, vector<32x128xf32>, vector<32x128xf32>, vector<32x128xf32>, vector<32x128xf32>, vector<32x128xf32>, vector<32x128xf32>, vector<32x128xf32>, vector<32x128xf32>, vector<32x128xf32>, vector<32x128xf32> -> vector<512x128xf32>
    %75 = tpu.concatenate %68, %69, %70, %71 in 0 : vector<32x128xf32>, vector<32x128xf32>, vector<32x128xf32>, vector<32x128xf32> -> vector<128x128xf32>
    %76 = tpu.concatenate %72, %73, %74, %75 in 0 : vector<512x128xf32>, vector<512x128xf32>, vector<512x128xf32>, vector<128x128xf32> -> vector<1664x128xf32>
    %c0_11 = arith.constant 0 : index
    %c0_12 = arith.constant 0 : index
    %77 = vector.load %arg6[%c0_11, %c0_12] : memref<4x1664xf32, #tpu.memory_space<vmem>>, vector<4x1664xf32>
    %cst_13 = arith.constant dense<0.000000e+00> : vector<4x128xf32>
    %78 = tpu.matmul %77, %76, %cst_13 {dimension_numbers = #tpu.dot_dimension_numbers<[1], [0], [0], [1], [0, 0, 1, 1], [], []>} : vector<4x1664xf32>, vector<1664x128xf32>, vector<4x128xf32> -> vector<4x128xf32>
    %c0_14 = arith.constant 0 : index
    %c0_15 = arith.constant 0 : index
    %79 = vector.load %arg7[%c0_14, %c0_15] : memref<4x1xf32, #tpu.memory_space<vmem>>, vector<4x1xf32>
    %80 = vector.broadcast %79 : vector<4x1xf32> to vector<4x128xf32>
    %81 = arith.addf %78, %80 : vector<4x128xf32>
    %c0_16 = arith.constant 0 : index
    %c0_17 = arith.constant 0 : index
    %82 = vector.load %arg8[%c0_16, %c0_17] : memref<4x128xf32, #tpu.memory_space<vmem>>, vector<4x128xf32>
    tpu.vector_store %arg8[%c0_16, %c0_17], %81 {strides = array<i32>} : memref<4x128xf32, #tpu.memory_space<vmem>>, vector<4x128xf32>,
    return
  }
  func.func @transform_0(%arg0: i32) -> (i32, i32, i32) {
    %c0_i32 = arith.constant 0 : i32
    %c0_i32_0 = arith.constant 0 : i32
    %c0_i32_1 = arith.constant 0 : i32
    return %arg0, %c0_i32, %c0_i32_0 : i32, i32, i32
  }
  func.func @transform_1(%arg0: i32) -> (i32, i32) {
    %c0_i32 = arith.constant 0 : i32
    %c0_i32_0 = arith.constant 0 : i32
    %c0_i32_1 = arith.constant 0 : i32
    return %c0_i32, %c0_i32_0 : i32, i32
  }
  func.func @transform_2(%arg0: i32) -> (i32, i32) {
    %c0_i32 = arith.constant 0 : i32
    %c0_i32_0 = arith.constant 0 : i32
    %c0_i32_1 = arith.constant 0 : i32
    return %c0_i32, %c0_i32_0 : i32, i32
  }
  func.func @transform_3(%arg0: i32) -> (i32, i32) {
    %c0_i32 = arith.constant 0 : i32
    %c0_i32_0 = arith.constant 0 : i32
    %c0_i32_1 = arith.constant 0 : i32
    return %c0_i32, %c0_i32_0 : i32, i32
  }
  func.func @transform_4(%arg0: i32) -> (i32, i32) {
    %c0_i32 = arith.constant 0 : i32
    %c0_i32_0 = arith.constant 0 : i32
    %c0_i32_1 = arith.constant 0 : i32
    return %c0_i32, %c0_i32_0 : i32, i32
  }
  func.func @transform_5(%arg0: i32) -> (i32, i32) {
    %c0_i32 = arith.constant 0 : i32
    %c0_i32_0 = arith.constant 0 : i32
    %c0_i32_1 = arith.constant 0 : i32
    return %c0_i32, %c0_i32_0 : i32, i32
  }
  func.func @transform_6(%arg0: i32) -> (i32, i32) {
    %c0_i32 = arith.constant 0 : i32
    %c0_i32_0 = arith.constant 0 : i32
    %c0_i32_1 = arith.constant 0 : i32
    return %c0_i32, %c0_i32_0 : i32, i32
  }
  func.func @transform_7(%arg0: i32) -> (i32, i32) {
    %c0_i32 = arith.constant 0 : i32
    %c0_i32_0 = arith.constant 0 : i32
    return %c0_i32, %arg0 : i32, i32
  }
}

</mosaic_0001>

<bundles_post_ra>
// kernel: tpu_custom_call.1
= control target key start
LH: loop header
LB: loop body
LE: loop exit
PB: predicated region body
PF: predicated region fallthrough
CT: control target
= control target key end

     0   :  { %12 = vsyncpa [#allocation3], 0  ;;  %s9966_s0 = inlined_call_operand.vmem [shape: f32[2,5,7168], index: 0, kind: input, shape index: {}]   ;;  %s9967_s1 = inlined_call_operand.vmem [shape: f32[16,5], index: 1, kind: input, shape index: {}]   ;;  %s9968_s2 = inlined_call_operand.vmem [shape: f32[16,1], index: 2, kind: input, shape index: {}]   ;;  %s9969_s3 = inlined_call_operand.vmem [shape: f32[32,80], index: 3, kind: input, shape index: {}]   ;;  %s9970_s4 = inlined_call_operand.vmem [shape: f32[32,1], index: 4, kind: input, shape index: {}]   ;;  %s9971_s5 = inlined_call_operand.vmem [shape: f32[4,1664], index: 5, kind: input, shape index: {}]   ;;  %s9972_s6 = inlined_call_operand.vmem [shape: f32[4,1], index: 6, kind: input, shape index: {}]   ;;  %s9973_s7 = inlined_call_operand.hbm [shape: f32[4,256], index: 7, kind: output, shape index: {}]  }
   0x1   :  { %14 = vsyncpa [#allocation3 + $0x1], 0  ;;  %s7980_s24 = smov 0   ;;  %s7982_s25 = smov 0  }
   0x2   :  { %s7984_s26 = smov 0   ;;  %s7986_s27 = smov 0  }
   0x3 LB: > { %s8001_s28 = sadd.s32 4294967295, %s7933_s27   ;;  %s5949_s29 = sadd.s32 4294967294, %s7933_s27   ;;  %s7933_s27 = sphi %s7986_s27, %s9979_s27   ;;  %s7929_s26 = sphi %s7984_s26, %s9978_s26   ;;  %s7925_s25 = sphi %s7982_s25, %s9977_s25   ;;  %s7921_s24 = sphi %s7980_s24, %s9976_s24  }
   0x4   : > { %s8005_s30 = sadd.s32 1, %s7933_s27   ;;  %s179_s8 = sadd.s32 1, %s7929_s26 }
   0x5   : > { %s176_s9 = ssub.s32 %s7933_s27, %s8005_s30  ;;  %p189_p0 = scmp.ne.s32.totalorder %s7929_s26, %s7925_s25 }
   0x6   : > { %p177_p1 = scmp.eq.s32.totalorder %s176_s9, 0  ;;  %p190_p2 = scmp.eq.s32.totalorder %s8001_s28, 1 }
   0x7   : > { %p195_p3 = scmp.ne.s32.totalorder %s7925_s25, %s7921_s24  ;;  %p196_p4 = scmp.eq.s32.totalorder %s5949_s29, 1 }
   0x8   : > { %s8016_s10 = scalar_select %p177_p1, %s7929_s26, %s179_s8  }
   0x9   : > { %p8018_p5 = por %p190_p2, %p189_p0  ;;  %p8022_p6 = por %p196_p4, %p195_p3 }
   0xa   : > { %p5952_p7 = scmp.ge.s32.totalorder %s7933_s27, 1  ;;  %p240_p8 = scmp.lt.s32.totalorder %s7933_s27, 3 }
   0xc   : > { %p241_p9 = pnand %p5952_p7, %p240_p8 }
   0xd   : > { %p272_p10 = scmp.lt.s32.totalorder (!%p241_p9), %s8001_s28, 1  ;;  %v7935_v0 = vmov (!%p241_p9), 0.0   ;;  %v335_v1 = vld [vmem:[%s9968_s2] sm:$0xff] (!%p241_p9)  ;;  %v7936_v2 = vmov (!%p241_p9), 0   ;;  %v336_v3 = vld [vmem:[%s9968_s2 + $0x8] sm:$0xff] (!%p241_p9)  ;;  %vm354_vm0 = vcmask (!%p241_p9), 1044480  }
   0xe   : > { %244 = sbr.rel (%p241_p9) target bundleno = 1020 (0x3fc), region = 48  ;;  %587 = vmatprep.mubr.f32.mxu0 (!%p241_p9), %v7935_v0  ;;  %670 = vmatprep.mubr.f32.mxu1 (!%p241_p9), %v7935_v0  ;;  %v8046_v4 = vld [vmem:[%s9967_s1] sm:$0xff] (!%p241_p9)  ;;  %vm347_vm1 = vcmask (!%p241_p9), 39936   ;;  %v8057_v9 = vld [vmem:[%s9967_s1 + $0x8] sm:$0xff] (!%p241_p9)  ;;  %v2797_v15 = vld [vmem:[%s9970_s4 + $0x10] sm:$0xff] (!%p241_p9)  ;;  %vm2819_vm2 = vcmask (!%p241_p9), 654336  }
   0xf   : > { %7219 = vset.pattern.permute.xlu0 (!%p241_p9), %v7936_v2  ;;  %7220 = vset.pattern.permute.xlu1 (!%p241_p9), %v7936_v2  ;;  %v5361_v19 = vld [vmem:[%s9972_s6] sm:$0xf] (!%p241_p9)  ;;  %vm7938_vm3 = vmmov (!%p241_p9), 0   ;;  %s269_s29 = sand.u32 (!%p241_p9), 1, %s7925_s25   ;;  %s6172_s9 = sshll.u32 (!%p241_p9), %s8001_s28, 6 }
  0x10   : > { %339 = vperm.xlu0 (!%p241_p9), %7219, %v335_v1   ;;  %v2795_v2 = vld [vmem:[%s9970_s4] sm:$0xff] (!%p241_p9)  ;;  %s5953_s8 = sshll.u32 (!%p241_p9), %s269_s29, 2  ;;  %s9924_s17 = scalar_lea.hbm (!%p241_p9), %s9973_s7, %s6172_s9 }
  0x11   : > { %2801 = vperm.xlu1 (!%p241_p9), %7220, %v2795_v2   ;;  %s271_s13 = scalar_lea.vmem (!%p241_p9), [#allocation2], %s5953_s8  ;;  %s5877_s18 = scalar_lea.sflag (!%p241_p9), [#allocation3], %s269_s29 }
  0x12   : > { %s5890_s14 = sshll.u32 (!%p241_p9), %s271_s13, 4  ;;  %s9926_s14 = int_to_ptr.vmem [resolvable:$true] %s5890_s14 }
  0x13   : > { %s7871_s19 = scalar_lea.vmem (!%p241_p9), %s9926_s14, 64 }
  0x14   : > { %344 = vperm.xlu0 (!%p241_p9), %7219, %v336_v3   ;;  %p7872_p11 = scmp.ne.s32.totalorder (!%p241_p9), %s9926_s14, %s7871_s19 }
  0x15   : > { %s273_s15 = scalar_select %p272_p10, %s8001_s28, 1 }
  0x16   : > { %p7873_p12 = pnand %p7872_p11, %p8018_p5  ;;  %s7939_s28 = smov [#allocation2]  }
  0x17   : > { %s7175_s16 = smul.u32 448, %s273_s15  ;;  %s7875_s20 = sshll.u32 %s7939_s28, 4  ;;  %s7876_s20 = int_to_ptr.vmem [resolvable:$false] %s7875_s20 }
  0x18   : > { %2811 = vperm.xlu0 %7219, %v2797_v15   ;;  %p7874_p13 = pneg %p7873_p12  ;;  %p7878_p0 = scmp.lt.s32.totalorder %s9926_s14, %s7876_s20 }
  0x19   : > { %s8041_s21 = scalar_lea.vmem %s9966_s0, %s7175_s16 }
  0x1a   : > { %v278_v5 = vld [vmem:[%s8041_s21 + $0x8] sm:$0x1f]  ;;  %v280_v6 = vld [vmem:[%s8041_s21 + $0x18] sm:$0x1f]  ;;  %v277_v7 = vld [vmem:[%s8041_s21] sm:$0x1f] }
  0x1b   : > { %5955 = vmatprep.subr.msk.mxu0 %vm354_vm0, %v278_v5  ;;  %7173 = vmatprep.subr.msk.mxu1 %vm354_vm0, %v280_v6  ;;  %v279_v8 = vld [vmem:[%s8041_s21 + $0x10] sm:$0x1f]  ;;  %v284_v10 = vld [vmem:[%s8041_s21 + $0x38] sm:$0x1f]  ;;  %v282_v12 = vld [vmem:[%s8041_s21 + $0x28] sm:$0x1f] }
  0x1c   : > { %5956 = vmatpush1.msk.msra.mxu0 %vm354_vm0, %v277_v7  ;;  %7174 = vmatpush1.msk.msra.mxu1 %vm354_vm0, %v279_v8  ;;  %v283_v11 = vld [vmem:[%s8041_s21 + $0x30] sm:$0x1f]  ;;  %v288_v13 = vld [vmem:[%s8041_s21 + $0x58] sm:$0x1f]  ;;  %v281_v17 = vld [vmem:[%s8041_s21 + $0x20] sm:$0x1f] }
  0x1d   : > { %5957 = vmatmul.mubr.msk.f32.vlgmr.msra.gmra.mrb[0].mxu0 %vm347_vm1, %v8046_v4  ;;  %5959 = vmatprep.subr.msk.mxu0 %vm354_vm0, %v280_v6  ;;  %v287_v14 = vld [vmem:[%s8041_s21 + $0x50] sm:$0x1f]  ;;  %v292_v16 = vld [vmem:[%s8041_s21 + $0x78] sm:$0x1f]  ;;  %v286_v18 = vld [vmem:[%s8041_s21 + $0x48] sm:$0x1f] }
  0x1e   : > { %5962 = vmatmul.mubr.msk.f32.vlgmr.msra.gmra.mrb[0].mxu1 %vm347_vm1, %v8057_v9  ;;  %5960 = vmatpush1.msk.msra.mxu0 %vm354_vm0, %v279_v8  ;;  %v285_v20 = vld [vmem:[%s8041_s21 + $0x40] sm:$0x1f]  ;;  %v291_v21 = vld [vmem:[%s8041_s21 + $0x70] sm:$0x1f]  ;;  %v290_v22 = vld [vmem:[%s8041_s21 + $0x68] sm:$0x1f] }
  0x1f   : > { %5967 = vmatprep.subr.msk.mxu1 %vm354_vm0, %v284_v10  ;;  %593 = vmatprep.mubr.f32.mxu0 %v7935_v0  ;;  %v296_v23 = vld [vmem:[%s8041_s21 + $0x98] sm:$0x1f]  ;;  %v289_v24 = vld [vmem:[%s8041_s21 + $0x60] sm:$0x1f]  ;;  %v295_v25 = vld [vmem:[%s8041_s21 + $0x90] sm:$0x1f] }
  0x20   : > { %5968 = vmatpush1.msk.msra.mxu1 %vm354_vm0, %v283_v11  ;;  %818 = vmatprep.mubr.f32.mxu1 %v7935_v0  ;;  %v294_v26 = vld [vmem:[%s8041_s21 + $0x88] sm:$0x1f]  ;;  %v300_v27 = vld [vmem:[%s8041_s21 + $0xb8] sm:$0x1f]  ;;  %v293_v28 = vld [vmem:[%s8041_s21 + $0x80] sm:$0x1f] }
  0x21   : > { %5958 = vmatmul.mubr.msk.f32.gmra.mrb[2].mxu0 %vm347_vm1, %v8057_v9  ;;  %5963 = vmatprep.subr.msk.mxu0 %vm354_vm0, %v282_v12  ;;  %v299_v29 = vld [vmem:[%s8041_s21 + $0xb0] sm:$0x1f]  ;;  %v298_v30 = vld [vmem:[%s8041_s21 + $0xa8] sm:$0x1f]  ;;  %v304_v31 = vld [vmem:[%s8041_s21 + $0xd8] sm:$0x1f] }
  0x22   : > { %5969 = vmatmul.mubr.msk.f32.vlgmr.msra.gmra.mrb[2].mxu1 %vm347_vm1, %v8046_v4  ;;  %664 = vmatprep.mubr.f32.mxu0 %v7935_v0  ;;  %v297_v32 = vld [vmem:[%s8041_s21 + $0xa0] sm:$0x1f]  ;;  %v303_v33 = vld [vmem:[%s8041_s21 + $0xd0] sm:$0x1f]  ;;  %v302_v34 = vld [vmem:[%s8041_s21 + $0xc8] sm:$0x1f] }
  0x23   : > { %824 = vmatprep.mubr.f32.mxu1 %v7935_v0  ;;  %5975 = vmatprep.subr.msk.mxu1 %vm354_vm0, %v288_v13  ;;  %v308_v35 = vld [vmem:[%s8041_s21 + $0xf8] sm:$0x1f]  ;;  %v301_v36 = vld [vmem:[%s8041_s21 + $0xc0] sm:$0x1f]  ;;  %v307_v37 = vld [vmem:[%s8041_s21 + $0xf0] sm:$0x1f] }
  0x24   : > { %5976 = vmatpush1.msk.msra.mxu1 %vm354_vm0, %v287_v14  ;;  %5364 = vperm.xlu0 %7219, %v5361_v19   ;;  %v306_v38 = vld [vmem:[%s8041_s21 + $0xe8] sm:$0x1f]  ;;  %v312_v39 = vld [vmem:[%s8041_s21 + $0x118] sm:$0x1f]  ;;  %v305_v40 = vld [vmem:[%s8041_s21 + $0xe0] sm:$0x1f] }
  0x25   : > { %5961 = vmatmul.mubr.msk.f32.vlgmr.msra.gmra.mrb[4].mxu0 %vm347_vm1, %v8046_v4  ;;  %5983 = vmatprep.subr.msk.mxu1 %vm354_vm0, %v292_v16  ;;  %v311_v41 = vld [vmem:[%s8041_s21 + $0x110] sm:$0x1f]  ;;  %v310_v42 = vld [vmem:[%s8041_s21 + $0x108] sm:$0x1f]  ;;  %v316_v43 = vld [vmem:[%s8041_s21 + $0x138] sm:$0x1f] }
  0x26   : > { %5970 = vmatmul.mubr.msk.f32.gmra.mrb[4].mxu1 %vm347_vm1, %v8057_v9  ;;  %5964 = vmatpush1.msk.msra.mxu0 %vm354_vm0, %v281_v17  ;;  %v309_v44 = vld [vmem:[%s8041_s21 + $0x100] sm:$0x1f]  ;;  %v315_v45 = vld [vmem:[%s8041_s21 + $0x130] sm:$0x1f]  ;;  %v314_v46 = vld [vmem:[%s8041_s21 + $0x128] sm:$0x1f] }
  0x27   : > { %741 = vmatprep.mubr.f32.mxu0 %v7935_v0  ;;  %972 = vmatprep.mubr.f32.mxu1 %v7935_v0  ;;  %v320_v47 = vld [vmem:[%s8041_s21 + $0x158] sm:$0x1f]  ;;  %v313_v48 = vld [vmem:[%s8041_s21 + $0x120] sm:$0x1f]  ;;  %v319_v49 = vld [vmem:[%s8041_s21 + $0x150] sm:$0x1f] }
  0x28   : > { %5971 = vmatprep.subr.msk.mxu0 %vm354_vm0, %v286_v18  ;;  %v318_v50 = vld [vmem:[%s8041_s21 + $0x148] sm:$0x1f]  ;;  %v324_v51 = vld [vmem:[%s8041_s21 + $0x178] sm:$0x1f]  ;;  %v317_v52 = vld [vmem:[%s8041_s21 + $0x140] sm:$0x1f] }
  0x29   : > { %5965 = vmatmul.mubr.msk.f32.vlgmr.msra.gmra.mrb[6].mxu0 %vm347_vm1, %v8046_v4  ;;  %v323_v53 = vld [vmem:[%s8041_s21 + $0x170] sm:$0x1f]  ;;  %v322_v54 = vld [vmem:[%s8041_s21 + $0x168] sm:$0x1f]  ;;  %v328_v55 = vld [vmem:[%s8041_s21 + $0x198] sm:$0x1f] }
  0x2a   : > { %5977 = vmatmul.mubr.msk.f32.vlgmr.msra.gmra.mrb[6].mxu1 %vm347_vm1, %v8046_v4  ;;  %747 = vmatprep.mubr.f32.mxu0 %v7935_v0  ;;  %v321_v56 = vld [vmem:[%s8041_s21 + $0x160] sm:$0x1f]  ;;  %v327_v57 = vld [vmem:[%s8041_s21 + $0x190] sm:$0x1f]  ;;  %v326_v58 = vld [vmem:[%s8041_s21 + $0x188] sm:$0x1f] }
  0x2b   : > { %978 = vmatprep.mubr.f32.mxu1 %v7935_v0  ;;  %5972 = vmatpush1.msk.msra.mxu0 %vm354_vm0, %v285_v20  ;;  %v332_v59 = vld [vmem:[%s8041_s21 + $0x1b8] sm:$0x1f]  ;;  %v325_v60 = vld [vmem:[%s8041_s21 + $0x180] sm:$0x1f]  ;;  %v331_v61 = vld [vmem:[%s8041_s21 + $0x1b0] sm:$0x1f] }
  0x2c   : > { %5984 = vmatpush1.msk.msra.mxu1 %vm354_vm0, %v291_v21  ;;  %5979 = vmatprep.subr.msk.mxu0 %vm354_vm0, %v290_v22  ;;  %v330_v62 = vld [vmem:[%s8041_s21 + $0x1a8] sm:$0x1f]  ;;  %v329_v63 = vld [vmem:[%s8041_s21 + $0x1a0] sm:$0x1f]  ;;  %s7877_s21 = scalar_lea.vmem %s7876_s20, 128 }
  0x2d   : > { %5966 = vmatmul.mubr.msk.f32.gmra.mrb[8].mxu0 %vm347_vm1, %v8057_v9  ;;  %5991 = vmatprep.subr.msk.mxu1 %vm354_vm0, %v296_v23  ;;  %v2796_v8 = vld [vmem:[%s9970_s4 + $0x8] sm:$0xff]  ;;  %p7879_p1 = scmp.lt.s32.totalorder %s7877_s21, %s7871_s19 }
  0x2e   : > { %5978 = vmatmul.mubr.msk.f32.gmra.mrb[8].mxu1 %vm347_vm1, %v8057_v9  ;;  %895 = vmatprep.mubr.f32.mxu0 %v7935_v0 }
  0x2f   : > { %1126 = vmatprep.mubr.f32.mxu1 %v7935_v0  ;;  %2806 = vperm.xlu1 %7220, %v2796_v8   ;;  %p7880_p2 = por %p7879_p1, %p7878_p0 }
  0x31   : > { %5973 = vmatmul.mubr.msk.f32.vlgmr.msra.gmra.mrb[10].mxu0 %vm347_vm1, %v8046_v4  ;;  %p7881_p3 = pnand %p7880_p2, %p7874_p13 }
  0x32   : > { %5985 = vmatmul.mubr.msk.f32.vlgmr.msra.gmra.mrb[10].mxu1 %vm347_vm1, %v8046_v4  ;;  %901 = vmatprep.mubr.f32.mxu0 %v7935_v0 }
  0x33   : > { %1132 = vmatprep.mubr.f32.mxu1 %v7935_v0  ;;  %5980 = vmatpush1.msk.msra.mxu0 %vm354_vm0, %v289_v24 }
  0x34   : > { %5992 = vmatpush1.msk.msra.mxu1 %vm354_vm0, %v295_v25  ;;  %5987 = vmatprep.subr.msk.mxu0 %vm354_vm0, %v294_v26  ;;  %v2798_v25 = vld [vmem:[%s9970_s4 + $0x18] sm:$0xff] }
  0x35   : > { %5974 = vmatmul.mubr.msk.f32.gmra.mrb[12].mxu0 %vm347_vm1, %v8057_v9  ;;  %5999 = vmatprep.subr.msk.mxu1 %vm354_vm0, %v300_v27 }
  0x36   : > { %5986 = vmatmul.mubr.msk.f32.gmra.mrb[12].mxu1 %vm347_vm1, %v8057_v9  ;;  %1049 = vmatprep.mubr.f32.mxu0 %v7935_v0 }
  0x37   : > { %1280 = vmatprep.mubr.f32.mxu1 %v7935_v0  ;;  %2816 = vperm.xlu1 %7220, %v2798_v25  }
  0x39   : > { %5981 = vmatmul.mubr.msk.f32.vlgmr.msra.gmra.mrb[14].mxu0 %vm347_vm1, %v8046_v4 }
  0x3a   : > { %5993 = vmatmul.mubr.msk.f32.vlgmr.msra.gmra.mrb[14].mxu1 %vm347_vm1, %v8046_v4  ;;  %1055 = vmatprep.mubr.f32.mxu0 %v7935_v0 }
  0x3b   : > { %1286 = vmatprep.mubr.f32.mxu1 %v7935_v0  ;;  %5988 = vmatpush1.msk.msra.mxu0 %vm354_vm0, %v293_v28 }
  0x3c   : > { %6000 = vmatpush1.msk.msra.mxu1 %vm354_vm0, %v299_v29  ;;  %5995 = vmatprep.subr.msk.mxu0 %vm354_vm0, %v298_v30 }
  0x3d   : > { %5982 = vmatmul.mubr.msk.f32.gmra.mrb[16].mxu0 %vm347_vm1, %v8057_v9  ;;  %6007 = vmatprep.subr.msk.mxu1 %vm354_vm0, %v304_v31 }
  0x3e   : > { %5994 = vmatmul.mubr.msk.f32.gmra.mrb[16].mxu1 %vm347_vm1, %v8057_v9  ;;  %1203 = vmatprep.mubr.f32.mxu0 %v7935_v0 }
  0x3f   : > { %1434 = vmatprep.mubr.f32.mxu1 %v7935_v0 }
  0x41   : > { %5989 = vmatmul.mubr.msk.f32.vlgmr.msra.gmra.mrb[18].mxu0 %vm347_vm1, %v8046_v4 }
  0x42   : > { %6001 = vmatmul.mubr.msk.f32.vlgmr.msra.gmra.mrb[18].mxu1 %vm347_vm1, %v8046_v4  ;;  %1209 = vmatprep.mubr.f32.mxu0 %v7935_v0 }
  0x43   : > { %1440 = vmatprep.mubr.f32.mxu1 %v7935_v0  ;;  %5996 = vmatpush1.msk.msra.mxu0 %vm354_vm0, %v297_v32 }
  0x44   : > { %6008 = vmatpush1.msk.msra.mxu1 %vm354_vm0, %v303_v33  ;;  %6003 = vmatprep.subr.msk.mxu0 %vm354_vm0, %v302_v34 }
  0x45   : > { %5990 = vmatmul.mubr.msk.f32.gmra.mrb[20].mxu0 %vm347_vm1, %v8057_v9  ;;  %6015 = vmatprep.subr.msk.mxu1 %vm354_vm0, %v308_v35 }
  0x46   : > { %6002 = vmatmul.mubr.msk.f32.gmra.mrb[20].mxu1 %vm347_vm1, %v8057_v9  ;;  %1357 = vmatprep.mubr.f32.mxu0 %v7935_v0 }
  0x47   : > { %1588 = vmatprep.mubr.f32.mxu1 %v7935_v0 }
  0x49   : > { %5997 = vmatmul.mubr.msk.f32.vlgmr.msra.gmra.mrb[22].mxu0 %vm347_vm1, %v8046_v4 }
  0x4a   : > { %6009 = vmatmul.mubr.msk.f32.vlgmr.msra.gmra.mrb[22].mxu1 %vm347_vm1, %v8046_v4  ;;  %1363 = vmatprep.mubr.f32.mxu0 %v7935_v0 }
  0x4b   : > { %1594 = vmatprep.mubr.f32.mxu1 %v7935_v0  ;;  %6004 = vmatpush1.msk.msra.mxu0 %vm354_vm0, %v301_v36 }
  0x4c   : > { %6016 = vmatpush1.msk.msra.mxu1 %vm354_vm0, %v307_v37  ;;  %6011 = vmatprep.subr.msk.mxu0 %vm354_vm0, %v306_v38 }
  0x4d   : > { %5998 = vmatmul.mubr.msk.f32.gmra.mrb[24].mxu0 %vm347_vm1, %v8057_v9  ;;  %6023 = vmatprep.subr.msk.mxu1 %vm354_vm0, %v312_v39 }
  0x4e   : > { %6010 = vmatmul.mubr.msk.f32.gmra.mrb[24].mxu1 %vm347_vm1, %v8057_v9  ;;  %1511 = vmatprep.mubr.f32.mxu0 %v7935_v0 }
  0x4f   : > { %1742 = vmatprep.mubr.f32.mxu1 %v7935_v0 }
  0x51   : > { %6005 = vmatmul.mubr.msk.f32.vlgmr.msra.gmra.mrb[26].mxu0 %vm347_vm1, %v8046_v4 }
  0x52   : > { %6017 = vmatmul.mubr.msk.f32.vlgmr.msra.gmra.mrb[26].mxu1 %vm347_vm1, %v8046_v4  ;;  %1517 = vmatprep.mubr.f32.mxu0 %v7935_v0 }
  0x53   : > { %1748 = vmatprep.mubr.f32.mxu1 %v7935_v0  ;;  %6012 = vmatpush1.msk.msra.mxu0 %vm354_vm0, %v305_v40 }
  0x54   : > { %6024 = vmatpush1.msk.msra.mxu1 %vm354_vm0, %v311_v41  ;;  %6019 = vmatprep.subr.msk.mxu0 %vm354_vm0, %v310_v42 }
  0x55   : > { %6006 = vmatmul.mubr.msk.f32.gmra.mrb[28].mxu0 %vm347_vm1, %v8057_v9  ;;  %6031 = vmatprep.subr.msk.mxu1 %vm354_vm0, %v316_v43 }
  0x56   : > { %6018 = vmatmul.mubr.msk.f32.gmra.mrb[28].mxu1 %vm347_vm1, %v8057_v9  ;;  %1665 = vmatprep.mubr.f32.mxu0 %v7935_v0 }
  0x57   : > { %1896 = vmatprep.mubr.f32.mxu1 %v7935_v0 }
  0x59   : > { %6013 = vmatmul.mubr.msk.f32.vlgmr.msra.gmra.mrb[30].mxu0 %vm347_vm1, %v8046_v4 }
  0x5a   : > { %6025 = vmatmul.mubr.msk.f32.vlgmr.msra.gmra.mrb[30].mxu1 %vm347_vm1, %v8046_v4  ;;  %1671 = vmatprep.mubr.f32.mxu0 %v7935_v0 }
  0x5b   : > { %1902 = vmatprep.mubr.f32.mxu1 %v7935_v0  ;;  %6020 = vmatpush1.msk.msra.mxu0 %vm354_vm0, %v309_v44 }
  0x5c   : > { %6032 = vmatpush1.msk.msra.mxu1 %vm354_vm0, %v315_v45  ;;  %6027 = vmatprep.subr.msk.mxu0 %vm354_vm0, %v314_v46 }
  0x5d   : > { %6014 = vmatmul.mubr.msk.f32.gmra.mrb[32].mxu0 %vm347_vm1, %v8057_v9  ;;  %6039 = vmatprep.subr.msk.mxu1 %vm354_vm0, %v320_v47 }
  0x5e   : > { %6026 = vmatmul.mubr.msk.f32.gmra.mrb[32].mxu1 %vm347_vm1, %v8057_v9  ;;  %1819 = vmatprep.mubr.f32.mxu0 %v7935_v0 }
  0x5f   : > { %2050 = vmatprep.mubr.f32.mxu1 %v7935_v0 }
  0x61   : > { %6021 = vmatmul.mubr.msk.f32.vlgmr.msra.gmra.mrb[34].mxu0 %vm347_vm1, %v8046_v4 }
  0x62   : > { %6033 = vmatmul.mubr.msk.f32.vlgmr.msra.gmra.mrb[34].mxu1 %vm347_vm1, %v8046_v4  ;;  %1825 = vmatprep.mubr.f32.mxu0 %v7935_v0 }
  0x63   : > { %2056 = vmatprep.mubr.f32.mxu1 %v7935_v0  ;;  %6028 = vmatpush1.msk.msra.mxu0 %vm354_vm0, %v313_v48 }
  0x64   : > { %6040 = vmatpush1.msk.msra.mxu1 %vm354_vm0, %v319_v49  ;;  %6035 = vmatprep.subr.msk.mxu0 %vm354_vm0, %v318_v50 }
  0x65   : > { %6022 = vmatmul.mubr.msk.f32.gmra.mrb[36].mxu0 %vm347_vm1, %v8057_v9  ;;  %6047 = vmatprep.subr.msk.mxu1 %vm354_vm0, %v324_v51 }
  0x66   : > { %6034 = vmatmul.mubr.msk.f32.gmra.mrb[36].mxu1 %vm347_vm1, %v8057_v9  ;;  %1973 = vmatprep.mubr.f32.mxu0 %v7935_v0 }
  0x67   : > { %2204 = vmatprep.mubr.f32.mxu1 %v7935_v0 }
  0x69   : > { %6029 = vmatmul.mubr.msk.f32.vlgmr.msra.gmra.mrb[38].mxu0 %vm347_vm1, %v8046_v4 }
  0x6a   : > { %6041 = vmatmul.mubr.msk.f32.vlgmr.msra.gmra.mrb[38].mxu1 %vm347_vm1, %v8046_v4  ;;  %1979 = vmatprep.mubr.f32.mxu0 %v7935_v0 }
  0x6b   : > { %2210 = vmatprep.mubr.f32.mxu1 %v7935_v0  ;;  %6036 = vmatpush1.msk.msra.mxu0 %vm354_vm0, %v317_v52 }
  0x6c   : > { %6048 = vmatpush1.msk.msra.mxu1 %vm354_vm0, %v323_v53  ;;  %6043 = vmatprep.subr.msk.mxu0 %vm354_vm0, %v322_v54 }
  0x6d   : > { %6030 = vmatmul.mubr.msk.f32.gmra.mrb[40].mxu0 %vm347_vm1, %v8057_v9  ;;  %6055 = vmatprep.subr.msk.mxu1 %vm354_vm0, %v328_v55 }
  0x6e   : > { %6042 = vmatmul.mubr.msk.f32.gmra.mrb[40].mxu1 %vm347_vm1, %v8057_v9  ;;  %2127 = vmatprep.mubr.f32.mxu0 %v7935_v0 }
  0x6f   : > { %2358 = vmatprep.mubr.f32.mxu1 %v7935_v0 }
  0x71   : > { %6037 = vmatmul.mubr.msk.f32.vlgmr.msra.gmra.mrb[42].mxu0 %vm347_vm1, %v8046_v4 }
  0x72   : > { %6049 = vmatmul.mubr.msk.f32.vlgmr.msra.gmra.mrb[42].mxu1 %vm347_vm1, %v8046_v4  ;;  %2133 = vmatprep.mubr.f32.mxu0 %v7935_v0 }
  0x73   : > { %2364 = vmatprep.mubr.f32.mxu1 %v7935_v0  ;;  %6044 = vmatpush1.msk.msra.mxu0 %vm354_vm0, %v321_v56 }
  0x74   : > { %6056 = vmatpush1.msk.msra.mxu1 %vm354_vm0, %v327_v57  ;;  %6051 = vmatprep.subr.msk.mxu0 %vm354_vm0, %v326_v58 }
  0x75   : > { %6038 = vmatmul.mubr.msk.f32.gmra.mrb[44].mxu0 %vm347_vm1, %v8057_v9  ;;  %6063 = vmatprep.subr.msk.mxu1 %vm354_vm0, %v332_v59 }
  0x76   : > { %6050 = vmatmul.mubr.msk.f32.gmra.mrb[44].mxu1 %vm347_vm1, %v8057_v9  ;;  %2281 = vmatprep.mubr.f32.mxu0 %v7935_v0 }
  0x77   : > { %2512 = vmatprep.mubr.f32.mxu1 %v7935_v0 }
  0x79   : > { %6045 = vmatmul.mubr.msk.f32.vlgmr.msra.gmra.mrb[46].mxu0 %vm347_vm1, %v8046_v4 }
  0x7a   : > { %6057 = vmatmul.mubr.msk.f32.vlgmr.msra.gmra.mrb[46].mxu1 %vm347_vm1, %v8046_v4  ;;  %2287 = vmatprep.mubr.f32.mxu0 %v7935_v0 }
  0x7b   : > { %2518 = vmatprep.mubr.f32.mxu1 %v7935_v0  ;;  %6052 = vmatpush1.msk.msra.mxu0 %vm354_vm0, %v325_v60 }
  0x7c   : > { %6064 = vmatpush1.msk.msra.mxu1 %vm354_vm0, %v331_v61  ;;  %6059 = vmatprep.subr.msk.mxu0 %vm354_vm0, %v330_v62 }
  0x7d   : > { %6046 = vmatmul.mubr.msk.f32.gmra.mrb[48].mxu0 %vm347_vm1, %v8057_v9 }
  0x7e   : > { %6058 = vmatmul.mubr.msk.f32.gmra.mrb[48].mxu1 %vm347_vm1, %v8057_v9  ;;  %2435 = vmatprep.mubr.f32.mxu0 %v7935_v0 }
  0x7f   : > { %2666 = vmatprep.mubr.f32.mxu1 %v7935_v0 }
  0x81   : > { %6053 = vmatmul.mubr.msk.f32.vlgmr.msra.gmra.mrb[50].mxu0 %vm347_vm1, %v8046_v4 }
  0x82   : > { %6065 = vmatmul.mubr.msk.f32.vlgmr.msra.gmra.mrb[50].mxu1 %vm347_vm1, %v8046_v4  ;;  %2441 = vmatprep.mubr.f32.mxu0 %v7935_v0 }
  0x83   : > { %2672 = vmatprep.mubr.f32.mxu1 %v7935_v0  ;;  %6060 = vmatpush1.msk.msra.mxu0 %vm354_vm0, %v329_v63 }
  0x85   : > { %6054 = vmatmul.mubr.msk.f32.gmra.mrb[52].mxu0 %vm347_vm1, %v8057_v9 }
  0x86   : > { %6066 = vmatmul.mubr.msk.f32.gmra.mrb[52].mxu1 %vm347_vm1, %v8057_v9  ;;  %2589 = vmatprep.mubr.f32.mxu0 %v7935_v0 }
  0x87   : > { %2896 = vmatprep.mubr.f32.mxu1 %v7935_v0 }
  0x89   : > { %6061 = vmatmul.mubr.msk.f32.vlgmr.msra.gmra.mrb[54].mxu0 %vm347_vm1, %v8046_v4 }
  0x8a   : > { %2595 = vmatprep.mubr.f32.mxu0 %v7935_v0 }
  0x8d   : > { %6062 = vmatmul.mubr.msk.f32.gmra.mrb[56].mxu0 %vm347_vm1, %v8057_v9 }
  0x8e   : > { %3074 = vmatprep.mubr.f32.mxu0 %v7935_v0 }
  0x8f   : > { %v8341_v1 = vpop.permute.xlu0 %339 }
  0x93   : > { %v8346_v3 = vpop.permute.xlu0 %344 }
  0xf0   : > { %v589_v5 = vpop.f32.mrb[0].mxu0 }
  0xf1   : > { %v590_v6 = vadd.f32 %v589_v5, %v8341_v1  ;;  %v672_v4 = vpop.f32.mrb[0].mxu1  ;;  %v591_v7 = vpop.f32.mrb[1].mxu0 }
  0xf2   : > { %v673_v9 = vadd.f32 %v672_v4, %v8346_v3  ;;  %v592_v10 = vadd.f32 %v591_v7, %v8341_v1  ;;  %v674_v11 = vpop.f32.mrb[1].mxu1 }
  0xf3   : > { %7227 = vtanh.f32 %v590_v6  ;;  %v675_v12 = vadd.f32 %v674_v11, %v8346_v3 }
  0xf4   : > { %7229 = vtanh.f32 %v673_v9  ;;  %v595_v13 = vpop.f32.mrb[2].mxu0 }
  0xf5   : > { %7231 = vtanh.f32 %v592_v10  ;;  %v596_v14 = vadd.f32 %v595_v13, %v8346_v3  ;;  %v820_v15 = vpop.f32.mrb[2].mxu1  ;;  %v597_v16 = vpop.f32.mrb[3].mxu0 }
  0xf6   : > { %7233 = vtanh.f32 %v675_v12  ;;  %v821_v17 = vadd.f32 %v820_v15, %v8341_v1  ;;  %v598_v18 = vadd.f32 %v597_v16, %v8346_v3  ;;  %v822_v19 = vpop.f32.mrb[3].mxu1 }
  0xf7   : > { %7235 = vtanh.f32 %v596_v14  ;;  %v823_v20 = vadd.f32 %v822_v19, %v8341_v1 }
  0xf8   : > { %7237 = vtanh.f32 %v821_v17  ;;  %v666_v21 = vpop.f32.mrb[4].mxu0 }
  0xf9   : > { %7239 = vtanh.f32 %v598_v18  ;;  %v667_v22 = vadd.f32 %v666_v21, %v8341_v1  ;;  %v826_v23 = vpop.f32.mrb[4].mxu1  ;;  %v668_v24 = vpop.f32.mrb[5].mxu0 }
  0xfa   : > { %7241 = vtanh.f32 %v823_v20  ;;  %v827_v26 = vadd.f32 %v826_v23, %v8346_v3  ;;  %v669_v27 = vadd.f32 %v668_v24, %v8341_v1  ;;  %v828_v28 = vpop.f32.mrb[5].mxu1 }
  0xfb   : > { %7243 = vtanh.f32 %v667_v22  ;;  %v829_v29 = vadd.f32 %v828_v28, %v8346_v3 }
  0xfc   : > { %7245 = vtanh.f32 %v827_v26  ;;  %v743_v30 = vpop.f32.mrb[6].mxu0 }
  0xfd   : > { %v7228_v31 = vpop.eup %7227  ;;  %7247 = vtanh.f32 %v669_v27  ;;  %v744_v32 = vadd.f32 %v743_v30, %v8341_v1  ;;  %v974_v33 = vpop.f32.mrb[6].mxu1 }
  0xfe   : > { %v745_v34 = vpop.f32.mrb[7].mxu0  ;;  %v7230_v35 = vpop.eup %7229  ;;  %7249 = vtanh.f32 %v829_v29  ;;  %v975_v36 = vadd.f32 %v974_v33, %v8341_v1 }
  0xff   : > { %v746_v37 = vadd.f32 %v745_v34, %v8341_v1  ;;  %v976_v38 = vpop.f32.mrb[7].mxu1  ;;  %v7232_v39 = vpop.eup %7231  ;;  %7251 = vtanh.f32 %v744_v32 }
 0x100   : > { %v977_v40 = vadd.f32 %v976_v38, %v8341_v1  ;;  %v7234_v41 = vpop.eup %7233  ;;  %7253 = vtanh.f32 %v975_v36  ;;  %v749_v42 = vpop.f32.mrb[8].mxu0 }
 0x101   : > { %v7236_v43 = vpop.eup %7235  ;;  %7255 = vtanh.f32 %v746_v37  ;;  %v750_v44 = vadd.f32 %v749_v42, %v8346_v3  ;;  %v980_v45 = vpop.f32.mrb[8].mxu1 }
 0x102   : > { %v751_v46 = vpop.f32.mrb[9].mxu0  ;;  %v7238_v47 = vpop.eup %7237  ;;  %7257 = vtanh.f32 %v977_v40  ;;  %v981_v48 = vadd.f32 %v980_v45, %v8346_v3  ;;  %v6439_v51 = vpack.c.bf16 %v7236_v43, %v7228_v31 }
 0x103   : > { %v752_v49 = vadd.f32 %v751_v46, %v8346_v3  ;;  %v982_v50 = vpop.f32.mrb[9].mxu1  ;;  %v7240_v52 = vpop.eup %7239  ;;  %7259 = vtanh.f32 %v750_v44 }
 0x104   : > { %v983_v53 = vadd.f32 %v982_v50, %v8346_v3  ;;  %v7242_v54 = vpop.eup %7241  ;;  %7261 = vtanh.f32 %v981_v48  ;;  %v897_v55 = vpop.f32.mrb[10].mxu0  ;;  %v6437_v56 = vpack.c.bf16 %v7240_v52, %v7232_v39 }
 0x105   : > { %v7244_v57 = vpop.eup %7243  ;;  %7263 = vtanh.f32 %v752_v49  ;;  %v898_v58 = vadd.f32 %v897_v55, %v8341_v1  ;;  %v1128_v59 = vpop.f32.mrb[10].mxu1 }
 0x106   : > { %v899_v60 = vpop.f32.mrb[11].mxu0  ;;  %v7246_v61 = vpop.eup %7245  ;;  %7265 = vtanh.f32 %v983_v53  ;;  %v1129_v62 = vadd.f32 %v1128_v59, %v8341_v1  ;;  %6438 = vmatprep.subr.bf16.mxu1 %v6437_v56  ;;  %v8377_v5 = vpack.c.bf16 %v7230_v35, %v7244_v57 }
 0x107   : > { %v900_v63 = vadd.f32 %v899_v60, %v8341_v1  ;;  %v1130_v2 = vpop.f32.mrb[11].mxu1  ;;  %v7248_v6 = vpop.eup %7247  ;;  %7267 = vtanh.f32 %v898_v58  ;;  %6440 = vmatpush1.bf16.msra.mxu1 %v6439_v51  ;;  %v8380_v7 = vpack.c.bf16 %v7246_v61, %v7238_v47 }
 0x108   : > { %v1131_v4 = vadd.f32 %v1130_v2, %v8341_v1  ;;  %v7250_v8 = vpop.eup %7249  ;;  %7269 = vtanh.f32 %v1129_v62  ;;  %v903_v9 = vpop.f32.mrb[12].mxu0  ;;  %6442 = vmatprep.subr.bf16.mxu1 %v8377_v5  ;;  %v8383_v10 = vpack.c.bf16 %v7234_v41, %v7248_v6 }
 0x109   : > { %v7252_v11 = vpop.eup %7251  ;;  %7271 = vtanh.f32 %v900_v63  ;;  %v904_v12 = vadd.f32 %v903_v9, %v8346_v3  ;;  %v1134_v13 = vpop.f32.mrb[12].mxu1  ;;  %v8386_v15 = vpack.c.bf16 %v7250_v8, %v7242_v54  ;;  %v8426_v63 = vld [vmem:[%s9969_s3] sm:$0xff] }
 0x10a   : > { %v905_v14 = vpop.f32.mrb[13].mxu0  ;;  %v7254_v16 = vpop.eup %7253  ;;  %7273 = vtanh.f32 %v1131_v4  ;;  %v1135_v17 = vadd.f32 %v1134_v13, %v8346_v3 }
 0x10b   : > { %v906_v18 = vadd.f32 %v905_v14, %v8346_v3  ;;  %v1136_v19 = vpop.f32.mrb[13].mxu1  ;;  %v7256_v20 = vpop.eup %7255  ;;  %7275 = vtanh.f32 %v904_v12  ;;  %6444 = vmatpush1.bf16.msra.mxu1 %v6437_v56 }
 0x10c   : > { %v1137_v21 = vadd.f32 %v1136_v19, %v8346_v3  ;;  %v7258_v22 = vpop.eup %7257  ;;  %7277 = vtanh.f32 %v1135_v17  ;;  %6446 = vmatprep.subr.bf16.mxu1 %v8383_v10  ;;  %v1051_v23 = vpop.f32.mrb[14].mxu0 }
 0x10d   : > { %v7260_v24 = vpop.eup %7259  ;;  %7279 = vtanh.f32 %v906_v18  ;;  %v1052_v25 = vadd.f32 %v1051_v23, %v8341_v1  ;;  %v1282_v26 = vpop.f32.mrb[14].mxu1 }
 0x10e   : > { %v1053_v27 = vpop.f32.mrb[15].mxu0  ;;  %v7262_v28 = vpop.eup %7261  ;;  %7281 = vtanh.f32 %v1137_v21  ;;  %v1283_v29 = vadd.f32 %v1282_v26, %v8341_v1  ;;  %v8395_v32 = vpack.c.bf16 %v7260_v24, %v7252_v11 }
 0x10f   : > { %v1054_v30 = vadd.f32 %v1053_v27, %v8341_v1  ;;  %v1284_v31 = vpop.f32.mrb[15].mxu1  ;;  %v7264_v33 = vpop.eup %7263  ;;  %7283 = vtanh.f32 %v1052_v25  ;;  %6448 = vmatpush1.bf16.msra.mxu1 %v8377_v5  ;;  %v8399_v35 = vpack.c.bf16 %v7262_v28, %v7254_v16 }
 0x110   : > { %v1285_v34 = vadd.f32 %v1284_v31, %v8341_v1  ;;  %v7266_v36 = vpop.eup %7265  ;;  %7285 = vtanh.f32 %v1283_v29  ;;  %v1057_v37 = vpop.f32.mrb[16].mxu0  ;;  %6450 = vmatprep.subr.bf16.mxu1 %v8395_v32  ;;  %v8402_v38 = vpack.c.bf16 %v7264_v33, %v7256_v20 }
 0x111   : > { %v7268_v39 = vpop.eup %7267  ;;  %7287 = vtanh.f32 %v1054_v30  ;;  %v1058_v40 = vadd.f32 %v1057_v37, %v8346_v3  ;;  %v1288_v41 = vpop.f32.mrb[16].mxu1  ;;  %v8405_v43 = vpack.c.bf16 %v7266_v36, %v7258_v22  ;;  %v8447_v22 = vld [vmem:[%s9969_s3 + $0x8] sm:$0xff]  ;;  %v8465_v37 = vld [vmem:[%s9969_s3 + $0x10] sm:$0xff] }
 0x112   : > { %v1059_v42 = vpop.f32.mrb[17].mxu0  ;;  %v7270_v44 = vpop.eup %7269  ;;  %7289 = vtanh.f32 %v1285_v34  ;;  %v1289_v45 = vadd.f32 %v1288_v41, %v8346_v3  ;;  %6478 = vmatprep.subr.bf16.mxu0 %v8402_v38 }
 0x113   : > { %v1060_v46 = vadd.f32 %v1059_v42, %v8346_v3  ;;  %v1290_v47 = vpop.f32.mrb[17].mxu1  ;;  %v7272_v48 = vpop.eup %7271  ;;  %7291 = vtanh.f32 %v1058_v40  ;;  %6452 = vmatpush1.bf16.msra.mxu1 %v8383_v10  ;;  %6480 = vmatpush1.bf16.msra.mxu0 %v8395_v32 }
 0x114   : > { %v1291_v49 = vadd.f32 %v1290_v47, %v8346_v3  ;;  %v7274_v50 = vpop.eup %7273  ;;  %7293 = vtanh.f32 %v1289_v45  ;;  %6454 = vmatprep.subr.bf16.mxu1 %v8402_v38  ;;  %6482 = vmatprep.subr.bf16.mxu0 %v8380_v7  ;;  %v1205_v51 = vpop.f32.mrb[18].mxu0 }
 0x115   : > { %v7276_v52 = vpop.eup %7275  ;;  %7295 = vtanh.f32 %v1060_v46  ;;  %v1206_v53 = vadd.f32 %v1205_v51, %v8341_v1  ;;  %v1436_v54 = vpop.f32.mrb[18].mxu1 }
 0x116   : > { %v1207_v55 = vpop.f32.mrb[19].mxu0  ;;  %v7278_v56 = vpop.eup %7277  ;;  %7297 = vtanh.f32 %v1291_v49  ;;  %v1437_v57 = vadd.f32 %v1436_v54, %v8341_v1  ;;  %v8418_v60 = vpack.c.bf16 %v7276_v52, %v7268_v39  ;;  %v8487_v54 = vld [vmem:[%s9969_s3 + $0x18] sm:$0xff] }
 0x117   : > { %v1208_v58 = vadd.f32 %v1207_v55, %v8341_v1  ;;  %v1438_v59 = vpop.f32.mrb[19].mxu1  ;;  %v7280_v61 = vpop.eup %7279  ;;  %7299 = vtanh.f32 %v1206_v53  ;;  %6456 = vmatpush1.bf16.msra.mxu1 %v8395_v32  ;;  %6484 = vmatpush1.bf16.msra.mxu0 %v8402_v38  ;;  %v8428_v2 = vpack.c.bf16 %v7278_v56, %v7270_v44 }
 0x118   : > { %v1439_v62 = vadd.f32 %v1438_v59, %v8341_v1  ;;  %v7282_v6 = vpop.eup %7281  ;;  %7301 = vtanh.f32 %v1437_v57  ;;  %6458 = vmatprep.subr.bf16.mxu1 %v8383_v10  ;;  %6486 = vmatprep.subr.bf16.mxu0 %v8386_v15  ;;  %v1211_v4 = vpop.f32.mrb[20].mxu0  ;;  %v8432_v8 = vpack.c.bf16 %v7280_v61, %v7272_v48 }
 0x119   : > { %v7284_v9 = vpop.eup %7283  ;;  %7303 = vtanh.f32 %v1208_v58  ;;  %v1212_v11 = vadd.f32 %v1211_v4, %v8346_v3  ;;  %v1442_v12 = vpop.f32.mrb[20].mxu1  ;;  %v8435_v14 = vpack.c.bf16 %v7282_v6, %v7274_v50 }
 0x11a   : > { %v1213_v13 = vpop.f32.mrb[21].mxu0  ;;  %v7286_v16 = vpop.eup %7285  ;;  %7305 = vtanh.f32 %v1439_v62  ;;  %v1443_v17 = vadd.f32 %v1442_v12, %v8346_v3  ;;  %6067 = vmatmul.mubr.msk.f32.vlgmr.msra.gmra.mrb[54].mxu1 %vm2819_vm2, %v8426_v63 }
 0x11b   : > { %v1214_v18 = vadd.f32 %v1213_v13, %v8346_v3  ;;  %v1444_v19 = vpop.f32.mrb[21].mxu1  ;;  %v7288_v20 = vpop.eup %7287  ;;  %7307 = vtanh.f32 %v1212_v11  ;;  %6460 = vmatpush1.bf16.msra.mxu1 %v8377_v5  ;;  %6488 = vmatpush1.bf16.msra.mxu0 %v8380_v7 }
 0x11c   : > { %v1445_v21 = vadd.f32 %v1444_v19, %v8346_v3  ;;  %v7290_v23 = vpop.eup %7289  ;;  %7309 = vtanh.f32 %v1443_v17  ;;  %6462 = vmatprep.subr.bf16.mxu1 %v8395_v32  ;;  %6490 = vmatprep.subr.bf16.mxu0 %v8418_v60  ;;  %v1359_v24 = vpop.f32.mrb[22].mxu0 }
 0x11d   : > { %v7292_v25 = vpop.eup %7291  ;;  %7311 = vtanh.f32 %v1214_v18  ;;  %v1360_v26 = vadd.f32 %v1359_v24, %v8341_v1  ;;  %v1590_v27 = vpop.f32.mrb[22].mxu1  ;;  %2902 = vmatprep.mubr.f32.mxu1 %v7935_v0 }
 0x11e   : > { %v1361_v5 = vpop.f32.mrb[23].mxu0  ;;  %v7294_v28 = vpop.eup %7293  ;;  %7313 = vtanh.f32 %v1445_v21  ;;  %v1591_v29 = vadd.f32 %v1590_v27, %v8341_v1  ;;  %6068 = vmatmul.mubr.msk.f32.gmra.mrb[56].mxu1 %vm2819_vm2, %v8447_v22  ;;  %v8457_v33 = vpack.c.bf16 %v7292_v25, %v7284_v9 }
 0x11f   : > { %v1362_v30 = vadd.f32 %v1361_v5, %v8341_v1  ;;  %v1592_v31 = vpop.f32.mrb[23].mxu1  ;;  %v7296_v34 = vpop.eup %7295  ;;  %7315 = vtanh.f32 %v1360_v26  ;;  %6464 = vmatpush1.bf16.msra.mxu1 %v8383_v10  ;;  %6492 = vmatpush1.bf16.msra.mxu0 %v8386_v15  ;;  %v8467_v39 = vpack.c.bf16 %v7294_v28, %v7286_v16 }
 0x120   : > { %v1593_v36 = vadd.f32 %v1592_v31, %v8341_v1  ;;  %v7298_v40 = vpop.eup %7297  ;;  %7317 = vtanh.f32 %v1591_v29  ;;  %6466 = vmatprep.subr.bf16.mxu1 %v8402_v38  ;;  %6494 = vmatprep.subr.bf16.mxu0 %v8432_v8  ;;  %v1365_v41 = vpop.f32.mrb[24].mxu0  ;;  %v8471_v42 = vpack.c.bf16 %v7296_v34, %v7288_v20 }
 0x121   : > { %v7300_v44 = vpop.eup %7299  ;;  %7319 = vtanh.f32 %v1362_v30  ;;  %v1366_v10 = vadd.f32 %v1365_v41, %v8346_v3  ;;  %v1596_v45 = vpop.f32.mrb[24].mxu1  ;;  %2908 = vmatprep.mubr.f32.mxu1 %v7935_v0  ;;  %v8475_v47 = vpack.c.bf16 %v7298_v40, %v7290_v23 }
 0x122   : > { %v1367_v46 = vpop.f32.mrb[25].mxu0  ;;  %v7302_v48 = vpop.eup %7301  ;;  %7321 = vtanh.f32 %v1593_v36  ;;  %v1597_v49 = vadd.f32 %v1596_v45, %v8346_v3  ;;  %6069 = vmatmul.mubr.msk.f32.gmra.mrb[58].mxu1 %vm2819_vm2, %v8465_v37 }
 0x123   : > { %v1368_v50 = vadd.f32 %v1367_v46, %v8346_v3  ;;  %v1598_v51 = vpop.f32.mrb[25].mxu1  ;;  %v7304_v52 = vpop.eup %7303  ;;  %7323 = vtanh.f32 %v1366_v10  ;;  %6468 = vmatpush1.bf16.msra.mxu1 %v8395_v32  ;;  %6496 = vmatpush1.bf16.msra.mxu0 %v8418_v60 }
 0x124   : > { %v1599_v53 = vadd.f32 %v1598_v51, %v8346_v3  ;;  %v7306_v55 = vpop.eup %7305  ;;  %7325 = vtanh.f32 %v1597_v49  ;;  %6470 = vmatprep.subr.bf16.mxu1 %v8380_v7  ;;  %6518 = vmatprep.subr.bf16.mxu0 %v8432_v8  ;;  %v1513_v56 = vpop.f32.mrb[26].mxu0 }
 0x125   : > { %v7308_v57 = vpop.eup %7307  ;;  %7327 = vtanh.f32 %v1368_v50  ;;  %v1514_v58 = vadd.f32 %v1513_v56, %v8341_v1  ;;  %v1744_v59 = vpop.f32.mrb[26].mxu1  ;;  %2914 = vmatprep.mubr.f32.mxu1 %v7935_v0 }
 0x126   : > { %v1515_v32 = vpop.f32.mrb[27].mxu0  ;;  %v7310_v61 = vpop.eup %7309  ;;  %7329 = vtanh.f32 %v1599_v53  ;;  %v1745_v62 = vadd.f32 %v1744_v59, %v8341_v1  ;;  %6070 = vmatmul.mubr.msk.f32.gmra.mrb[60].mxu1 %vm2819_vm2, %v8487_v54  ;;  %6075 = vmatmul.mubr.msk.f32.vlgmr.msra.gmra.mrb[58].mxu0 %vm2819_vm2, %v8426_v63  ;;  %v8499_v9 = vpack.c.bf16 %v7308_v57, %v7300_v44 }
 0x127   : > { %v1516_v6 = vadd.f32 %v1515_v32, %v8341_v1  ;;  %v1746_v4 = vpop.f32.mrb[27].mxu1  ;;  %v7312_v11 = vpop.eup %7311  ;;  %7331 = vtanh.f32 %v1514_v58  ;;  %6472 = vmatpush1.bf16.msra.mxu1 %v8402_v38  ;;  %6520 = vmatpush1.bf16.msra.mxu0 %v8418_v60  ;;  %v8504_v13 = vpack.c.bf16 %v7310_v61, %v7302_v48 }
 0x128   : > { %v1747_v12 = vadd.f32 %v1746_v4, %v8341_v1  ;;  %v7314_v16 = vpop.eup %7313  ;;  %7333 = vtanh.f32 %v1745_v62  ;;  %6474 = vmatprep.subr.bf16.mxu1 %v8386_v15  ;;  %6522 = vmatprep.subr.bf16.mxu0 %v8399_v35  ;;  %v1519_v17 = vpop.f32.mrb[28].mxu0  ;;  %v8508_v18 = vpack.c.bf16 %v7312_v11, %v7304_v52 }
 0x129   : > { %v7316_v19 = vpop.eup %7315  ;;  %7335 = vtanh.f32 %v1516_v6  ;;  %v1520_v20 = vadd.f32 %v1519_v17, %v8346_v3  ;;  %v1750_v21 = vpop.f32.mrb[28].mxu1  ;;  %3080 = vmatprep.mubr.f32.mxu0 %v7935_v0  ;;  %2985 = vmatprep.mubr.f32.mxu1 %v7935_v0  ;;  %v8513_v23 = vpack.c.bf16 %v7314_v16, %v7306_v55 }
 0x12a   : > { %v1521_v38 = vpop.f32.mrb[29].mxu0  ;;  %v7318_v24 = vpop.eup %7317  ;;  %7337 = vtanh.f32 %v1747_v12  ;;  %v1751_v25 = vadd.f32 %v1750_v21, %v8346_v3  ;;  %6076 = vmatmul.mubr.msk.f32.gmra.mrb[60].mxu0 %vm2819_vm2, %v8447_v22 }
 0x12b   : > { %v1522_v26 = vadd.f32 %v1521_v38, %v8346_v3  ;;  %v1752_v27 = vpop.f32.mrb[29].mxu1  ;;  %v7320_v5 = vpop.eup %7319  ;;  %7339 = vtanh.f32 %v1520_v20  ;;  %6476 = vmatpush1.bf16.msra.mxu1 %v8380_v7  ;;  %6524 = vmatpush1.bf16.msra.mxu0 %v8432_v8 }
 0x12c   : > { %v1753_v28 = vadd.f32 %v1752_v27, %v8346_v3  ;;  %v7322_v29 = vpop.eup %7321  ;;  %7341 = vtanh.f32 %v1751_v25  ;;  %6498 = vmatprep.subr.bf16.mxu1 %v8386_v15  ;;  %6526 = vmatprep.subr.bf16.mxu0 %v8405_v43  ;;  %v1667_v30 = vpop.f32.mrb[30].mxu0 }
 0x12d   : > { %v7324_v31 = vpop.eup %7323  ;;  %7343 = vtanh.f32 %v1522_v26  ;;  %v1668_v34 = vadd.f32 %v1667_v30, %v8341_v1  ;;  %v1898_v36 = vpop.f32.mrb[30].mxu1  ;;  %3086 = vmatprep.mubr.f32.mxu0 %v7935_v0 }
 0x12e   : > { %v1669_v40 = vpop.f32.mrb[31].mxu0  ;;  %v7326_v41 = vpop.eup %7325  ;;  %7345 = vtanh.f32 %v1753_v28  ;;  %v1899_v44 = vadd.f32 %v1898_v36, %v8341_v1  ;;  %6071 = vmatmul.mubr.msk.f32.vlgmr.msra.gmra.mrb[62].mxu1 %vm2819_vm2, %v8426_v63  ;;  %6077 = vmatmul.mubr.msk.f32.gmra.mrb[62].mxu0 %vm2819_vm2, %v8465_v37  ;;  %v8532_v46 = vpack.c.bf16 %v7324_v31, %v7316_v19 }
 0x12f   : > { %v1670_v10 = vadd.f32 %v1669_v40, %v8341_v1  ;;  %v1900_v45 = vpop.f32.mrb[31].mxu1  ;;  %v7328_v48 = vpop.eup %7327  ;;  %7347 = vtanh.f32 %v1668_v34  ;;  %6500 = vmatpush1.bf16.msra.mxu1 %v8380_v7  ;;  %6528 = vmatpush1.bf16.msra.mxu0 %v8399_v35  ;;  %v8537_v50 = vpack.c.bf16 %v7326_v41, %v7318_v24 }
 0x130   : > { %v1901_v49 = vadd.f32 %v1900_v45, %v8341_v1  ;;  %v7330_v51 = vpop.eup %7329  ;;  %7349 = vtanh.f32 %v1899_v44  ;;  %6502 = vmatprep.subr.bf16.mxu1 %v8418_v60  ;;  %6530 = vmatprep.subr.bf16.mxu0 %v8457_v33  ;;  %v1673_v52 = vpop.f32.mrb[32].mxu0  ;;  %v8541_v53 = vpack.c.bf16 %v7328_v48, %v7320_v5 }
 0x131   : > { %v7332_v55 = vpop.eup %7331  ;;  %7351 = vtanh.f32 %v1670_v10  ;;  %v1674_v56 = vadd.f32 %v1673_v52, %v8346_v3  ;;  %v1904_v57 = vpop.f32.mrb[32].mxu1  ;;  %2991 = vmatprep.mubr.f32.mxu1 %v7935_v0  ;;  %3092 = vmatprep.mubr.f32.mxu0 %v7935_v0  ;;  %v8546_v58 = vpack.c.bf16 %v7330_v51, %v7322_v29 }
 0x132   : > { %v1675_v7 = vpop.f32.mrb[33].mxu0  ;;  %v7334_v59 = vpop.eup %7333  ;;  %7353 = vtanh.f32 %v1901_v49  ;;  %v1905_v32 = vadd.f32 %v1904_v57, %v8346_v3  ;;  %6072 = vmatmul.mubr.msk.f32.gmra.mrb[64].mxu1 %vm2819_vm2, %v8447_v22  ;;  %6078 = vmatmul.mubr.msk.f32.gmra.mrb[64].mxu0 %vm2819_vm2, %v8487_v54 }
 0x133   : > { %v1676_v61 = vadd.f32 %v1675_v7, %v8346_v3  ;;  %v1906_v62 = vpop.f32.mrb[33].mxu1  ;;  %v7336_v6 = vpop.eup %7335  ;;  %7355 = vtanh.f32 %v1674_v56  ;;  %6504 = vmatpush1.bf16.msra.mxu1 %v8386_v15  ;;  %6532 = vmatpush1.bf16.msra.mxu0 %v8405_v43 }
 0x134   : > { %v1907_v4 = vadd.f32 %v1906_v62, %v8346_v3  ;;  %v7338_v11 = vpop.eup %7337  ;;  %7357 = vtanh.f32 %v1905_v32  ;;  %6506 = vmatprep.subr.bf16.mxu1 %v8432_v8  ;;  %6534 = vmatprep.subr.bf16.mxu0 %v8471_v42  ;;  %v1821_v12 = vpop.f32.mrb[34].mxu0 }
 0x135   : > { %v7340_v16 = vpop.eup %7339  ;;  %7359 = vtanh.f32 %v1676_v61  ;;  %v1822_v17 = vadd.f32 %v1821_v12, %v8341_v1  ;;  %v2052_v19 = vpop.f32.mrb[34].mxu1  ;;  %2997 = vmatprep.mubr.f32.mxu1 %v7935_v0  ;;  %3252 = vmatprep.mubr.f32.mxu0 %v7935_v0 }
 0x136   : > { %v1823_v20 = vpop.f32.mrb[35].mxu0  ;;  %v7342_v15 = vpop.eup %7341  ;;  %7361 = vtanh.f32 %v1907_v4  ;;  %v2053_v21 = vadd.f32 %v2052_v19, %v8341_v1  ;;  %6073 = vmatmul.mubr.msk.f32.gmra.mrb[66].mxu1 %vm2819_vm2, %v8465_v37  ;;  %v8566_v25 = vpack.c.bf16 %v7340_v16, %v7332_v55 }
 0x137   : > { %v1824_v38 = vadd.f32 %v1823_v20, %v8341_v1  ;;  %v2054_v24 = vpop.f32.mrb[35].mxu1  ;;  %v7344_v26 = vpop.eup %7343  ;;  %7363 = vtanh.f32 %v1822_v17  ;;  %6508 = vmatpush1.bf16.msra.mxu1 %v8418_v60  ;;  %6536 = vmatpush1.bf16.msra.mxu0 %v8457_v33  ;;  %v8571_v5 = vpack.c.bf16 %v7342_v15, %v7334_v59 }
 0x138   : > { %v2055_v27 = vadd.f32 %v2054_v24, %v8341_v1  ;;  %v7346_v28 = vpop.eup %7345  ;;  %7365 = vtanh.f32 %v2053_v21  ;;  %6510 = vmatprep.subr.bf16.mxu1 %v8399_v35  ;;  %6558 = vmatprep.subr.bf16.mxu0 %v8471_v42  ;;  %v1827_v29 = vpop.f32.mrb[36].mxu0  ;;  %v8575_v30 = vpack.c.bf16 %v7344_v26, %v7336_v6 }
 0x139   : > { %v7348_v31 = vpop.eup %7347  ;;  %7367 = vtanh.f32 %v1824_v38  ;;  %v1828_v34 = vadd.f32 %v1827_v29, %v8346_v3  ;;  %v2058_v36 = vpop.f32.mrb[36].mxu1  ;;  %3003 = vmatprep.mubr.f32.mxu1 %v7935_v0  ;;  %v8579_v40 = vpack.c.bf16 %v7346_v28, %v7338_v11 }
 0x13a   : > { %v1829_v60 = vpop.f32.mrb[37].mxu0  ;;  %v7350_v41 = vpop.eup %7349  ;;  %7369 = vtanh.f32 %v2055_v27  ;;  %v2059_v44 = vadd.f32 %v2058_v36, %v8346_v3  ;;  %6074 = vmatmul.mubr.msk.f32.gmra.mrb[68].mxu1 %vm2819_vm2, %v8487_v54  ;;  %6083 = vmatmul.mubr.msk.f32.vlgmr.msra.gmra.mrb[66].mxu0 %vm2819_vm2, %v8426_v63 }
 0x13b   : > { %v1830_v10 = vadd.f32 %v1829_v60, %v8346_v3  ;;  %v2060_v45 = vpop.f32.mrb[37].mxu1  ;;  %v7352_v48 = vpop.eup %7351  ;;  %7371 = vtanh.f32 %v1828_v34  ;;  %6512 = vmatpush1.bf16.msra.mxu1 %v8432_v8  ;;  %6560 = vmatpush1.bf16.msra.mxu0 %v8457_v33 }
 0x13c   : > { %v2061_v49 = vadd.f32 %v2060_v45, %v8346_v3  ;;  %v7354_v51 = vpop.eup %7353  ;;  %7373 = vtanh.f32 %v2059_v44  ;;  %6514 = vmatprep.subr.bf16.mxu1 %v8405_v43  ;;  %6562 = vmatprep.subr.bf16.mxu0 %v8428_v2  ;;  %v1975_v52 = vpop.f32.mrb[38].mxu0 }
 0x13d   : > { %v7356_v55 = vpop.eup %7355  ;;  %7375 = vtanh.f32 %v1830_v10  ;;  %v1976_v56 = vadd.f32 %v1975_v52, %v8341_v1  ;;  %v2206_v57 = vpop.f32.mrb[38].mxu1  ;;  %3258 = vmatprep.mubr.f32.mxu0 %v7935_v0  ;;  %3163 = vmatprep.mubr.f32.mxu1 %v7935_v0 }
 0x13e   : > { %v1977_v7 = vpop.f32.mrb[39].mxu0  ;;  %v7358_v8 = vpop.eup %7357  ;;  %7377 = vtanh.f32 %v2061_v49  ;;  %v2207_v59 = vadd.f32 %v2206_v57, %v8341_v1  ;;  %6084 = vmatmul.mubr.msk.f32.gmra.mrb[68].mxu0 %vm2819_vm2, %v8447_v22  ;;  %v8599_v62 = vpack.c.bf16 %v7356_v55, %v7348_v31 }
 0x13f   : > { %v1978_v32 = vadd.f32 %v1977_v7, %v8341_v1  ;;  %v2208_v61 = vpop.f32.mrb[39].mxu1  ;;  %v7360_v6 = vpop.eup %7359  ;;  %7379 = vtanh.f32 %v1976_v56  ;;  %6516 = vmatpush1.bf16.msra.mxu1 %v8399_v35  ;;  %6564 = vmatpush1.bf16.msra.mxu0 %v8471_v42  ;;  %v8604_v11 = vpack.c.bf16 %v7358_v8, %v7350_v41 }
 0x140   : > { %v2209_v4 = vadd.f32 %v2208_v61, %v8341_v1  ;;  %v7362_v12 = vpop.eup %7361  ;;  %7381 = vtanh.f32 %v2207_v59  ;;  %6538 = vmatprep.subr.bf16.mxu1 %v8405_v43  ;;  %6566 = vmatprep.subr.bf16.mxu0 %v8435_v14  ;;  %v1981_v16 = vpop.f32.mrb[40].mxu0  ;;  %v8608_v17 = vpack.c.bf16 %v7360_v6, %v7352_v48 }
 0x141   : > { %v7364_v19 = vpop.eup %7363  ;;  %7383 = vtanh.f32 %v1978_v32  ;;  %v1982_v20 = vadd.f32 %v1981_v16, %v8346_v3  ;;  %v2212_v15 = vpop.f32.mrb[40].mxu1  ;;  %3264 = vmatprep.mubr.f32.mxu0 %v7935_v0  ;;  %v8612_v38 = vpack.c.bf16 %v7362_v12, %v7354_v51 }
 0x142   : > { %v1983_v21 = vpop.f32.mrb[41].mxu0  ;;  %v7366_v24 = vpop.eup %7365  ;;  %7385 = vtanh.f32 %v2209_v4  ;;  %v2213_v26 = vadd.f32 %v2212_v15, %v8346_v3  ;;  %6079 = vmatmul.mubr.msk.f32.vlgmr.msra.gmra.mrb[70].mxu1 %vm2819_vm2, %v8426_v63  ;;  %6085 = vmatmul.mubr.msk.f32.gmra.mrb[70].mxu0 %vm2819_vm2, %v8465_v37 }
 0x143   : > { %v1984_v27 = vadd.f32 %v1983_v21, %v8346_v3  ;;  %v2214_v28 = vpop.f32.mrb[41].mxu1  ;;  %v7368_v29 = vpop.eup %7367  ;;  %7387 = vtanh.f32 %v1982_v20  ;;  %6540 = vmatpush1.bf16.msra.mxu1 %v8399_v35  ;;  %6568 = vmatpush1.bf16.msra.mxu0 %v8428_v2 }
 0x144   : > { %v2215_v31 = vadd.f32 %v2214_v28, %v8346_v3  ;;  %v7370_v34 = vpop.eup %7369  ;;  %7389 = vtanh.f32 %v2213_v26  ;;  %6542 = vmatprep.subr.bf16.mxu1 %v8457_v33  ;;  %6570 = vmatprep.subr.bf16.mxu0 %v8499_v9  ;;  %v2129_v36 = vpop.f32.mrb[42].mxu0 }
 0x145   : > { %v7372_v60 = vpop.eup %7371  ;;  %7391 = vtanh.f32 %v1984_v27  ;;  %v2130_v41 = vadd.f32 %v2129_v36, %v8341_v1  ;;  %v2360_v44 = vpop.f32.mrb[42].mxu1  ;;  %3169 = vmatprep.mubr.f32.mxu1 %v7935_v0  ;;  %3270 = vmatprep.mubr.f32.mxu0 %v7935_v0 }
 0x146   : > { %v2131_v10 = vpop.f32.mrb[43].mxu0  ;;  %v7374_v35 = vpop.eup %7373  ;;  %7393 = vtanh.f32 %v2215_v31  ;;  %v2361_v45 = vadd.f32 %v2360_v44, %v8341_v1  ;;  %6080 = vmatmul.mubr.msk.f32.gmra.mrb[72].mxu1 %vm2819_vm2, %v8447_v22  ;;  %6086 = vmatmul.mubr.msk.f32.gmra.mrb[72].mxu0 %vm2819_vm2, %v8487_v54  ;;  %v8634_v51 = vpack.c.bf16 %v7372_v60, %v7364_v19 }
 0x147   : > { %v2132_v48 = vadd.f32 %v2131_v10, %v8341_v1  ;;  %v2362_v49 = vpop.f32.mrb[43].mxu1  ;;  %v7376_v52 = vpop.eup %7375  ;;  %7395 = vtanh.f32 %v2130_v41  ;;  %6544 = vmatpush1.bf16.msra.mxu1 %v8405_v43  ;;  %6572 = vmatpush1.bf16.msra.mxu0 %v8435_v14  ;;  %v8639_v56 = vpack.c.bf16 %v7374_v35, %v7366_v24 }
 0x148   : > { %v2363_v55 = vadd.f32 %v2362_v49, %v8341_v1  ;;  %v7378_v57 = vpop.eup %7377  ;;  %7397 = vtanh.f32 %v2361_v45  ;;  %6546 = vmatprep.subr.bf16.mxu1 %v8471_v42  ;;  %6574 = vmatprep.subr.bf16.mxu0 %v8508_v18  ;;  %v2135_v7 = vpop.f32.mrb[44].mxu0  ;;  %v8643_v8 = vpack.c.bf16 %v7376_v52, %v7368_v29 }
 0x149   : > { %v7380_v59 = vpop.eup %7379  ;;  %7399 = vtanh.f32 %v2132_v48  ;;  %v2136_v32 = vadd.f32 %v2135_v7, %v8346_v3  ;;  %v2366_v61 = vpop.f32.mrb[44].mxu1  ;;  %3175 = vmatprep.mubr.f32.mxu1 %v7935_v0  ;;  %3430 = vmatprep.mubr.f32.mxu0 %v7935_v0  ;;  %v8648_v6 = vpack.c.bf16 %v7378_v57, %v7370_v34 }
 0x14a   : > { %v2137_v43 = vpop.f32.mrb[45].mxu0  ;;  %v7382_v4 = vpop.eup %7381  ;;  %7401 = vtanh.f32 %v2363_v55  ;;  %v2367_v12 = vadd.f32 %v2366_v61, %v8346_v3  ;;  %6081 = vmatmul.mubr.msk.f32.gmra.mrb[74].mxu1 %vm2819_vm2, %v8465_v37 }
 0x14b   : > { %v2138_v16 = vadd.f32 %v2137_v43, %v8346_v3  ;;  %v2368_v19 = vpop.f32.mrb[45].mxu1  ;;  %v7384_v20 = vpop.eup %7383  ;;  %7403 = vtanh.f32 %v2136_v32  ;;  %6548 = vmatpush1.bf16.msra.mxu1 %v8457_v33  ;;  %6576 = vmatpush1.bf16.msra.mxu0 %v8499_v9 }
 0x14c   : > { %v2369_v15 = vadd.f32 %v2368_v19, %v8346_v3  ;;  %v7386_v21 = vpop.eup %7385  ;;  %7405 = vtanh.f32 %v2367_v12  ;;  %6550 = vmatprep.subr.bf16.mxu1 %v8428_v2  ;;  %6598 = vmatprep.subr.bf16.mxu0 %v8508_v18  ;;  %v2283_v24 = vpop.f32.mrb[46].mxu0 }
 0x14d   : > { %v7388_v26 = vpop.eup %7387  ;;  %7407 = vtanh.f32 %v2138_v16  ;;  %v2284_v27 = vadd.f32 %v2283_v24, %v8341_v1  ;;  %v2514_v28 = vpop.f32.mrb[46].mxu1  ;;  %3181 = vmatprep.mubr.f32.mxu1 %v7935_v0 }
 0x14e   : > { %v2285_v29 = vpop.f32.mrb[47].mxu0  ;;  %v7390_v31 = vpop.eup %7389  ;;  %7409 = vtanh.f32 %v2369_v15  ;;  %v2515_v33 = vadd.f32 %v2514_v28, %v8341_v1  ;;  %6082 = vmatmul.mubr.msk.f32.gmra.mrb[76].mxu1 %vm2819_vm2, %v8487_v54  ;;  %6091 = vmatmul.mubr.msk.f32.vlgmr.msra.gmra.mrb[74].mxu0 %vm2819_vm2, %v8426_v63  ;;  %v8667_v60 = vpack.c.bf16 %v7388_v26, %v7380_v59 }
 0x14f   : > { %v2286_v34 = vadd.f32 %v2285_v29, %v8341_v1  ;;  %v2516_v36 = vpop.f32.mrb[47].mxu1  ;;  %v7392_v41 = vpop.eup %7391  ;;  %7411 = vtanh.f32 %v2284_v27  ;;  %6552 = vmatpush1.bf16.msra.mxu1 %v8471_v42  ;;  %6600 = vmatpush1.bf16.msra.mxu0 %v8499_v9  ;;  %v8672_v10 = vpack.c.bf16 %v7390_v31, %v7382_v4 }
 0x150   : > { %v2517_v44 = vadd.f32 %v2516_v36, %v8341_v1  ;;  %v7394_v35 = vpop.eup %7393  ;;  %7413 = vtanh.f32 %v2515_v33  ;;  %6554 = vmatprep.subr.bf16.mxu1 %v8435_v14  ;;  %6602 = vmatprep.subr.bf16.mxu0 %v8467_v39  ;;  %v2289_v45 = vpop.f32.mrb[48].mxu0  ;;  %v8676_v48 = vpack.c.bf16 %v7392_v41, %v7384_v20 }
 0x151   : > { %v7396_v49 = vpop.eup %7395  ;;  %7415 = vtanh.f32 %v2286_v34  ;;  %v2290_v52 = vadd.f32 %v2289_v45, %v8346_v3  ;;  %v2520_v55 = vpop.f32.mrb[48].mxu1  ;;  %3436 = vmatprep.mubr.f32.mxu0 %v7935_v0  ;;  %3341 = vmatprep.mubr.f32.mxu1 %v7935_v0  ;;  %v8681_v57 = vpack.c.bf16 %v7394_v35, %v7386_v21 }
 0x152   : > { %v2291_v42 = vpop.f32.mrb[49].mxu0  ;;  %v7398_v7 = vpop.eup %7397  ;;  %7417 = vtanh.f32 %v2517_v44  ;;  %v2521_v59 = vadd.f32 %v2520_v55, %v8346_v3  ;;  %6092 = vmatmul.mubr.msk.f32.gmra.mrb[76].mxu0 %vm2819_vm2, %v8447_v22 }
 0x153   : > { %v2292_v32 = vadd.f32 %v2291_v42, %v8346_v3  ;;  %v2522_v61 = vpop.f32.mrb[49].mxu1  ;;  %v7400_v43 = vpop.eup %7399  ;;  %7419 = vtanh.f32 %v2290_v52  ;;  %6556 = vmatpush1.bf16.msra.mxu1 %v8428_v2  ;;  %6604 = vmatpush1.bf16.msra.mxu0 %v8508_v18 }
 0x154   : > { %v2523_v4 = vadd.f32 %v2522_v61, %v8346_v3  ;;  %v7402_v12 = vpop.eup %7401  ;;  %7421 = vtanh.f32 %v2521_v59  ;;  %6578 = vmatprep.subr.bf16.mxu1 %v8435_v14  ;;  %6606 = vmatprep.subr.bf16.mxu0 %v8475_v47  ;;  %v2437_v16 = vpop.f32.mrb[50].mxu0 }
 0x155   : > { %v7404_v19 = vpop.eup %7403  ;;  %7423 = vtanh.f32 %v2292_v32  ;;  %v2438_v20 = vadd.f32 %v2437_v16, %v8341_v1  ;;  %v2668_v15 = vpop.f32.mrb[50].mxu1  ;;  %3442 = vmatprep.mubr.f32.mxu0 %v7935_v0 }
 0x156   : > { %v2439_v21 = vpop.f32.mrb[51].mxu0  ;;  %v7406_v24 = vpop.eup %7405  ;;  %7425 = vtanh.f32 %v2523_v4  ;;  %v2669_v26 = vadd.f32 %v2668_v15, %v8341_v1  ;;  %6087 = vmatmul.mubr.msk.f32.vlgmr.msra.gmra.mrb[78].mxu1 %vm2819_vm2, %v8426_v63  ;;  %6093 = vmatmul.mubr.msk.f32.gmra.mrb[78].mxu0 %vm2819_vm2, %v8465_v37  ;;  %v8700_v29 = vpack.c.bf16 %v7404_v19, %v7396_v49 }
 0x157   : > { %v2440_v27 = vadd.f32 %v2439_v21, %v8341_v1  ;;  %v2670_v28 = vpop.f32.mrb[51].mxu1  ;;  %v7408_v31 = vpop.eup %7407  ;;  %7427 = vtanh.f32 %v2438_v20  ;;  %6580 = vmatpush1.bf16.msra.mxu1 %v8428_v2  ;;  %6608 = vmatpush1.bf16.msra.mxu0 %v8467_v39  ;;  %v8705_v34 = vpack.c.bf16 %v7406_v24, %v7398_v7 }
 0x158   : > { %v2671_v33 = vadd.f32 %v2670_v28, %v8341_v1  ;;  %v7410_v36 = vpop.eup %7409  ;;  %7429 = vtanh.f32 %v2669_v26  ;;  %6582 = vmatprep.subr.bf16.mxu1 %v8499_v9  ;;  %6610 = vmatprep.subr.bf16.mxu0 %v8532_v46  ;;  %v2443_v41 = vpop.f32.mrb[52].mxu0  ;;  %v8709_v44 = vpack.c.bf16 %v7408_v31, %v7400_v43 }
 0x159   : > { %v7412_v35 = vpop.eup %7411  ;;  %7431 = vtanh.f32 %v2440_v27  ;;  %v2444_v45 = vadd.f32 %v2443_v41, %v8346_v3  ;;  %v2674_v49 = vpop.f32.mrb[52].mxu1  ;;  %3347 = vmatprep.mubr.f32.mxu1 %v7935_v0  ;;  %3448 = vmatprep.mubr.f32.mxu0 %v7935_v0  ;;  %v8714_v52 = vpack.c.bf16 %v7410_v36, %v7402_v12 }
 0x15a   : > { %v2445_v2 = vpop.f32.mrb[53].mxu0  ;;  %v7414_v55 = vpop.eup %7413  ;;  %7433 = vtanh.f32 %v2671_v33  ;;  %v2675_v42 = vadd.f32 %v2674_v49, %v8346_v3  ;;  %6088 = vmatmul.mubr.msk.f32.gmra.mrb[80].mxu1 %vm2819_vm2, %v8447_v22  ;;  %6094 = vmatmul.mubr.msk.f32.gmra.mrb[80].mxu0 %vm2819_vm2, %v8487_v54 }
 0x15b   : > { %v2446_v7 = vadd.f32 %v2445_v2, %v8346_v3  ;;  %v2676_v59 = vpop.f32.mrb[53].mxu1  ;;  %v7416_v32 = vpop.eup %7415  ;;  %7435 = vtanh.f32 %v2444_v45  ;;  %6584 = vmatpush1.bf16.msra.mxu1 %v8435_v14  ;;  %6612 = vmatpush1.bf16.msra.mxu0 %v8475_v47 }
 0x15c   : > { %v2677_v61 = vadd.f32 %v2676_v59, %v8346_v3  ;;  %v7418_v43 = vpop.eup %7417  ;;  %7437 = vtanh.f32 %v2675_v42  ;;  %6586 = vmatprep.subr.bf16.mxu1 %v8508_v18  ;;  %6614 = vmatprep.subr.bf16.mxu0 %v8541_v53  ;;  %v2591_v4 = vpop.f32.mrb[54].mxu0 }
 0x15d   : > { %v7420_v12 = vpop.eup %7419  ;;  %7439 = vtanh.f32 %v2446_v7  ;;  %v2592_v16 = vadd.f32 %v2591_v4, %v8341_v1  ;;  %3353 = vmatprep.mubr.f32.mxu1 %v7935_v0  ;;  %v2593_v19 = vpop.f32.mrb[55].mxu0  ;;  %3608 = vmatprep.mubr.f32.mxu0 %v7935_v0 }
 0x15e   : > { %v7422_v20 = vpop.eup %7421  ;;  %7441 = vtanh.f32 %v2677_v61  ;;  %v2594_v14 = vadd.f32 %v2593_v19, %v8341_v1  ;;  %6089 = vmatmul.mubr.msk.f32.gmra.mrb[82].mxu1 %vm2819_vm2, %v8465_v37  ;;  %v8733_v15 = vpack.c.bf16 %v7420_v12, %v7412_v35 }
 0x15f   : > { %v7424_v21 = vpop.eup %7423  ;;  %6588 = vmatpush1.bf16.msra.mxu1 %v8499_v9  ;;  %6616 = vmatpush1.bf16.msra.mxu0 %v8532_v46  ;;  %v8737_v24 = vpack.c.bf16 %v7422_v20, %v7414_v55  ;;  %7443 = vtanh.f32 %v2592_v16 }
 0x160   : > { %v7426_v26 = vpop.eup %7425  ;;  %6590 = vmatprep.subr.bf16.mxu1 %v8467_v39  ;;  %6638 = vmatprep.subr.bf16.mxu0 %v8541_v53  ;;  %v2597_v27 = vpop.f32.mrb[56].mxu0  ;;  %v8741_v28 = vpack.c.bf16 %v7424_v21, %v7416_v32  ;;  %7445 = vtanh.f32 %v2594_v14 }
 0x161   : > { %v7428_v1 = vpop.eup %7427  ;;  %v2598_v31 = vadd.f32 %v2597_v27, %v8346_v3  ;;  %3359 = vmatprep.mubr.f32.mxu1 %v7935_v0  ;;  %v2599_v33 = vpop.f32.mrb[57].mxu0  ;;  %v8745_v9 = vpack.c.bf16 %v7426_v26, %v7418_v43 }
 0x162   : > { %v7430_v36 = vpop.eup %7429  ;;  %v2600_v41 = vadd.f32 %v2599_v33, %v8346_v3  ;;  %6090 = vmatmul.mubr.msk.f32.gmra.mrb[84].mxu1 %vm2819_vm2, %v8487_v54  ;;  %6099 = vmatmul.mubr.msk.f32.vlgmr.msra.gmra.mrb[82].mxu0 %vm2819_vm2, %v8426_v63 }
 0x163   : > { %v7432_v35 = vpop.eup %7431  ;;  %7447 = vtanh.f32 %v2598_v31  ;;  %6592 = vmatpush1.bf16.msra.mxu1 %v8508_v18  ;;  %6640 = vmatpush1.bf16.msra.mxu0 %v8532_v46 }
 0x164   : > { %v8754_v45 = vpop.eup %7433  ;;  %7449 = vtanh.f32 %v2600_v41  ;;  %6594 = vmatprep.subr.bf16.mxu1 %v8475_v47  ;;  %6642 = vmatprep.subr.bf16.mxu0 %v8504_v13 }
 0x165   : > { %v7436_v3 = vpop.eup %7435  ;;  %3614 = vmatprep.mubr.f32.mxu0 %v7935_v0  ;;  %3519 = vmatprep.mubr.f32.mxu1 %v7935_v0 }
 0x166   : > { %v7438_v49 = vpop.eup %7437  ;;  %6100 = vmatmul.mubr.msk.f32.gmra.mrb[84].mxu0 %vm2819_vm2, %v8447_v22  ;;  %v8762_v2 = vpack.c.bf16 %v7436_v3, %v7428_v1 }
 0x167   : > { %v7440_v18 = vpop.eup %7439  ;;  %6596 = vmatpush1.bf16.msra.mxu1 %v8467_v39  ;;  %6644 = vmatpush1.bf16.msra.mxu0 %v8541_v53  ;;  %v8766_v55 = vpack.c.bf16 %v7438_v49, %v7430_v36 }
 0x168   : > { %v8768_v42 = vpop.eup %7441  ;;  %6618 = vmatprep.subr.bf16.mxu1 %v8475_v47  ;;  %6646 = vmatprep.subr.bf16.mxu0 %v8513_v23  ;;  %v8772_v7 = vpack.c.bf16 %v7440_v18, %v7432_v35 }
 0x169   : > { %3620 = vmatprep.mubr.f32.mxu0 %v7935_v0  ;;  %v6953_v59 = vpack.c.bf16 %v8768_v42, %v8754_v45  ;;  %v7444_v32 = vpop.eup %7443 }
 0x16a   : > { %6095 = vmatmul.mubr.msk.f32.vlgmr.msra.gmra.mrb[86].mxu1 %vm2819_vm2, %v8426_v63  ;;  %6101 = vmatmul.mubr.msk.f32.gmra.mrb[86].mxu0 %vm2819_vm2, %v8465_v37  ;;  %v7446_v61 = vpop.eup %7445 }
 0x16b   : > { %6620 = vmatpush1.bf16.msra.mxu1 %v8467_v39  ;;  %6648 = vmatpush1.bf16.msra.mxu0 %v8504_v13 }
 0x16c   : > { %6622 = vmatprep.subr.bf16.mxu1 %v8532_v46  ;;  %6650 = vmatprep.subr.bf16.mxu0 %v8566_v25 }
 0x16d   : > { %v7448_v43 = vpop.eup %7447  ;;  %3525 = vmatprep.mubr.f32.mxu1 %v7935_v0  ;;  %3626 = vmatprep.mubr.f32.mxu0 %v7935_v0 }
 0x16e   : > { %v7450_v4 = vpop.eup %7449  ;;  %6096 = vmatmul.mubr.msk.f32.gmra.mrb[88].mxu1 %vm2819_vm2, %v8447_v22  ;;  %6102 = vmatmul.mubr.msk.f32.gmra.mrb[88].mxu0 %vm2819_vm2, %v8487_v54  ;;  %v8791_v63 = vpack.c.bf16 %v7448_v43, %v7444_v32 }
 0x16f   : > { %6624 = vmatpush1.bf16.msra.mxu1 %v8475_v47  ;;  %6652 = vmatpush1.bf16.msra.mxu0 %v8513_v23  ;;  %v8795_v39 = vpack.c.bf16 %v7450_v4, %v7446_v61  ;;  %v8813_v47 = vld [vmem:[%s9969_s3] sm:$0xff] }
 0x170   : > { %6626 = vmatprep.subr.bf16.mxu1 %v8541_v53  ;;  %6654 = vmatprep.subr.bf16.mxu0 %v8575_v30 }
 0x171   : > { %3531 = vmatprep.mubr.f32.mxu1 %v7935_v0  ;;  %3786 = vmatprep.mubr.f32.mxu0 %v7935_v0 }
 0x172   : > { %6097 = vmatmul.mubr.msk.f32.gmra.mrb[90].mxu1 %vm2819_vm2, %v8465_v37 }
 0x173   : > { %6628 = vmatpush1.bf16.msra.mxu1 %v8532_v46  ;;  %6656 = vmatpush1.bf16.msra.mxu0 %v8566_v25 }
 0x174   : > { %6630 = vmatprep.subr.bf16.mxu1 %v8504_v13  ;;  %6678 = vmatprep.subr.bf16.mxu0 %v8575_v30 }
 0x175   : > { %3537 = vmatprep.mubr.f32.mxu1 %v7935_v0 }
 0x176   : > { %6098 = vmatmul.mubr.msk.f32.gmra.mrb[92].mxu1 %vm2819_vm2, %v8487_v54  ;;  %6107 = vmatmul.mubr.msk.f32.vlgmr.msra.gmra.mrb[90].mxu0 %vm2819_vm2, %v8813_v47 }
 0x177   : > { %6632 = vmatpush1.bf16.msra.mxu1 %v8541_v53  ;;  %6680 = vmatpush1.bf16.msra.mxu0 %v8566_v25 }
 0x178   : > { %6634 = vmatprep.subr.bf16.mxu1 %v8513_v23  ;;  %6682 = vmatprep.subr.bf16.mxu0 %v8537_v50 }
 0x179   : > { %3792 = vmatprep.mubr.f32.mxu0 %v7935_v0  ;;  %3697 = vmatprep.mubr.f32.mxu1 %v7935_v0 }
 0x17a   : > { %6108 = vmatmul.mubr.msk.f32.gmra.mrb[92].mxu0 %vm2819_vm2, %v8447_v22  ;;  %v8843_v22 = vld [vmem:[%s9969_s3 + $0x8] sm:$0xff] }
 0x17b   : > { %6636 = vmatpush1.bf16.msra.mxu1 %v8504_v13  ;;  %6684 = vmatpush1.bf16.msra.mxu0 %v8575_v30 }
 0x17c   : > { %6658 = vmatprep.subr.bf16.mxu1 %v8513_v23  ;;  %6686 = vmatprep.subr.bf16.mxu0 %v8546_v58 }
 0x17d   : > { %3798 = vmatprep.mubr.f32.mxu0 %v7935_v0 }
 0x17e   : > { %6103 = vmatmul.mubr.msk.f32.vlgmr.msra.gmra.mrb[94].mxu1 %vm2819_vm2, %v8813_v47  ;;  %6109 = vmatmul.mubr.msk.f32.gmra.mrb[94].mxu0 %vm2819_vm2, %v8465_v37 }
 0x17f   : > { %6660 = vmatpush1.bf16.msra.mxu1 %v8504_v13  ;;  %6688 = vmatpush1.bf16.msra.mxu0 %v8537_v50  ;;  %v9084_v13 = vpop.permute.xlu1 %2801 }
 0x180   : > { %6662 = vmatprep.subr.bf16.mxu1 %v8566_v25  ;;  %6690 = vmatprep.subr.bf16.mxu0 %v8599_v62 }
 0x181   : > { %3703 = vmatprep.mubr.f32.mxu1 %v7935_v0  ;;  %3804 = vmatprep.mubr.f32.mxu0 %v7935_v0 }
 0x182   : > { %6104 = vmatmul.mubr.msk.f32.gmra.mrb[96].mxu1 %vm2819_vm2, %v8843_v22  ;;  %6110 = vmatmul.mubr.msk.f32.gmra.mrb[96].mxu0 %vm2819_vm2, %v8487_v54 }
 0x183   : > { %6664 = vmatpush1.bf16.msra.mxu1 %v8513_v23  ;;  %6692 = vmatpush1.bf16.msra.mxu0 %v8546_v58 }
 0x184   : > { %6666 = vmatprep.subr.bf16.mxu1 %v8575_v30  ;;  %6694 = vmatprep.subr.bf16.mxu0 %v8608_v17 }
 0x185   : > { %3709 = vmatprep.mubr.f32.mxu1 %v7935_v0  ;;  %3964 = vmatprep.mubr.f32.mxu0 %v7935_v0 }
 0x186   : > { %6105 = vmatmul.mubr.msk.f32.gmra.mrb[98].mxu1 %vm2819_vm2, %v8465_v37  ;;  %v8884_v37 = vld [vmem:[%s9969_s3 + $0x10] sm:$0xff] }
 0x187   : > { %6668 = vmatpush1.bf16.msra.mxu1 %v8566_v25  ;;  %6696 = vmatpush1.bf16.msra.mxu0 %v8599_v62 }
 0x188   : > { %6670 = vmatprep.subr.bf16.mxu1 %v8537_v50  ;;  %6718 = vmatprep.subr.bf16.mxu0 %v8608_v17 }
 0x189   : > { %3715 = vmatprep.mubr.f32.mxu1 %v7935_v0 }
 0x18a   : > { %6106 = vmatmul.mubr.msk.f32.gmra.mrb[100].mxu1 %vm2819_vm2, %v8487_v54  ;;  %6115 = vmatmul.mubr.msk.f32.vlgmr.msra.gmra.mrb[98].mxu0 %vm2819_vm2, %v8813_v47 }
 0x18b   : > { %6672 = vmatpush1.bf16.msra.mxu1 %v8575_v30  ;;  %6720 = vmatpush1.bf16.msra.mxu0 %v8599_v62 }
 0x18c   : > { %6674 = vmatprep.subr.bf16.mxu1 %v8546_v58  ;;  %6722 = vmatprep.subr.bf16.mxu0 %v8571_v5 }
 0x18d   : > { %3970 = vmatprep.mubr.f32.mxu0 %v7935_v0  ;;  %3875 = vmatprep.mubr.f32.mxu1 %v7935_v0 }
 0x18e   : > { %6116 = vmatmul.mubr.msk.f32.gmra.mrb[100].mxu0 %vm2819_vm2, %v8843_v22 }
 0x18f   : > { %6676 = vmatpush1.bf16.msra.mxu1 %v8537_v50  ;;  %6724 = vmatpush1.bf16.msra.mxu0 %v8608_v17 }
 0x190   : > { %6698 = vmatprep.subr.bf16.mxu1 %v8546_v58  ;;  %6726 = vmatprep.subr.bf16.mxu0 %v8579_v40 }
 0x191   : > { %3976 = vmatprep.mubr.f32.mxu0 %v7935_v0 }
 0x192   : > { %6111 = vmatmul.mubr.msk.f32.vlgmr.msra.gmra.mrb[102].mxu1 %vm2819_vm2, %v8813_v47  ;;  %6117 = vmatmul.mubr.msk.f32.gmra.mrb[102].mxu0 %vm2819_vm2, %v8884_v37 }
 0x193   : > { %6700 = vmatpush1.bf16.msra.mxu1 %v8537_v50  ;;  %6728 = vmatpush1.bf16.msra.mxu0 %v8571_v5 }
 0x194   : > { %6702 = vmatprep.subr.bf16.mxu1 %v8599_v62  ;;  %6730 = vmatprep.subr.bf16.mxu0 %v8634_v51 }
 0x195   : > { %3881 = vmatprep.mubr.f32.mxu1 %v7935_v0  ;;  %3982 = vmatprep.mubr.f32.mxu0 %v7935_v0 }
 0x196   : > { %6112 = vmatmul.mubr.msk.f32.gmra.mrb[104].mxu1 %vm2819_vm2, %v8843_v22  ;;  %6118 = vmatmul.mubr.msk.f32.gmra.mrb[104].mxu0 %vm2819_vm2, %v8487_v54  ;;  %v8914_v54 = vld [vmem:[%s9969_s3 + $0x18] sm:$0xff] }
 0x197   : > { %6704 = vmatpush1.bf16.msra.mxu1 %v8546_v58  ;;  %6732 = vmatpush1.bf16.msra.mxu0 %v8579_v40  ;;  %v9102_v58 = vpop.permute.xlu1 %2806 }
 0x198   : > { %6706 = vmatprep.subr.bf16.mxu1 %v8608_v17  ;;  %6734 = vmatprep.subr.bf16.mxu0 %v8643_v8 }
 0x199   : > { %3887 = vmatprep.mubr.f32.mxu1 %v7935_v0  ;;  %4142 = vmatprep.mubr.f32.mxu0 %v7935_v0 }
 0x19a   : > { %6113 = vmatmul.mubr.msk.f32.gmra.mrb[106].mxu1 %vm2819_vm2, %v8884_v37 }
 0x19b   : > { %6708 = vmatpush1.bf16.msra.mxu1 %v8599_v62  ;;  %6736 = vmatpush1.bf16.msra.mxu0 %v8634_v51  ;;  %v9116_v62 = vpop.permute.xlu0 %2811 }
 0x19c   : > { %6710 = vmatprep.subr.bf16.mxu1 %v8571_v5  ;;  %6758 = vmatprep.subr.bf16.mxu0 %v8643_v8 }
 0x19d   : > { %3893 = vmatprep.mubr.f32.mxu1 %v7935_v0 }
 0x19e   : > { %6114 = vmatmul.mubr.msk.f32.gmra.mrb[108].mxu1 %vm2819_vm2, %v8914_v54  ;;  %6123 = vmatmul.mubr.msk.f32.vlgmr.msra.gmra.mrb[106].mxu0 %vm2819_vm2, %v8813_v47 }
 0x19f   : > { %6712 = vmatpush1.bf16.msra.mxu1 %v8608_v17  ;;  %6760 = vmatpush1.bf16.msra.mxu0 %v8634_v51 }
 0x1a0   : > { %6714 = vmatprep.subr.bf16.mxu1 %v8579_v40  ;;  %6762 = vmatprep.subr.bf16.mxu0 %v8604_v11 }
 0x1a1   : > { %4148 = vmatprep.mubr.f32.mxu0 %v7935_v0  ;;  %4053 = vmatprep.mubr.f32.mxu1 %v7935_v0 }
 0x1a2   : > { %6124 = vmatmul.mubr.msk.f32.gmra.mrb[108].mxu0 %vm2819_vm2, %v8843_v22 }
 0x1a3   : > { %6716 = vmatpush1.bf16.msra.mxu1 %v8571_v5  ;;  %6764 = vmatpush1.bf16.msra.mxu0 %v8643_v8 }
 0x1a4   : > { %6738 = vmatprep.subr.bf16.mxu1 %v8579_v40  ;;  %6766 = vmatprep.subr.bf16.mxu0 %v8612_v38 }
 0x1a5   : > { %4154 = vmatprep.mubr.f32.mxu0 %v7935_v0 }
 0x1a6   : > { %6119 = vmatmul.mubr.msk.f32.vlgmr.msra.gmra.mrb[110].mxu1 %vm2819_vm2, %v8813_v47  ;;  %6125 = vmatmul.mubr.msk.f32.gmra.mrb[110].mxu0 %vm2819_vm2, %v8884_v37 }
 0x1a7   : > { %6740 = vmatpush1.bf16.msra.mxu1 %v8571_v5  ;;  %6768 = vmatpush1.bf16.msra.mxu0 %v8604_v11 }
 0x1a8   : > { %6742 = vmatprep.subr.bf16.mxu1 %v8634_v51  ;;  %6770 = vmatprep.subr.bf16.mxu0 %v8667_v60 }
 0x1a9   : > { %4059 = vmatprep.mubr.f32.mxu1 %v7935_v0  ;;  %4160 = vmatprep.mubr.f32.mxu0 %v7935_v0 }
 0x1aa   : > { %6120 = vmatmul.mubr.msk.f32.gmra.mrb[112].mxu1 %vm2819_vm2, %v8843_v22  ;;  %6126 = vmatmul.mubr.msk.f32.gmra.mrb[112].mxu0 %vm2819_vm2, %v8914_v54 }
 0x1ab   : > { %6744 = vmatpush1.bf16.msra.mxu1 %v8579_v40  ;;  %6772 = vmatpush1.bf16.msra.mxu0 %v8612_v38 }
 0x1ac   : > { %6746 = vmatprep.subr.bf16.mxu1 %v8643_v8  ;;  %6774 = vmatprep.subr.bf16.mxu0 %v8676_v48 }
 0x1ad   : > { %4065 = vmatprep.mubr.f32.mxu1 %v7935_v0  ;;  %4320 = vmatprep.mubr.f32.mxu0 %v7935_v0 }
 0x1ae   : > { %6121 = vmatmul.mubr.msk.f32.gmra.mrb[114].mxu1 %vm2819_vm2, %v8884_v37 }
 0x1af   : > { %6748 = vmatpush1.bf16.msra.mxu1 %v8634_v51  ;;  %6776 = vmatpush1.bf16.msra.mxu0 %v8667_v60 }
 0x1b0   : > { %6750 = vmatprep.subr.bf16.mxu1 %v8604_v11  ;;  %6798 = vmatprep.subr.bf16.mxu0 %v8676_v48 }
 0x1b1   : > { %4071 = vmatprep.mubr.f32.mxu1 %v7935_v0 }
 0x1b2   : > { %6122 = vmatmul.mubr.msk.f32.gmra.mrb[116].mxu1 %vm2819_vm2, %v8914_v54  ;;  %6131 = vmatmul.mubr.msk.f32.vlgmr.msra.gmra.mrb[114].mxu0 %vm2819_vm2, %v8813_v47 }
 0x1b3   : > { %6752 = vmatpush1.bf16.msra.mxu1 %v8643_v8  ;;  %6800 = vmatpush1.bf16.msra.mxu0 %v8667_v60 }
 0x1b4   : > { %6754 = vmatprep.subr.bf16.mxu1 %v8612_v38  ;;  %6802 = vmatprep.subr.bf16.mxu0 %v8639_v56 }
 0x1b5   : > { %4326 = vmatprep.mubr.f32.mxu0 %v7935_v0  ;;  %4231 = vmatprep.mubr.f32.mxu1 %v7935_v0 }
 0x1b6   : > { %6132 = vmatmul.mubr.msk.f32.gmra.mrb[116].mxu0 %vm2819_vm2, %v8843_v22 }
 0x1b7   : > { %6756 = vmatpush1.bf16.msra.mxu1 %v8604_v11  ;;  %6804 = vmatpush1.bf16.msra.mxu0 %v8676_v48 }
 0x1b8   : > { %6778 = vmatprep.subr.bf16.mxu1 %v8612_v38  ;;  %6806 = vmatprep.subr.bf16.mxu0 %v8648_v6 }
 0x1b9   : > { %4332 = vmatprep.mubr.f32.mxu0 %v7935_v0 }
 0x1ba   : > { %6127 = vmatmul.mubr.msk.f32.vlgmr.msra.gmra.mrb[118].mxu1 %vm2819_vm2, %v8813_v47  ;;  %6133 = vmatmul.mubr.msk.f32.gmra.mrb[118].mxu0 %vm2819_vm2, %v8884_v37 }
 0x1bb   : > { %6780 = vmatpush1.bf16.msra.mxu1 %v8604_v11  ;;  %6808 = vmatpush1.bf16.msra.mxu0 %v8639_v56 }
 0x1bc   : > { %6782 = vmatprep.subr.bf16.mxu1 %v8667_v60  ;;  %6810 = vmatprep.subr.bf16.mxu0 %v8700_v29 }
 0x1bd   : > { %4237 = vmatprep.mubr.f32.mxu1 %v7935_v0  ;;  %4338 = vmatprep.mubr.f32.mxu0 %v7935_v0 }
 0x1be   : > { %6128 = vmatmul.mubr.msk.f32.gmra.mrb[120].mxu1 %vm2819_vm2, %v8843_v22  ;;  %6134 = vmatmul.mubr.msk.f32.gmra.mrb[120].mxu0 %vm2819_vm2, %v8914_v54 }
 0x1bf   : > { %6784 = vmatpush1.bf16.msra.mxu1 %v8612_v38  ;;  %6812 = vmatpush1.bf16.msra.mxu0 %v8648_v6 }
 0x1c0   : > { %6786 = vmatprep.subr.bf16.mxu1 %v8676_v48  ;;  %6814 = vmatprep.subr.bf16.mxu0 %v8709_v44 }
 0x1c1   : > { %4243 = vmatprep.mubr.f32.mxu1 %v7935_v0  ;;  %4498 = vmatprep.mubr.f32.mxu0 %v7935_v0 }
 0x1c2   : > { %6129 = vmatmul.mubr.msk.f32.gmra.mrb[122].mxu1 %vm2819_vm2, %v8884_v37 }
 0x1c3   : > { %6788 = vmatpush1.bf16.msra.mxu1 %v8667_v60  ;;  %6816 = vmatpush1.bf16.msra.mxu0 %v8700_v29 }
 0x1c4   : > { %6790 = vmatprep.subr.bf16.mxu1 %v8639_v56  ;;  %6838 = vmatprep.subr.bf16.mxu0 %v8709_v44 }
 0x1c5   : > { %4249 = vmatprep.mubr.f32.mxu1 %v7935_v0 }
 0x1c6   : > { %6130 = vmatmul.mubr.msk.f32.gmra.mrb[124].mxu1 %vm2819_vm2, %v8914_v54  ;;  %6139 = vmatmul.mubr.msk.f32.vlgmr.msra.gmra.mrb[122].mxu0 %vm2819_vm2, %v8813_v47 }
 0x1c7   : > { %6792 = vmatpush1.bf16.msra.mxu1 %v8676_v48  ;;  %6840 = vmatpush1.bf16.msra.mxu0 %v8700_v29 }
 0x1c8   : > { %6794 = vmatprep.subr.bf16.mxu1 %v8648_v6  ;;  %6842 = vmatprep.subr.bf16.mxu0 %v8672_v10 }
 0x1c9   : > { %4504 = vmatprep.mubr.f32.mxu0 %v7935_v0  ;;  %4409 = vmatprep.mubr.f32.mxu1 %v7935_v0 }
 0x1ca   : > { %6140 = vmatmul.mubr.msk.f32.gmra.mrb[124].mxu0 %vm2819_vm2, %v8843_v22 }
 0x1cb   : > { %6796 = vmatpush1.bf16.msra.mxu1 %v8639_v56  ;;  %6844 = vmatpush1.bf16.msra.mxu0 %v8709_v44 }
 0x1cc   : > { %6818 = vmatprep.subr.bf16.mxu1 %v8648_v6  ;;  %6846 = vmatprep.subr.bf16.mxu0 %v8681_v57 }
 0x1cd   : > { %4510 = vmatprep.mubr.f32.mxu0 %v7935_v0 }
 0x1ce   : > { %6135 = vmatmul.mubr.msk.f32.vlgmr.msra.gmra.mrb[126].mxu1 %vm2819_vm2, %v8813_v47  ;;  %6141 = vmatmul.mubr.msk.f32.gmra.mrb[126].mxu0 %vm2819_vm2, %v8884_v37 }
 0x1cf   : > { %6820 = vmatpush1.bf16.msra.mxu1 %v8639_v56  ;;  %6848 = vmatpush1.bf16.msra.mxu0 %v8672_v10  ;;  %v9127_v56 = vpop.permute.xlu1 %2816 }
 0x1d0   : > { %6822 = vmatprep.subr.bf16.mxu1 %v8700_v29  ;;  %6850 = vmatprep.subr.bf16.mxu0 %v8733_v15 }
 0x1d1   : > { %4415 = vmatprep.mubr.f32.mxu1 %v7935_v0  ;;  %4516 = vmatprep.mubr.f32.mxu0 %v7935_v0 }
 0x1d2   : > { %6136 = vmatmul.mubr.msk.f32.gmra.mrb[128].mxu1 %vm2819_vm2, %v8843_v22  ;;  %6142 = vmatmul.mubr.msk.f32.gmra.mrb[128].mxu0 %vm2819_vm2, %v8914_v54 }
 0x1d3   : > { %6824 = vmatpush1.bf16.msra.mxu1 %v8648_v6  ;;  %6852 = vmatpush1.bf16.msra.mxu0 %v8681_v57 }
 0x1d4   : > { %6826 = vmatprep.subr.bf16.mxu1 %v8709_v44  ;;  %6854 = vmatprep.subr.bf16.mxu0 %v8741_v28 }
 0x1d5   : > { %4421 = vmatprep.mubr.f32.mxu1 %v7935_v0  ;;  %4676 = vmatprep.mubr.f32.mxu0 %v7935_v0 }
 0x1d6   : > { %6137 = vmatmul.mubr.msk.f32.gmra.mrb[130].mxu1 %vm2819_vm2, %v8884_v37 }
 0x1d7   : > { %6828 = vmatpush1.bf16.msra.mxu1 %v8700_v29  ;;  %6856 = vmatpush1.bf16.msra.mxu0 %v8733_v15 }
 0x1d8   : > { %6830 = vmatprep.subr.bf16.mxu1 %v8672_v10  ;;  %6878 = vmatprep.subr.bf16.mxu0 %v8741_v28 }
 0x1d9   : > { %4427 = vmatprep.mubr.f32.mxu1 %v7935_v0 }
 0x1da   : > { %6138 = vmatmul.mubr.msk.f32.gmra.mrb[132].mxu1 %vm2819_vm2, %v8914_v54  ;;  %6147 = vmatmul.mubr.msk.f32.vlgmr.msra.gmra.mrb[130].mxu0 %vm2819_vm2, %v8813_v47 }
 0x1db   : > { %6832 = vmatpush1.bf16.msra.mxu1 %v8709_v44  ;;  %6880 = vmatpush1.bf16.msra.mxu0 %v8733_v15 }
 0x1dc   : > { %6834 = vmatprep.subr.bf16.mxu1 %v8681_v57  ;;  %6882 = vmatprep.subr.bf16.mxu0 %v8705_v34 }
 0x1dd   : > { %4682 = vmatprep.mubr.f32.mxu0 %v7935_v0  ;;  %4587 = vmatprep.mubr.f32.mxu1 %v7935_v0 }
 0x1de   : > { %6148 = vmatmul.mubr.msk.f32.gmra.mrb[132].mxu0 %vm2819_vm2, %v8843_v22 }
 0x1df   : > { %6836 = vmatpush1.bf16.msra.mxu1 %v8672_v10  ;;  %6884 = vmatpush1.bf16.msra.mxu0 %v8741_v28 }
 0x1e0   : > { %6858 = vmatprep.subr.bf16.mxu1 %v8681_v57  ;;  %6886 = vmatprep.subr.bf16.mxu0 %v8714_v52 }
 0x1e1   : > { %4688 = vmatprep.mubr.f32.mxu0 %v7935_v0 }
 0x1e2   : > { %6143 = vmatmul.mubr.msk.f32.vlgmr.msra.gmra.mrb[134].mxu1 %vm2819_vm2, %v8813_v47  ;;  %6149 = vmatmul.mubr.msk.f32.gmra.mrb[134].mxu0 %vm2819_vm2, %v8884_v37 }
 0x1e3   : > { %6860 = vmatpush1.bf16.msra.mxu1 %v8672_v10  ;;  %6888 = vmatpush1.bf16.msra.mxu0 %v8705_v34 }
 0x1e4   : > { %6862 = vmatprep.subr.bf16.mxu1 %v8733_v15  ;;  %6890 = vmatprep.subr.bf16.mxu0 %v8762_v2 }
 0x1e5   : > { %4593 = vmatprep.mubr.f32.mxu1 %v7935_v0  ;;  %4694 = vmatprep.mubr.f32.mxu0 %v7935_v0 }
 0x1e6   : > { %6144 = vmatmul.mubr.msk.f32.gmra.mrb[136].mxu1 %vm2819_vm2, %v8843_v22  ;;  %6150 = vmatmul.mubr.msk.f32.gmra.mrb[136].mxu0 %vm2819_vm2, %v8914_v54 }
 0x1e7   : > { %6864 = vmatpush1.bf16.msra.mxu1 %v8681_v57  ;;  %6892 = vmatpush1.bf16.msra.mxu0 %v8714_v52 }
 0x1e8   : > { %6866 = vmatprep.subr.bf16.mxu1 %v8741_v28  ;;  %6894 = vmatprep.subr.bf16.mxu0 %v8772_v7 }
 0x1e9   : > { %4599 = vmatprep.mubr.f32.mxu1 %v7935_v0  ;;  %4854 = vmatprep.mubr.f32.mxu0 %v7935_v0 }
 0x1ea   : > { %6145 = vmatmul.mubr.msk.f32.gmra.mrb[138].mxu1 %vm2819_vm2, %v8884_v37 }
 0x1eb   : > { %6868 = vmatpush1.bf16.msra.mxu1 %v8733_v15  ;;  %6896 = vmatpush1.bf16.msra.mxu0 %v8762_v2 }
 0x1ec   : > { %6870 = vmatprep.subr.bf16.mxu1 %v8705_v34  ;;  %6918 = vmatprep.subr.bf16.mxu0 %v8772_v7 }
 0x1ed   : > { %v2898_v23 = vpop.f32.mrb[54].mxu1  ;;  %4605 = vmatprep.mubr.f32.mxu1 %v7935_v0 }
 0x1ee   : > { %v2899_v46 = vadd.f32 %v2898_v23, %v9084_v13  ;;  %v2900_v50 = vpop.f32.mrb[55].mxu1  ;;  %6146 = vmatmul.mubr.msk.f32.gmra.mrb[140].mxu1 %vm2819_vm2, %v8914_v54  ;;  %6155 = vmatmul.mubr.msk.f32.vlgmr.msra.gmra.mrb[138].mxu0 %vm2819_vm2, %v8813_v47 }
 0x1ef   : > { %v2901_v53 = vadd.f32 %v2900_v50, %v9084_v13  ;;  %6872 = vmatpush1.bf16.msra.mxu1 %v8741_v28  ;;  %6920 = vmatpush1.bf16.msra.mxu0 %v8762_v2 }
 0x1f0   : > { %6874 = vmatprep.subr.bf16.mxu1 %v8714_v52  ;;  %6922 = vmatprep.subr.bf16.mxu0 %v8737_v24  ;;  %7451 = vtanh.f32 %v2899_v46 }
 0x1f1   : > { %v2904_v25 = vpop.f32.mrb[56].mxu1  ;;  %4860 = vmatprep.mubr.f32.mxu0 %v7935_v0  ;;  %4765 = vmatprep.mubr.f32.mxu1 %v7935_v0  ;;  %7453 = vtanh.f32 %v2901_v53 }
 0x1f2   : > { %v2905_v5 = vadd.f32 %v2904_v25, %v9102_v58  ;;  %v2906_v30 = vpop.f32.mrb[57].mxu1  ;;  %6156 = vmatmul.mubr.msk.f32.gmra.mrb[140].mxu0 %vm2819_vm2, %v8843_v22 }
 0x1f3   : > { %v2907_v40 = vadd.f32 %v2906_v30, %v9102_v58  ;;  %6876 = vmatpush1.bf16.msra.mxu1 %v8705_v34  ;;  %6924 = vmatpush1.bf16.msra.mxu0 %v8772_v7 }
 0x1f4   : > { %7455 = vtanh.f32 %v2905_v5  ;;  %6898 = vmatprep.subr.bf16.mxu1 %v8714_v52  ;;  %6926 = vmatprep.subr.bf16.mxu0 %v8745_v9 }
 0x1f5   : > { %7457 = vtanh.f32 %v2907_v40  ;;  %v2910_v11 = vpop.f32.mrb[58].mxu1  ;;  %4866 = vmatprep.mubr.f32.mxu0 %v7935_v0 }
 0x1f6   : > { %v2911_v17 = vadd.f32 %v2910_v11, %v9116_v62  ;;  %v2912_v38 = vpop.f32.mrb[59].mxu1  ;;  %6151 = vmatmul.mubr.msk.f32.vlgmr.msra.gmra.mrb[142].mxu1 %vm2819_vm2, %v8813_v47  ;;  %6157 = vmatmul.mubr.msk.f32.gmra.mrb[142].mxu0 %vm2819_vm2, %v8884_v37 }
 0x1f7   : > { %v2913_v51 = vadd.f32 %v2912_v38, %v9116_v62  ;;  %6900 = vmatpush1.bf16.msra.mxu1 %v8705_v34  ;;  %6928 = vmatpush1.bf16.msra.mxu0 %v8737_v24 }
 0x1f8   : > { %6902 = vmatprep.subr.bf16.mxu1 %v8762_v2  ;;  %6930 = vmatprep.subr.bf16.mxu0 %v8791_v63  ;;  %7459 = vtanh.f32 %v2911_v17 }
 0x1f9   : > { %v2916_v8 = vpop.f32.mrb[60].mxu1  ;;  %4771 = vmatprep.mubr.f32.mxu1 %v7935_v0  ;;  %4872 = vmatprep.mubr.f32.mxu0 %v7935_v0  ;;  %v3076_v6 = vpop.f32.mrb[58].mxu0  ;;  %7461 = vtanh.f32 %v2913_v51  ;;  %v9210_v51 = vld [vmem:[%s9971_s5] sm:$0xff] }
 0x1fa   : > { %v2917_v60 = vadd.f32 %v2916_v8, %v9127_v56  ;;  %v2918_v10 = vpop.f32.mrb[61].mxu1  ;;  %6152 = vmatmul.mubr.msk.f32.gmra.mrb[144].mxu1 %vm2819_vm2, %v8843_v22  ;;  %6158 = vmatmul.mubr.msk.f32.gmra.mrb[144].mxu0 %vm2819_vm2, %v8914_v54  ;;  %v3077_v48 = vadd.f32 %v3076_v6, %v9084_v13  ;;  %v3078_v57 = vpop.f32.mrb[59].mxu0 }
 0x1fb   : > { %v2919_v29 = vadd.f32 %v2918_v10, %v9127_v56  ;;  %6904 = vmatpush1.bf16.msra.mxu1 %v8714_v52  ;;  %6932 = vmatpush1.bf16.msra.mxu0 %v8745_v9  ;;  %v3079_v34 = vadd.f32 %v3078_v57, %v9084_v13  ;;  %v9143_v44 = vpop.eup %7451 }
 0x1fc   : > { %7463 = vtanh.f32 %v2917_v60  ;;  %6906 = vmatprep.subr.bf16.mxu1 %v8772_v7  ;;  %6934 = vmatprep.subr.bf16.mxu0 %v8795_v39  ;;  %v9147_v12 = vpop.eup %7453 }
 0x1fd   : > { %7465 = vtanh.f32 %v2919_v29  ;;  %v3082_v16 = vpop.f32.mrb[60].mxu0  ;;  %4777 = vmatprep.mubr.f32.mxu1 %v7935_v0  ;;  %5032 = vmatprep.mubr.f32.mxu0 %v7935_v0  ;;  %v5373_v29 = vcombine.high %v9210_v51, %v9210_v51 }
 0x1fe   : > { %v9151_v52 = vpop.eup %7455  ;;  %7467 = vtanh.f32 %v3077_v48  ;;  %v3083_v19 = vadd.f32 %v3082_v16, %v9102_v58  ;;  %6153 = vmatmul.mubr.msk.f32.gmra.mrb[146].mxu1 %vm2819_vm2, %v8884_v37  ;;  %v3084_v20 = vpop.f32.mrb[61].mxu0 }
 0x1ff   : > { %v9156_v14 = vpop.eup %7457  ;;  %7469 = vtanh.f32 %v3079_v34  ;;  %6908 = vmatpush1.bf16.msra.mxu1 %v8762_v2  ;;  %6936 = vmatpush1.bf16.msra.mxu0 %v8791_v63  ;;  %v3085_v15 = vadd.f32 %v3084_v20, %v9102_v58  ;;  %v6959_v21 = vpack.c.bf16 %v9151_v52, %v9143_v44 }
 0x200   : > { %7471 = vtanh.f32 %v3083_v19  ;;  %6910 = vmatprep.subr.bf16.mxu1 %v8737_v24  ;;  %4783 = vmatprep.mubr.f32.mxu1 %v7935_v0  ;;  %v6967_v26 = vpack.c.bf16 %v9156_v14, %v9147_v12 }
 0x201   : > { %7473 = vtanh.f32 %v3085_v15  ;;  %v2987_v27 = vpop.f32.mrb[62].mxu1  ;;  %v3088_v28 = vpop.f32.mrb[62].mxu0 }
 0x202   : > { %v2988_v1 = vadd.f32 %v2987_v27, %v9084_v13  ;;  %v3089_v31 = vadd.f32 %v3088_v28, %v9116_v62  ;;  %v2989_v33 = vpop.f32.mrb[63].mxu1  ;;  %v3090_v36 = vpop.f32.mrb[63].mxu0  ;;  %6154 = vmatmul.mubr.msk.f32.gmra.mrb[148].mxu1 %vm2819_vm2, %v8914_v54  ;;  %6163 = vmatmul.mubr.msk.f32.vlgmr.msra.gmra.mrb[146].mxu0 %vm2819_vm2, %v8813_v47 }
 0x203   : > { %v2990_v41 = vadd.f32 %v2989_v33, %v9084_v13  ;;  %v3091_v35 = vadd.f32 %v3090_v36, %v9116_v62  ;;  %6912 = vmatpush1.bf16.msra.mxu1 %v8772_v7  ;;  %5038 = vmatprep.mubr.f32.mxu0 %v7935_v0  ;;  %v9177_v3 = vpop.eup %7459 }
 0x204   : > { %7475 = vtanh.f32 %v2988_v1  ;;  %6914 = vmatprep.subr.bf16.mxu1 %v8745_v9  ;;  %4943 = vmatprep.mubr.f32.mxu1 %v7935_v0  ;;  %v9181_v49 = vpop.eup %7461 }
 0x205   : > { %7477 = vtanh.f32 %v3089_v31  ;;  %v2993_v2 = vpop.f32.mrb[64].mxu1  ;;  %v3094_v18 = vpop.f32.mrb[64].mxu0 }
 0x206   : > { %v9183_v32 = vpop.eup %7463  ;;  %7479 = vtanh.f32 %v2990_v41  ;;  %v2994_v61 = vadd.f32 %v2993_v2, %v9102_v58  ;;  %v3095_v7 = vadd.f32 %v3094_v18, %v9127_v56  ;;  %v2995_v43 = vpop.f32.mrb[65].mxu1  ;;  %6164 = vmatmul.mubr.msk.f32.gmra.mrb[148].mxu0 %vm2819_vm2, %v8843_v22 }
 0x207   : > { %v3096_v4 = vpop.f32.mrb[65].mxu0  ;;  %v9189_v23 = vpop.eup %7465  ;;  %7481 = vtanh.f32 %v3091_v35  ;;  %v2996_v46 = vadd.f32 %v2995_v43, %v9102_v58  ;;  %6916 = vmatpush1.bf16.msra.mxu1 %v8737_v24  ;;  %5044 = vmatprep.mubr.f32.mxu0 %v7935_v0  ;;  %v6963_v53 = vpack.c.bf16 %v9183_v32, %v9177_v3 }
 0x208   : > { %v3097_v50 = vadd.f32 %v3096_v4, %v9127_v56  ;;  %v7468_v25 = vpop.eup %7467  ;;  %7483 = vtanh.f32 %v2994_v61  ;;  %6938 = vmatprep.subr.bf16.mxu1 %v8745_v9  ;;  %v6971_v5 = vpack.c.bf16 %v9189_v23, %v9181_v49 }
 0x209   : > { %v9200_v30 = vpop.eup %7469  ;;  %7485 = vtanh.f32 %v3095_v7  ;;  %v2999_v40 = vpop.f32.mrb[66].mxu1 }
 0x20a   : > { %v7472_v11 = vpop.eup %7471  ;;  %7487 = vtanh.f32 %v2996_v46  ;;  %v3000_v17 = vadd.f32 %v2999_v40, %v9116_v62  ;;  %v3001_v38 = vpop.f32.mrb[67].mxu1  ;;  %6159 = vmatmul.mubr.msk.f32.vlgmr.msra.gmra.mrb[150].mxu1 %vm2819_vm2, %v8813_v47  ;;  %6165 = vmatmul.mubr.msk.f32.gmra.mrb[150].mxu0 %vm2819_vm2, %v8884_v37 }
 0x20b   : > { %v9212_v8 = vpop.eup %7473  ;;  %7489 = vtanh.f32 %v3097_v50  ;;  %v3002_v6 = vadd.f32 %v3001_v38, %v9116_v62  ;;  %6940 = vmatpush1.bf16.msra.mxu1 %v8737_v24  ;;  %4949 = vmatprep.mubr.f32.mxu1 %v7935_v0  ;;  %v6957_v60 = vpack.c.bf16 %v7472_v11, %v7468_v25 }
 0x20c   : > { %6942 = vmatprep.subr.bf16.mxu1 %v8791_v63  ;;  %5050 = vmatprep.mubr.f32.mxu0 %v7935_v0  ;;  %v6965_v10 = vpack.c.bf16 %v9212_v8, %v9200_v30  ;;  %7491 = vtanh.f32 %v3000_v17 }
 0x20d   : > { %v3005_v48 = vpop.f32.mrb[68].mxu1  ;;  %6958 = vmatprep.subr.bf16.mxu0 %v6957_v60  ;;  %v3254_v57 = vpop.f32.mrb[66].mxu0  ;;  %7493 = vtanh.f32 %v3002_v6 }
 0x20e   : > { %v9223_v34 = vpop.eup %7475  ;;  %v3006_v24 = vadd.f32 %v3005_v48, %v9127_v56  ;;  %v3007_v16 = vpop.f32.mrb[69].mxu1  ;;  %6160 = vmatmul.mubr.msk.f32.gmra.mrb[152].mxu1 %vm2819_vm2, %v8843_v22  ;;  %6166 = vmatmul.mubr.msk.f32.gmra.mrb[152].mxu0 %vm2819_vm2, %v8914_v54  ;;  %v3255_v19 = vadd.f32 %v3254_v57, %v9084_v13 }
 0x20f   : > { %v3256_v20 = vpop.f32.mrb[67].mxu0  ;;  %v7478_v15 = vpop.eup %7477  ;;  %v3008_v27 = vadd.f32 %v3007_v16, %v9127_v56  ;;  %6960 = vmatpush3.bf16.msra.mxu0 %v6959_v21  ;;  %6944 = vmatpush1.bf16.msra.mxu1 %v8745_v9 }
 0x210   : > { %v3257_v28 = vadd.f32 %v3256_v20, %v9084_v13  ;;  %v9237_v1 = vpop.eup %7479  ;;  %7495 = vtanh.f32 %v3006_v24  ;;  %6946 = vmatprep.subr.bf16.mxu1 %v8795_v39  ;;  %4955 = vmatprep.mubr.f32.mxu1 %v7935_v0 }
 0x211   : > { %v7482_v31 = vpop.eup %7481  ;;  %7497 = vtanh.f32 %v3008_v27  ;;  %v3260_v33 = vpop.f32.mrb[68].mxu0  ;;  %5449 = vmatprep.mubr.f32.mxu0 %v5373_v29 }
 0x212   : > { %v9241_v36 = vpop.eup %7483  ;;  %7499 = vtanh.f32 %v3255_v19  ;;  %6161 = vmatmul.mubr.msk.f32.gmra.mrb[154].mxu1 %vm2819_vm2, %v8884_v37  ;;  %v3261_v9 = vadd.f32 %v3260_v33, %v9102_v58  ;;  %v3262_v44 = vpop.f32.mrb[69].mxu0 }
 0x213   : > { %v7486_v52 = vpop.eup %7485  ;;  %7501 = vtanh.f32 %v3257_v28  ;;  %6948 = vmatpush1.bf16.msra.mxu1 %v8791_v63  ;;  %v3263_v21 = vadd.f32 %v3262_v44, %v9102_v58  ;;  %4961 = vmatprep.mubr.f32.mxu1 %v7935_v0  ;;  %v6975_v41 = vpack.c.bf16 %v9241_v36, %v9223_v34  ;;  %v9324_v44 = vld [vmem:[%s9971_s5 + $0x8] sm:$0xff] }
 0x214   : > { %v9251_v35 = vpop.eup %7487  ;;  %7503 = vtanh.f32 %v3261_v9  ;;  %6950 = vmatprep.subr.bf16.mxu1 %v8766_v55  ;;  %v6961_v2 = vpack.c.bf16 %v7486_v52, %v7478_v15 }
 0x215   : > { %v7490_v18 = vpop.eup %7489  ;;  %7505 = vtanh.f32 %v3263_v21  ;;  %v3165_v61 = vpop.f32.mrb[70].mxu1  ;;  %v6983_v63 = vpack.c.bf16 %v9251_v35, %v9237_v1 }
 0x216   : > { %v3266_v7 = vpop.f32.mrb[70].mxu0  ;;  %v3166_v43 = vadd.f32 %v3165_v61, %v9084_v13  ;;  %6962 = vmatprep.subr.bf16.mxu0 %v6961_v2  ;;  %v3167_v46 = vpop.f32.mrb[71].mxu1  ;;  %6162 = vmatmul.mubr.msk.f32.gmra.mrb[156].mxu1 %vm2819_vm2, %v8914_v54  ;;  %v6969_v25 = vpack.c.bf16 %v7490_v18, %v7482_v31 }
 0x217   : > { %v3267_v4 = vadd.f32 %v3266_v7, %v9116_v62  ;;  %v3268_v50 = vpop.f32.mrb[71].mxu0  ;;  %v3168_v30 = vadd.f32 %v3167_v46, %v9084_v13  ;;  %6964 = vmatpush3.bf16.msra.mxu0 %v6963_v53  ;;  %6952 = vmatpush1.bf16.msra.mxu1 %v8795_v39  ;;  %v9266_v11 = vpop.eup %7491 }
 0x218   : > { %v3269_v40 = vadd.f32 %v3268_v50, %v9116_v62  ;;  %7507 = vtanh.f32 %v3166_v43  ;;  %6966 = vmatprep.subr.bf16.mxu0 %v6965_v10  ;;  %6954 = vmatprep.subr.bf16.mxu1 %v6953_v59  ;;  %v9271_v17 = vpop.eup %7493 }
 0x219   : > { %7509 = vtanh.f32 %v3267_v4  ;;  %v3171_v38 = vpop.f32.mrb[72].mxu1  ;;  %v3272_v8 = vpop.f32.mrb[72].mxu0  ;;  %5121 = vmatprep.mubr.f32.mxu1 %v7935_v0  ;;  %v5374_v4 = vcombine.high %v9324_v44, %v9324_v44 }
 0x21a   : > { %v9274_v6 = vpop.eup %7495  ;;  %7511 = vtanh.f32 %v3168_v30  ;;  %v3172_v39 = vadd.f32 %v3171_v38, %v9102_v58  ;;  %v3273_v3 = vadd.f32 %v3272_v8, %v9127_v56  ;;  %v3173_v32 = vpop.f32.mrb[73].mxu1 }
 0x21b   : > { %v3274_v53 = vpop.f32.mrb[73].mxu0  ;;  %v9278_v60 = vpop.eup %7497  ;;  %7513 = vtanh.f32 %v3269_v40  ;;  %v3174_v45 = vadd.f32 %v3173_v32, %v9102_v58  ;;  %6968 = vmatpush3.bf16.msra.mxu0 %v6967_v26  ;;  %6956 = vmatpush1.bf16.msra.mxu1 %v8766_v55  ;;  %v6979_v59 = vpack.c.bf16 %v9274_v6, %v9266_v11 }
 0x21c   : > { %v3275_v42 = vadd.f32 %v3274_v53, %v9127_v56  ;;  %v9288_v10 = vpop.eup %7499  ;;  %7515 = vtanh.f32 %v3172_v39  ;;  %6970 = vmatprep.subr.bf16.mxu0 %v6969_v25  ;;  %v6987_v48 = vpack.c.bf16 %v9278_v60, %v9271_v17 }
 0x21d   : > { %v9292_v57 = vpop.eup %7501  ;;  %7517 = vtanh.f32 %v3273_v3  ;;  %v3177_v29 = vpop.f32.mrb[74].mxu1 }
 0x21e   : > { %v9294_v24 = vpop.eup %7503  ;;  %7519 = vtanh.f32 %v3174_v45  ;;  %v3178_v12 = vadd.f32 %v3177_v29, %v9116_v62  ;;  %v3179_v55 = vpop.f32.mrb[75].mxu1  ;;  %6167 = vmatmul.mubr.msk.f32.vlgmr.msra.gmra.mrb[158].mxu1 %vm2819_vm2, %v8813_v47 }
 0x21f   : > { %v9299_v14 = vpop.eup %7505  ;;  %7521 = vtanh.f32 %v3275_v42  ;;  %v3180_v26 = vadd.f32 %v3179_v55, %v9116_v62  ;;  %6972 = vmatpush3.bf16.msra.mxu0 %v6971_v5  ;;  %5127 = vmatprep.mubr.f32.mxu1 %v7935_v0  ;;  %v6991_v16 = vpack.c.bf16 %v9294_v24, %v9288_v10 }
 0x220   : > { %v6999_v19 = vpack.c.bf16 %v9299_v14, %v9292_v57  ;;  %7523 = vtanh.f32 %v3178_v12 }
 0x221   : > { %v3183_v20 = vpop.f32.mrb[76].mxu1  ;;  %v3432_v15 = vpop.f32.mrb[74].mxu0  ;;  %7525 = vtanh.f32 %v3180_v26 }
 0x222   : > { %v7508_v47 = vpop.eup %7507  ;;  %v3184_v27 = vadd.f32 %v3183_v20, %v9127_v56  ;;  %v3185_v28 = vpop.f32.mrb[77].mxu1  ;;  %6168 = vmatmul.mubr.msk.f32.gmra.mrb[160].mxu1 %vm2819_vm2, %v8843_v22  ;;  %v3433_v49 = vadd.f32 %v3432_v15, %v9084_v13 }
 0x223   : > { %v3434_v23 = vpop.f32.mrb[75].mxu0  ;;  %v9314_v5 = vpop.eup %7509  ;;  %v3186_v31 = vadd.f32 %v3185_v28, %v9127_v56  ;;  %5133 = vmatprep.mubr.f32.mxu1 %v7935_v0 }
 0x224   : > { %v3435_v33 = vadd.f32 %v3434_v23, %v9084_v13  ;;  %v9319_v9 = vpop.eup %7511  ;;  %7527 = vtanh.f32 %v3184_v27 }
 0x225   : > { %v9326_v22 = vpop.eup %7513  ;;  %7529 = vtanh.f32 %v3186_v31  ;;  %v3438_v52 = vpop.f32.mrb[76].mxu0 }
 0x226   : > { %v7516_v21 = vpop.eup %7515  ;;  %7531 = vtanh.f32 %v3433_v49  ;;  %v3439_v2 = vadd.f32 %v3438_v52, %v9102_v58  ;;  %6169 = vmatmul.mubr.msk.f32.gmra.mrb[162].mxu1 %vm2819_vm2, %v8884_v37  ;;  %v3440_v18 = vpop.f32.mrb[77].mxu0 }
 0x227   : > { %v9331_v61 = vpop.eup %7517  ;;  %7533 = vtanh.f32 %v3435_v33  ;;  %v3441_v7 = vadd.f32 %v3440_v18, %v9102_v58  ;;  %5139 = vmatprep.mubr.f32.mxu1 %v7935_v0  ;;  %v6973_v43 = vpack.c.bf16 %v7516_v21, %v7508_v47 }
 0x228   : > { %v7520_v46 = vpop.eup %7519  ;;  %7535 = vtanh.f32 %v3439_v2  ;;  %v6995_v50 = vpack.c.bf16 %v9331_v61, %v9314_v5 }
 0x229   : > { %v9339_v25 = vpop.eup %7521  ;;  %7537 = vtanh.f32 %v3441_v7  ;;  %v3343_v37 = vpop.f32.mrb[78].mxu1  ;;  %6974 = vmatprep.subr.bf16.mxu0 %v6973_v43  ;;  %v6981_v40 = vpack.c.bf16 %v7520_v46, %v9319_v9 }
 0x22a   : > { %v3444_v30 = vpop.f32.mrb[78].mxu0  ;;  %v3344_v38 = vadd.f32 %v3343_v37, %v9084_v13  ;;  %v3345_v39 = vpop.f32.mrb[79].mxu1  ;;  %6170 = vmatmul.mubr.msk.f32.gmra.mrb[164].mxu1 %vm2819_vm2, %v8914_v54  ;;  %6976 = vmatpush3.bf16.msra.mxu0 %v6975_v41  ;;  %v7003_v32 = vpack.c.bf16 %v9339_v25, %v9326_v22 }
 0x22b   : > { %v3445_v8 = vadd.f32 %v3444_v30, %v9116_v62  ;;  %v3446_v3 = vpop.f32.mrb[79].mxu0  ;;  %v3346_v53 = vadd.f32 %v3345_v39, %v9084_v13  ;;  %5519 = vmatprep.mubr.f32.mxu1 %v5374_v4  ;;  %v7524_v42 = vpop.eup %7523 }
 0x22c   : > { %v3447_v45 = vadd.f32 %v3446_v3, %v9116_v62  ;;  %7539 = vtanh.f32 %v3344_v38  ;;  %v7526_v29 = vpop.eup %7525 }
 0x22d   : > { %7541 = vtanh.f32 %v3445_v8  ;;  %v3349_v12 = vpop.f32.mrb[80].mxu1  ;;  %v3450_v55 = vpop.f32.mrb[80].mxu0  ;;  %v9380_v8 = vld [vmem:[%s9971_s5 + $0x10] sm:$0xff] }
 0x22e   : > { %v7528_v26 = vpop.eup %7527  ;;  %7543 = vtanh.f32 %v3346_v53  ;;  %v3350_v54 = vadd.f32 %v3349_v12, %v9102_v58  ;;  %v3451_v34 = vadd.f32 %v3450_v55, %v9127_v56  ;;  %v3351_v36 = vpop.f32.mrb[81].mxu1  ;;  %v5375_v39 = vcombine.high %v9380_v8, %v9380_v8 }
 0x22f   : > { %v3452_v41 = vpop.f32.mrb[81].mxu0  ;;  %v7530_v20 = vpop.eup %7529  ;;  %7545 = vtanh.f32 %v3447_v45  ;;  %v3352_v15 = vadd.f32 %v3351_v36, %v9102_v58  ;;  %v6977_v27 = vpack.c.bf16 %v7528_v26, %v7524_v42 }
 0x230   : > { %v3453_v47 = vadd.f32 %v3452_v41, %v9127_v56  ;;  %v7532_v28 = vpop.eup %7531  ;;  %7547 = vtanh.f32 %v3350_v54  ;;  %v6985_v49 = vpack.c.bf16 %v7530_v20, %v7526_v29 }
 0x231   : > { %v9357_v23 = vpop.eup %7533  ;;  %7549 = vtanh.f32 %v3451_v34  ;;  %v3355_v31 = vpop.f32.mrb[82].mxu1  ;;  %6978 = vmatprep.subr.bf16.mxu0 %v6977_v27 }
 0x232   : > { %v7536_v33 = vpop.eup %7535  ;;  %7551 = vtanh.f32 %v3352_v15  ;;  %v3356_v9 = vadd.f32 %v3355_v31, %v9116_v62  ;;  %v3357_v52 = vpop.f32.mrb[83].mxu1  ;;  %6980 = vmatpush3.bf16.msra.mxu0 %v6979_v59 }
 0x233   : > { %v7538_v21 = vpop.eup %7537  ;;  %7553 = vtanh.f32 %v3453_v47  ;;  %v3358_v2 = vadd.f32 %v3357_v52, %v9116_v62  ;;  %6982 = vmatprep.subr.bf16.mxu0 %v6981_v40  ;;  %v6989_v18 = vpack.c.bf16 %v7536_v33, %v7532_v28 }
 0x234   : > { %v6997_v7 = vpack.c.bf16 %v7538_v21, %v9357_v23  ;;  %7555 = vtanh.f32 %v3356_v9 }
 0x235   : > { %v3361_v43 = vpop.f32.mrb[84].mxu1  ;;  %6990 = vmatprep.subr.bf16.mxu1 %v6989_v18  ;;  %v3610_v4 = vpop.f32.mrb[82].mxu0  ;;  %7557 = vtanh.f32 %v3358_v2 }
 0x236   : > { %v9365_v46 = vpop.eup %7539  ;;  %v3362_v37 = vadd.f32 %v3361_v43, %v9127_v56  ;;  %v3363_v30 = vpop.f32.mrb[85].mxu1  ;;  %6984 = vmatpush3.bf16.msra.mxu0 %v6983_v63  ;;  %6992 = vmatpush3.bf16.msra.mxu1 %v6991_v16  ;;  %v3611_v11 = vadd.f32 %v3610_v4, %v9084_v13 }
 0x237   : > { %v3612_v6 = vpop.f32.mrb[83].mxu0  ;;  %v7542_v59 = vpop.eup %7541  ;;  %v3364_v40 = vadd.f32 %v3363_v30, %v9127_v56  ;;  %6986 = vmatprep.subr.bf16.mxu0 %v6985_v49 }
 0x238   : > { %v3613_v38 = vadd.f32 %v3612_v6, %v9084_v13  ;;  %v9382_v1 = vpop.eup %7543  ;;  %7559 = vtanh.f32 %v3362_v37 }
 0x239   : > { %v7546_v35 = vpop.eup %7545  ;;  %7561 = vtanh.f32 %v3364_v40  ;;  %v3616_v63 = vpop.f32.mrb[84].mxu0 }
 0x23a   : > { %v9384_v10 = vpop.eup %7547  ;;  %7563 = vtanh.f32 %v3611_v11  ;;  %6988 = vmatpush3.bf16.msra.mxu0 %v6987_v48  ;;  %v3617_v24 = vadd.f32 %v3616_v63, %v9102_v58  ;;  %v3618_v16 = vpop.f32.mrb[85].mxu0 }
 0x23b   : > { %v7550_v3 = vpop.eup %7549  ;;  %7565 = vtanh.f32 %v3613_v38  ;;  %v3619_v53 = vadd.f32 %v3618_v16, %v9102_v58  ;;  %v7007_v45 = vpack.c.bf16 %v9384_v10, %v9365_v46 }
 0x23c   : > { %v9395_v42 = vpop.eup %7551  ;;  %7567 = vtanh.f32 %v3617_v24  ;;  %v6993_v29 = vpack.c.bf16 %v7550_v3, %v7542_v59 }
 0x23d   : > { %v7554_v12 = vpop.eup %7553  ;;  %7569 = vtanh.f32 %v3619_v53  ;;  %v3521_v17 = vpop.f32.mrb[86].mxu1  ;;  %5450 = vmatmul.mubr.f32.vlgmr.msra.gmra.mrb[154].mxu0 %v9210_v51  ;;  %v7015_v48 = vpack.c.bf16 %v9395_v42, %v9382_v1 }
 0x23e   : > { %v3622_v60 = vpop.f32.mrb[86].mxu0  ;;  %v3522_v55 = vadd.f32 %v3521_v17, %v9084_v13  ;;  %6994 = vmatprep.subr.bf16.mxu1 %v6993_v29  ;;  %v3523_v54 = vpop.f32.mrb[87].mxu1  ;;  %v7001_v36 = vpack.c.bf16 %v7554_v12, %v7546_v35  ;;  %5589 = vmatprep.mubr.f32.mxu0 %v5375_v39 }
 0x23f   : > { %v3623_v26 = vadd.f32 %v3622_v60, %v9116_v62  ;;  %v3624_v34 = vpop.f32.mrb[87].mxu0  ;;  %v3524_v41 = vadd.f32 %v3523_v54, %v9084_v13  ;;  %6996 = vmatpush3.bf16.msra.mxu1 %v6995_v50  ;;  %v9407_v51 = vpop.eup %7555 }
 0x240   : > { %v3625_v20 = vadd.f32 %v3624_v34, %v9116_v62  ;;  %7571 = vtanh.f32 %v3522_v55  ;;  %6998 = vmatprep.subr.bf16.mxu1 %v6997_v7  ;;  %v9409_v15 = vpop.eup %7557 }
 0x241   : > { %7573 = vtanh.f32 %v3623_v26  ;;  %v3527_v47 = vpop.f32.mrb[88].mxu1  ;;  %v3628_v27 = vpop.f32.mrb[88].mxu0 }
 0x242   : > { %v9411_v28 = vpop.eup %7559  ;;  %7575 = vtanh.f32 %v3524_v41  ;;  %v3528_v49 = vadd.f32 %v3527_v47, %v9102_v58  ;;  %v3629_v23 = vadd.f32 %v3628_v27, %v9127_v56  ;;  %v3529_v31 = vpop.f32.mrb[89].mxu1 }
 0x243   : > { %v3630_v33 = vpop.f32.mrb[89].mxu0  ;;  %v9415_v5 = vpop.eup %7561  ;;  %7577 = vtanh.f32 %v3625_v20  ;;  %v3530_v61 = vadd.f32 %v3529_v31, %v9102_v58  ;;  %7000 = vmatpush3.bf16.msra.mxu1 %v6999_v19  ;;  %v7011_v9 = vpack.c.bf16 %v9411_v28, %v9407_v51 }
 0x244   : > { %v3631_v50 = vadd.f32 %v3630_v33, %v9127_v56  ;;  %v9424_v52 = vpop.eup %7563  ;;  %7579 = vtanh.f32 %v3528_v49  ;;  %7002 = vmatprep.subr.bf16.mxu1 %v7001_v36  ;;  %v7019_v21 = vpack.c.bf16 %v9415_v5, %v9409_v15 }
 0x245   : > { %v9428_v2 = vpop.eup %7565  ;;  %7581 = vtanh.f32 %v3629_v23  ;;  %v3533_v18 = vpop.f32.mrb[90].mxu1 }
 0x246   : > { %v9430_v7 = vpop.eup %7567  ;;  %7583 = vtanh.f32 %v3530_v61  ;;  %v3534_v57 = vadd.f32 %v3533_v18, %v9116_v62  ;;  %v3535_v14 = vpop.f32.mrb[91].mxu1 }
 0x247   : > { %v9433_v19 = vpop.eup %7569  ;;  %7585 = vtanh.f32 %v3631_v50  ;;  %v3536_v43 = vadd.f32 %v3535_v14, %v9116_v62  ;;  %7004 = vmatpush3.bf16.msra.mxu1 %v7003_v32  ;;  %v7023_v4 = vpack.c.bf16 %v9430_v7, %v9424_v52 }
 0x248   : > { %v7031_v37 = vpack.c.bf16 %v9433_v19, %v9428_v2  ;;  %7587 = vtanh.f32 %v3534_v57 }
 0x249   : > { %v3539_v30 = vpop.f32.mrb[92].mxu1  ;;  %v3788_v11 = vpop.f32.mrb[90].mxu0  ;;  %7589 = vtanh.f32 %v3536_v43 }
 0x24a   : > { %v7572_v6 = vpop.eup %7571  ;;  %v3540_v59 = vadd.f32 %v3539_v30, %v9127_v56  ;;  %v3541_v40 = vpop.f32.mrb[93].mxu1  ;;  %v3789_v38 = vadd.f32 %v3788_v11, %v9084_v13 }
 0x24b   : > { %v3790_v35 = vpop.f32.mrb[91].mxu0  ;;  %v9445_v63 = vpop.eup %7573  ;;  %v3542_v22 = vadd.f32 %v3541_v40, %v9127_v56 }
 0x24c   : > { %v3791_v25 = vadd.f32 %v3790_v35, %v9084_v13  ;;  %v7576_v32 = vpop.eup %7575  ;;  %7591 = vtanh.f32 %v3540_v59 }
 0x24d   : > { %v9449_v24 = vpop.eup %7577  ;;  %7593 = vtanh.f32 %v3542_v22  ;;  %v3794_v16 = vpop.f32.mrb[92].mxu0 }
 0x24e   : > { %v7580_v39 = vpop.eup %7579  ;;  %7595 = vtanh.f32 %v3789_v38  ;;  %v3795_v3 = vadd.f32 %v3794_v16, %v9102_v58  ;;  %v3796_v53 = vpop.f32.mrb[93].mxu0 }
 0x24f   : > { %v9452_v29 = vpop.eup %7581  ;;  %7597 = vtanh.f32 %v3791_v25  ;;  %v3797_v12 = vadd.f32 %v3796_v53, %v9102_v58  ;;  %v7005_v17 = vpack.c.bf16 %v7580_v39, %v7572_v6 }
 0x250   : > { %v7584_v60 = vpop.eup %7583  ;;  %7599 = vtanh.f32 %v3795_v3  ;;  %v7027_v55 = vpack.c.bf16 %v9452_v29, %v9445_v63 }
 0x251   : > { %v9457_v26 = vpop.eup %7585  ;;  %7601 = vtanh.f32 %v3797_v12  ;;  %v3699_v54 = vpop.f32.mrb[94].mxu1  ;;  %7006 = vmatprep.subr.bf16.mxu1 %v7005_v17  ;;  %v7013_v36 = vpack.c.bf16 %v7584_v60, %v7576_v32 }
 0x252   : > { %v3800_v34 = vpop.f32.mrb[94].mxu0  ;;  %v3700_v41 = vadd.f32 %v3699_v54, %v9084_v13  ;;  %v3701_v47 = vpop.f32.mrb[95].mxu1  ;;  %7008 = vmatpush3.bf16.msra.mxu1 %v7007_v45  ;;  %v7035_v49 = vpack.c.bf16 %v9457_v26, %v9449_v24 }
 0x253   : > { %v3801_v20 = vadd.f32 %v3800_v34, %v9116_v62  ;;  %v3802_v27 = vpop.f32.mrb[95].mxu0  ;;  %v3702_v23 = vadd.f32 %v3701_v47, %v9084_v13  ;;  %v7588_v33 = vpop.eup %7587 }
 0x254   : > { %v3803_v31 = vadd.f32 %v3802_v27, %v9116_v62  ;;  %7603 = vtanh.f32 %v3700_v41  ;;  %v7590_v61 = vpop.eup %7589 }
 0x255   : > { %7605 = vtanh.f32 %v3801_v20  ;;  %v3705_v50 = vpop.f32.mrb[96].mxu1  ;;  %v3806_v18 = vpop.f32.mrb[96].mxu0  ;;  %v9495_v20 = vld [vmem:[%s9971_s5 + $0x18] sm:$0xff] }
 0x256   : > { %v7592_v57 = vpop.eup %7591  ;;  %7607 = vtanh.f32 %v3702_v23  ;;  %v3706_v14 = vadd.f32 %v3705_v50, %v9102_v58  ;;  %v3807_v46 = vadd.f32 %v3806_v18, %v9127_v56  ;;  %v3707_v10 = vpop.f32.mrb[97].mxu1  ;;  %v5376_v47 = vcombine.high %v9495_v20, %v9495_v20 }
 0x257   : > { %v3808_v45 = vpop.f32.mrb[97].mxu0  ;;  %v7594_v43 = vpop.eup %7593  ;;  %7609 = vtanh.f32 %v3803_v31  ;;  %v3708_v30 = vadd.f32 %v3707_v10, %v9102_v58  ;;  %v7009_v6 = vpack.c.bf16 %v7592_v57, %v7588_v33 }
 0x258   : > { %v3809_v11 = vadd.f32 %v3808_v45, %v9127_v56  ;;  %v7596_v59 = vpop.eup %7595  ;;  %7611 = vtanh.f32 %v3706_v14  ;;  %v7017_v40 = vpack.c.bf16 %v7594_v43, %v7590_v61 }
 0x259   : > { %v9472_v38 = vpop.eup %7597  ;;  %7613 = vtanh.f32 %v3807_v46  ;;  %v3711_v35 = vpop.f32.mrb[98].mxu1  ;;  %7010 = vmatprep.subr.bf16.mxu1 %v7009_v6 }
 0x25a   : > { %v7600_v22 = vpop.eup %7599  ;;  %7615 = vtanh.f32 %v3708_v30  ;;  %v3712_v25 = vadd.f32 %v3711_v35, %v9116_v62  ;;  %v3713_v32 = vpop.f32.mrb[99].mxu1  ;;  %7012 = vmatpush3.bf16.msra.mxu1 %v7011_v9 }
 0x25b   : > { %v7602_v16 = vpop.eup %7601  ;;  %7617 = vtanh.f32 %v3809_v11  ;;  %v3714_v39 = vadd.f32 %v3713_v32, %v9116_v62  ;;  %7014 = vmatprep.subr.bf16.mxu1 %v7013_v36  ;;  %v7021_v3 = vpack.c.bf16 %v7600_v22, %v7596_v59 }
 0x25c   : > { %v7029_v53 = vpack.c.bf16 %v7602_v16, %v9472_v38  ;;  %7619 = vtanh.f32 %v3712_v25 }
 0x25d   : > { %v3717_v12 = vpop.f32.mrb[100].mxu1  ;;  %7022 = vmatprep.subr.bf16.mxu0 %v7021_v3  ;;  %v3966_v17 = vpop.f32.mrb[98].mxu0  ;;  %7621 = vtanh.f32 %v3714_v39 }
 0x25e   : > { %v9480_v60 = vpop.eup %7603  ;;  %v3718_v54 = vadd.f32 %v3717_v12, %v9127_v56  ;;  %v3719_v34 = vpop.f32.mrb[101].mxu1  ;;  %7016 = vmatpush3.bf16.msra.mxu1 %v7015_v48  ;;  %7024 = vmatpush3.bf16.msra.mxu0 %v7023_v4  ;;  %v3967_v51 = vadd.f32 %v3966_v17, %v9084_v13 }
 0x25f   : > { %v3968_v28 = vpop.f32.mrb[99].mxu0  ;;  %v7606_v9 = vpop.eup %7605  ;;  %v3720_v36 = vadd.f32 %v3719_v34, %v9127_v56  ;;  %7018 = vmatprep.subr.bf16.mxu1 %v7017_v40 }
 0x260   : > { %v3969_v41 = vadd.f32 %v3968_v28, %v9084_v13  ;;  %v9497_v1 = vpop.eup %7607  ;;  %7623 = vtanh.f32 %v3718_v54 }
 0x261   : > { %v7610_v42 = vpop.eup %7609  ;;  %7625 = vtanh.f32 %v3720_v36  ;;  %v3972_v48 = vpop.f32.mrb[100].mxu0 }
 0x262   : > { %v9499_v52 = vpop.eup %7611  ;;  %7627 = vtanh.f32 %v3967_v51  ;;  %7020 = vmatpush3.bf16.msra.mxu1 %v7019_v21  ;;  %v3973_v7 = vadd.f32 %v3972_v48, %v9102_v58  ;;  %v3974_v4 = vpop.f32.mrb[101].mxu0 }
 0x263   : > { %v7614_v27 = vpop.eup %7613  ;;  %7629 = vtanh.f32 %v3969_v41  ;;  %v3975_v23 = vadd.f32 %v3974_v4, %v9102_v58  ;;  %v7039_v31 = vpack.c.bf16 %v9499_v52, %v9480_v60 }
 0x264   : > { %v9510_v33 = vpop.eup %7615  ;;  %7631 = vtanh.f32 %v3973_v7  ;;  %v7025_v61 = vpack.c.bf16 %v7614_v27, %v7606_v9 }
 0x265   : > { %v7618_v50 = vpop.eup %7617  ;;  %7633 = vtanh.f32 %v3975_v23  ;;  %v3877_v15 = vpop.f32.mrb[102].mxu1  ;;  %5520 = vmatmul.mubr.f32.vlgmr.msra.gmra.mrb[166].mxu1 %v9324_v44  ;;  %v7047_v21 = vpack.c.bf16 %v9510_v33, %v9497_v1 }
 0x266   : > { %v3978_v5 = vpop.f32.mrb[102].mxu0  ;;  %v3878_v18 = vadd.f32 %v3877_v15, %v9084_v13  ;;  %7026 = vmatprep.subr.bf16.mxu0 %v7025_v61  ;;  %v3879_v14 = vpop.f32.mrb[103].mxu1  ;;  %v7033_v10 = vpack.c.bf16 %v7618_v50, %v7610_v42  ;;  %5659 = vmatprep.mubr.f32.mxu1 %v5376_v47 }
 0x267   : > { %v3979_v57 = vadd.f32 %v3978_v5, %v9116_v62  ;;  %v3980_v46 = vpop.f32.mrb[103].mxu0  ;;  %v3880_v45 = vadd.f32 %v3879_v14, %v9084_v13  ;;  %7028 = vmatpush3.bf16.msra.mxu0 %v7027_v55  ;;  %v9522_v44 = vpop.eup %7619 }
 0x268   : > { %v3981_v43 = vadd.f32 %v3980_v46, %v9116_v62  ;;  %7635 = vtanh.f32 %v3878_v18  ;;  %7030 = vmatprep.subr.bf16.mxu0 %v7029_v53  ;;  %v9524_v30 = vpop.eup %7621 }
 0x269   : > { %7637 = vtanh.f32 %v3979_v57  ;;  %v3883_v11 = vpop.f32.mrb[104].mxu1  ;;  %v3984_v6 = vpop.f32.mrb[104].mxu0 }
 0x26a   : > { %v9526_v59 = vpop.eup %7623  ;;  %7639 = vtanh.f32 %v3880_v45  ;;  %v3884_v40 = vadd.f32 %v3883_v11, %v9102_v58  ;;  %v3985_v38 = vadd.f32 %v3984_v6, %v9127_v56  ;;  %v3885_v35 = vpop.f32.mrb[105].mxu1 }
 0x26b   : > { %v3986_v22 = vpop.f32.mrb[105].mxu0  ;;  %v9530_v63 = vpop.eup %7625  ;;  %7641 = vtanh.f32 %v3981_v43  ;;  %v3886_v29 = vadd.f32 %v3885_v35, %v9102_v58  ;;  %7032 = vmatpush3.bf16.msra.mxu0 %v7031_v37  ;;  %v7043_v25 = vpack.c.bf16 %v9526_v59, %v9522_v44 }
 0x26c   : > { %v3987_v55 = vadd.f32 %v3986_v22, %v9127_v56  ;;  %v9539_v32 = vpop.eup %7627  ;;  %7643 = vtanh.f32 %v3884_v40  ;;  %7034 = vmatprep.subr.bf16.mxu0 %v7033_v10  ;;  %v7051_v16 = vpack.c.bf16 %v9530_v63, %v9524_v30 }
 0x26d   : > { %v9543_v39 = vpop.eup %7629  ;;  %7645 = vtanh.f32 %v3985_v38  ;;  %v3889_v3 = vpop.f32.mrb[106].mxu1 }
 0x26e   : > { %v9545_v53 = vpop.eup %7631  ;;  %7647 = vtanh.f32 %v3886_v29  ;;  %v3890_v2 = vadd.f32 %v3889_v3, %v9116_v62  ;;  %v3891_v19 = vpop.f32.mrb[107].mxu1 }
 0x26f   : > { %v9548_v37 = vpop.eup %7633  ;;  %7649 = vtanh.f32 %v3987_v55  ;;  %v3892_v12 = vadd.f32 %v3891_v19, %v9116_v62  ;;  %7036 = vmatpush3.bf16.msra.mxu0 %v7035_v49  ;;  %v7055_v17 = vpack.c.bf16 %v9545_v53, %v9539_v32 }
 0x270   : > { %v7063_v54 = vpack.c.bf16 %v9548_v37, %v9543_v39  ;;  %7651 = vtanh.f32 %v3890_v2 }
 0x271   : > { %v3895_v34 = vpop.f32.mrb[108].mxu1  ;;  %v4144_v51 = vpop.f32.mrb[106].mxu0  ;;  %7653 = vtanh.f32 %v3892_v12 }
 0x272   : > { %v7636_v28 = vpop.eup %7635  ;;  %v3896_v9 = vadd.f32 %v3895_v34, %v9127_v56  ;;  %v3897_v36 = vpop.f32.mrb[109].mxu1  ;;  %v4145_v41 = vadd.f32 %v4144_v51, %v9084_v13 }
 0x273   : > { %v4146_v42 = vpop.f32.mrb[107].mxu0  ;;  %v9560_v48 = vpop.eup %7637  ;;  %v3898_v24 = vadd.f32 %v3897_v36, %v9127_v56 }
 0x274   : > { %v4147_v26 = vadd.f32 %v4146_v42, %v9084_v13  ;;  %v7640_v49 = vpop.eup %7639  ;;  %7655 = vtanh.f32 %v3896_v9 }
 0x275   : > { %v9564_v7 = vpop.eup %7641  ;;  %7657 = vtanh.f32 %v3898_v24  ;;  %v4150_v4 = vpop.f32.mrb[108].mxu0 }
 0x276   : > { %v7644_v47 = vpop.eup %7643  ;;  %7659 = vtanh.f32 %v4145_v41  ;;  %v4151_v27 = vadd.f32 %v4150_v4, %v9102_v58  ;;  %v4152_v23 = vpop.f32.mrb[109].mxu0 }
 0x277   : > { %v9567_v61 = vpop.eup %7645  ;;  %7661 = vtanh.f32 %v4147_v26  ;;  %v4153_v50 = vadd.f32 %v4152_v23, %v9102_v58  ;;  %v7037_v15 = vpack.c.bf16 %v7644_v47, %v7636_v28 }
 0x278   : > { %v7648_v5 = vpop.eup %7647  ;;  %7663 = vtanh.f32 %v4151_v27  ;;  %v7059_v18 = vpack.c.bf16 %v9567_v61, %v9560_v48 }
 0x279   : > { %v9572_v57 = vpop.eup %7649  ;;  %7665 = vtanh.f32 %v4153_v50  ;;  %v4055_v14 = vpop.f32.mrb[110].mxu1  ;;  %7038 = vmatprep.subr.bf16.mxu0 %v7037_v15  ;;  %v7045_v10 = vpack.c.bf16 %v7648_v5, %v7640_v49 }
 0x27a   : > { %v4156_v46 = vpop.f32.mrb[110].mxu0  ;;  %v4056_v45 = vadd.f32 %v4055_v14, %v9084_v13  ;;  %v4057_v11 = vpop.f32.mrb[111].mxu1  ;;  %7040 = vmatpush3.bf16.msra.mxu0 %v7039_v31  ;;  %v7067_v40 = vpack.c.bf16 %v9572_v57, %v9564_v7 }
 0x27b   : > { %v4157_v43 = vadd.f32 %v4156_v46, %v9116_v62  ;;  %v4158_v6 = vpop.f32.mrb[111].mxu0  ;;  %v4058_v38 = vadd.f32 %v4057_v11, %v9084_v13  ;;  %v7652_v22 = vpop.eup %7651 }
 0x27c   : > { %v4159_v35 = vadd.f32 %v4158_v6, %v9116_v62  ;;  %7667 = vtanh.f32 %v4056_v45  ;;  %v7654_v29 = vpop.eup %7653 }
 0x27d   : > { %7669 = vtanh.f32 %v4157_v43  ;;  %v4061_v55 = vpop.f32.mrb[112].mxu1  ;;  %v4162_v3 = vpop.f32.mrb[112].mxu0  ;;  %v9610_v43 = vld [vmem:[%s9971_s5 + $0x20] sm:$0xff] }
 0x27e   : > { %v7656_v2 = vpop.eup %7655  ;;  %7671 = vtanh.f32 %v4058_v38  ;;  %v4062_v19 = vadd.f32 %v4061_v55, %v9102_v58  ;;  %v4163_v60 = vadd.f32 %v4162_v3, %v9127_v56  ;;  %v4063_v52 = vpop.f32.mrb[113].mxu1 }
 0x27f   : > { %v4164_v31 = vpop.f32.mrb[113].mxu0  ;;  %v7658_v12 = vpop.eup %7657  ;;  %7673 = vtanh.f32 %v4159_v35  ;;  %v4064_v34 = vadd.f32 %v4063_v52, %v9102_v58  ;;  %v7041_v28 = vpack.c.bf16 %v7656_v2, %v7652_v22 }
 0x280   : > { %v4165_v51 = vadd.f32 %v4164_v31, %v9127_v56  ;;  %v7660_v9 = vpop.eup %7659  ;;  %7675 = vtanh.f32 %v4062_v19  ;;  %v7049_v36 = vpack.c.bf16 %v7658_v12, %v7654_v29 }
 0x281   : > { %v9587_v41 = vpop.eup %7661  ;;  %7677 = vtanh.f32 %v4163_v60  ;;  %v4067_v42 = vpop.f32.mrb[114].mxu1  ;;  %7042 = vmatprep.subr.bf16.mxu0 %v7041_v28 }
 0x282   : > { %v7664_v24 = vpop.eup %7663  ;;  %7679 = vtanh.f32 %v4064_v34  ;;  %v4068_v26 = vadd.f32 %v4067_v42, %v9116_v62  ;;  %v4069_v49 = vpop.f32.mrb[115].mxu1  ;;  %7044 = vmatpush3.bf16.msra.mxu0 %v7043_v25 }
 0x283   : > { %v7666_v4 = vpop.eup %7665  ;;  %7681 = vtanh.f32 %v4165_v51  ;;  %v4070_v47 = vadd.f32 %v4069_v49, %v9116_v62  ;;  %7046 = vmatprep.subr.bf16.mxu0 %v7045_v10  ;;  %v7053_v27 = vpack.c.bf16 %v7664_v24, %v7660_v9 }
 0x284   : > { %v7061_v23 = vpack.c.bf16 %v7666_v4, %v9587_v41  ;;  %7683 = vtanh.f32 %v4068_v26 }
 0x285   : > { %v4073_v50 = vpop.f32.mrb[116].mxu1  ;;  %v4322_v15 = vpop.f32.mrb[114].mxu0  ;;  %7054 = vmatprep.subr.bf16.mxu1 %v7053_v27  ;;  %7685 = vtanh.f32 %v4070_v47 }
 0x286   : > { %v9595_v5 = vpop.eup %7667  ;;  %v4074_v14 = vadd.f32 %v4073_v50, %v9127_v56  ;;  %v4323_v46 = vadd.f32 %v4322_v15, %v9084_v13  ;;  %v4075_v44 = vpop.f32.mrb[117].mxu1  ;;  %7048 = vmatpush3.bf16.msra.mxu0 %v7047_v21  ;;  %7056 = vmatpush3.bf16.msra.mxu1 %v7055_v17  ;;  %v5377_v17 = vcombine.high %v9610_v43, %v9610_v43 }
 0x287   : > { %v4324_v59 = vpop.f32.mrb[115].mxu0  ;;  %v7670_v25 = vpop.eup %7669  ;;  %v4076_v10 = vadd.f32 %v4075_v44, %v9127_v56  ;;  %7050 = vmatprep.subr.bf16.mxu0 %v7049_v36 }
 0x288   : > { %v4325_v45 = vadd.f32 %v4324_v59, %v9084_v13  ;;  %v9612_v11 = vpop.eup %7671  ;;  %7687 = vtanh.f32 %v4074_v14 }
 0x289   : > { %v7674_v1 = vpop.eup %7673  ;;  %7689 = vtanh.f32 %v4323_v46  ;;  %v4328_v33 = vpop.f32.mrb[116].mxu0 }
 0x28a   : > { %v9614_v21 = vpop.eup %7675  ;;  %7691 = vtanh.f32 %v4076_v10  ;;  %v4329_v32 = vadd.f32 %v4328_v33, %v9102_v58  ;;  %v4330_v53 = vpop.f32.mrb[117].mxu0  ;;  %7052 = vmatpush3.bf16.msra.mxu0 %v7051_v16 }
 0x28b   : > { %v7678_v6 = vpop.eup %7677  ;;  %7693 = vtanh.f32 %v4325_v45  ;;  %v4331_v38 = vadd.f32 %v4330_v53, %v9102_v58  ;;  %v7071_v35 = vpack.c.bf16 %v9614_v21, %v9595_v5 }
 0x28c   : > { %v9625_v22 = vpop.eup %7679  ;;  %7695 = vtanh.f32 %v4329_v32  ;;  %v7057_v29 = vpack.c.bf16 %v7678_v6, %v7670_v25 }
 0x28d   : > { %v7682_v55 = vpop.eup %7681  ;;  %7697 = vtanh.f32 %v4331_v38  ;;  %v4233_v3 = vpop.f32.mrb[118].mxu1  ;;  %5590 = vmatmul.mubr.f32.vlgmr.msra.gmra.mrb[156].mxu0 %v9380_v8  ;;  %v7079_v30 = vpack.c.bf16 %v9625_v22, %v9612_v11 }
 0x28e   : > { %v4334_v2 = vpop.f32.mrb[118].mxu0  ;;  %v4234_v63 = vadd.f32 %v4233_v3, %v9084_v13  ;;  %7058 = vmatprep.subr.bf16.mxu1 %v7057_v29  ;;  %v4235_v19 = vpop.f32.mrb[119].mxu1  ;;  %v7065_v52 = vpack.c.bf16 %v7682_v55, %v7674_v1  ;;  %5729 = vmatprep.mubr.f32.mxu0 %v5377_v17 }
 0x28f   : > { %v4335_v16 = vadd.f32 %v4334_v2, %v9116_v62  ;;  %v4336_v60 = vpop.f32.mrb[119].mxu0  ;;  %v4236_v31 = vadd.f32 %v4235_v19, %v9084_v13  ;;  %7060 = vmatpush3.bf16.msra.mxu1 %v7059_v18  ;;  %v9637_v8 = vpop.eup %7683 }
 0x290   : > { %v4337_v12 = vadd.f32 %v4336_v60, %v9116_v62  ;;  %7699 = vtanh.f32 %v4234_v63  ;;  %7062 = vmatprep.subr.bf16.mxu1 %v7061_v23  ;;  %v9639_v34 = vpop.eup %7685 }
 0x291   : > { %7701 = vtanh.f32 %v4335_v16  ;;  %v4239_v51 = vpop.f32.mrb[120].mxu1  ;;  %v4340_v28 = vpop.f32.mrb[120].mxu0 }
 0x292   : > { %v9641_v9 = vpop.eup %7687  ;;  %7703 = vtanh.f32 %v4236_v31  ;;  %v4240_v36 = vadd.f32 %v4239_v51, %v9102_v58  ;;  %v4341_v41 = vadd.f32 %v4340_v28, %v9127_v56  ;;  %v4241_v42 = vpop.f32.mrb[121].mxu1 }
 0x293   : > { %v4342_v24 = vpop.f32.mrb[121].mxu0  ;;  %v9645_v48 = vpop.eup %7689  ;;  %7705 = vtanh.f32 %v4337_v12  ;;  %v4242_v61 = vadd.f32 %v4241_v42, %v9102_v58  ;;  %7064 = vmatpush3.bf16.msra.mxu1 %v7063_v54  ;;  %v7075_v26 = vpack.c.bf16 %v9641_v9, %v9637_v8 }
 0x294   : > { %v4343_v18 = vadd.f32 %v4342_v24, %v9127_v56  ;;  %v9654_v49 = vpop.eup %7691  ;;  %7707 = vtanh.f32 %v4240_v36  ;;  %7066 = vmatprep.subr.bf16.mxu1 %v7065_v52 }
 0x295   : > { %v9656_v4 = vpop.eup %7693  ;;  %7709 = vtanh.f32 %v4341_v41  ;;  %v4245_v47 = vpop.f32.mrb[122].mxu1  ;;  %v7083_v27 = vpack.c.bf16 %v9654_v49, %v9639_v34 }
 0x296   : > { %v9660_v23 = vpop.eup %7695  ;;  %7711 = vtanh.f32 %v4242_v61  ;;  %v4246_v39 = vadd.f32 %v4245_v47, %v9116_v62  ;;  %v4247_v37 = vpop.f32.mrb[123].mxu1 }
 0x297   : > { %v9663_v54 = vpop.eup %7697  ;;  %7713 = vtanh.f32 %v4343_v18  ;;  %v4248_v50 = vadd.f32 %v4247_v37, %v9116_v62  ;;  %7068 = vmatpush3.bf16.msra.mxu1 %v7067_v40  ;;  %v7087_v15 = vpack.c.bf16 %v9660_v23, %v9645_v48 }
 0x298   : > { %v7095_v14 = vpack.c.bf16 %v9663_v54, %v9656_v4  ;;  %7715 = vtanh.f32 %v4246_v39 }
 0x299   : > { %v4251_v46 = vpop.f32.mrb[124].mxu1  ;;  %v4500_v44 = vpop.f32.mrb[122].mxu0  ;;  %7717 = vtanh.f32 %v4248_v50 }
 0x29a   : > { %v7700_v59 = vpop.eup %7699  ;;  %v4252_v25 = vadd.f32 %v4251_v46, %v9127_v56  ;;  %v4501_v10 = vadd.f32 %v4500_v44, %v9084_v13  ;;  %v4253_v45 = vpop.f32.mrb[125].mxu1 }
 0x29b   : > { %v4502_v1 = vpop.f32.mrb[123].mxu0  ;;  %v9675_v33 = vpop.eup %7701  ;;  %v4254_v7 = vadd.f32 %v4253_v45, %v9127_v56 }
 0x29c   : > { %v4503_v57 = vadd.f32 %v4502_v1, %v9084_v13  ;;  %v7704_v40 = vpop.eup %7703  ;;  %7719 = vtanh.f32 %v4252_v25 }
 0x29d   : > { %v9679_v32 = vpop.eup %7705  ;;  %7721 = vtanh.f32 %v4501_v10  ;;  %v4506_v53 = vpop.f32.mrb[124].mxu0 }
 0x29e   : > { %v7708_v17 = vpop.eup %7707  ;;  %7723 = vtanh.f32 %v4254_v7  ;;  %v4507_v6 = vadd.f32 %v4506_v53, %v9102_v58  ;;  %v4508_v38 = vpop.f32.mrb[125].mxu0 }
 0x29f   : > { %v9682_v29 = vpop.eup %7709  ;;  %7725 = vtanh.f32 %v4503_v57  ;;  %v4509_v55 = vadd.f32 %v4508_v38, %v9102_v58  ;;  %v7069_v3 = vpack.c.bf16 %v7708_v17, %v7700_v59 }
 0x2a0   : > { %v7712_v2 = vpop.eup %7711  ;;  %7727 = vtanh.f32 %v4507_v6  ;;  %v7091_v63 = vpack.c.bf16 %v9682_v29, %v9675_v33 }
 0x2a1   : > { %v9687_v16 = vpop.eup %7713  ;;  %7729 = vtanh.f32 %v4509_v55  ;;  %v4411_v19 = vpop.f32.mrb[126].mxu1  ;;  %7070 = vmatprep.subr.bf16.mxu1 %v7069_v3  ;;  %v7077_v52 = vpack.c.bf16 %v7712_v2, %v7704_v40 }
 0x2a2   : > { %v4512_v60 = vpop.f32.mrb[126].mxu0  ;;  %v4412_v31 = vadd.f32 %v4411_v19, %v9084_v13  ;;  %v4413_v51 = vpop.f32.mrb[127].mxu1  ;;  %7072 = vmatpush3.bf16.msra.mxu1 %v7071_v35  ;;  %v7099_v36 = vpack.c.bf16 %v9687_v16, %v9679_v32 }
 0x2a3   : > { %v4513_v12 = vadd.f32 %v4512_v60, %v9116_v62  ;;  %v4514_v28 = vpop.f32.mrb[127].mxu0  ;;  %v4414_v41 = vadd.f32 %v4413_v51, %v9084_v13  ;;  %v7716_v24 = vpop.eup %7715 }
 0x2a4   : > { %v4515_v42 = vadd.f32 %v4514_v28, %v9116_v62  ;;  %7731 = vtanh.f32 %v4412_v31  ;;  %v7718_v61 = vpop.eup %7717 }
 0x2a5   : > { %7733 = vtanh.f32 %v4513_v12  ;;  %v4417_v18 = vpop.f32.mrb[128].mxu1  ;;  %v4518_v47 = vpop.f32.mrb[128].mxu0  ;;  %v9725_v12 = vld [vmem:[%s9971_s5 + $0x28] sm:$0xff] }
 0x2a6   : > { %v7720_v39 = vpop.eup %7719  ;;  %7735 = vtanh.f32 %v4414_v41  ;;  %v4418_v37 = vadd.f32 %v4417_v18, %v9102_v58  ;;  %v4519_v5 = vadd.f32 %v4518_v47, %v9127_v56  ;;  %v4419_v21 = vpop.f32.mrb[129].mxu1 }
 0x2a7   : > { %v4520_v35 = vpop.f32.mrb[129].mxu0  ;;  %v7722_v50 = vpop.eup %7721  ;;  %7737 = vtanh.f32 %v4515_v42  ;;  %v4420_v46 = vadd.f32 %v4419_v21, %v9102_v58  ;;  %v7073_v59 = vpack.c.bf16 %v7720_v39, %v7716_v24 }
 0x2a8   : > { %v4521_v44 = vadd.f32 %v4520_v35, %v9127_v56  ;;  %v7724_v25 = vpop.eup %7723  ;;  %7739 = vtanh.f32 %v4418_v37 }
 0x2a9   : > { %v9702_v10 = vpop.eup %7725  ;;  %7741 = vtanh.f32 %v4519_v5  ;;  %v4423_v45 = vpop.f32.mrb[130].mxu1  ;;  %7074 = vmatprep.subr.bf16.mxu1 %v7073_v59  ;;  %v7081_v1 = vpack.c.bf16 %v7724_v25, %v7718_v61 }
 0x2aa   : > { %v7728_v7 = vpop.eup %7727  ;;  %7743 = vtanh.f32 %v4420_v46  ;;  %v4424_v57 = vadd.f32 %v4423_v45, %v9116_v62  ;;  %v4425_v40 = vpop.f32.mrb[131].mxu1  ;;  %7076 = vmatpush3.bf16.msra.mxu1 %v7075_v26 }
 0x2ab   : > { %v7730_v53 = vpop.eup %7729  ;;  %7745 = vtanh.f32 %v4521_v44  ;;  %v4426_v17 = vadd.f32 %v4425_v40, %v9116_v62  ;;  %7078 = vmatprep.subr.bf16.mxu1 %v7077_v52  ;;  %v7085_v6 = vpack.c.bf16 %v7728_v7, %v7722_v50 }
 0x2ac   : > { %v7093_v38 = vpack.c.bf16 %v7730_v53, %v9702_v10  ;;  %7747 = vtanh.f32 %v4424_v57 }
 0x2ad   : > { %v4429_v55 = vpop.f32.mrb[132].mxu1  ;;  %v4678_v3 = vpop.f32.mrb[130].mxu0  ;;  %7086 = vmatprep.subr.bf16.mxu0 %v7085_v6  ;;  %7749 = vtanh.f32 %v4426_v17 }
 0x2ae   : > { %v9710_v2 = vpop.eup %7731  ;;  %v4430_v19 = vadd.f32 %v4429_v55, %v9127_v56  ;;  %v4679_v60 = vadd.f32 %v4678_v3, %v9084_v13  ;;  %v4431_v8 = vpop.f32.mrb[133].mxu1  ;;  %7080 = vmatpush3.bf16.msra.mxu1 %v7079_v30  ;;  %7088 = vmatpush3.bf16.msra.mxu0 %v7087_v15  ;;  %v5378_v15 = vcombine.high %v9725_v12, %v9725_v12 }
 0x2af   : > { %v4680_v9 = vpop.f32.mrb[131].mxu0  ;;  %v7734_v26 = vpop.eup %7733  ;;  %v4432_v52 = vadd.f32 %v4431_v8, %v9127_v56  ;;  %7082 = vmatprep.subr.bf16.mxu1 %v7081_v1 }
 0x2b0   : > { %v4681_v31 = vadd.f32 %v4680_v9, %v9084_v13  ;;  %v9727_v51 = vpop.eup %7735  ;;  %7751 = vtanh.f32 %v4430_v19 }
 0x2b1   : > { %v7738_v11 = vpop.eup %7737  ;;  %7753 = vtanh.f32 %v4679_v60  ;;  %v4684_v22 = vpop.f32.mrb[132].mxu0 }
 0x2b2   : > { %v9729_v30 = vpop.eup %7739  ;;  %7755 = vtanh.f32 %v4432_v52  ;;  %v4685_v48 = vadd.f32 %v4684_v22, %v9102_v58  ;;  %v4686_v23 = vpop.f32.mrb[133].mxu0  ;;  %7084 = vmatpush3.bf16.msra.mxu1 %v7083_v27 }
 0x2b3   : > { %v7742_v28 = vpop.eup %7741  ;;  %7757 = vtanh.f32 %v4681_v31  ;;  %v4687_v41 = vadd.f32 %v4686_v23, %v9102_v58  ;;  %v7103_v42 = vpack.c.bf16 %v9729_v30, %v9710_v2 }
 0x2b4   : > { %v9740_v24 = vpop.eup %7743  ;;  %7759 = vtanh.f32 %v4685_v48  ;;  %v7089_v61 = vpack.c.bf16 %v7742_v28, %v7734_v26 }
 0x2b5   : > { %v7746_v18 = vpop.eup %7745  ;;  %7761 = vtanh.f32 %v4687_v41  ;;  %v4589_v47 = vpop.f32.mrb[134].mxu1  ;;  %5660 = vmatmul.mubr.f32.vlgmr.msra.gmra.mrb[168].mxu1 %v9495_v20  ;;  %v7111_v34 = vpack.c.bf16 %v9740_v24, %v9727_v51 }
 0x2b6   : > { %v4690_v39 = vpop.f32.mrb[134].mxu0  ;;  %v4590_v49 = vadd.f32 %v4589_v47, %v9084_v13  ;;  %7090 = vmatprep.subr.bf16.mxu0 %v7089_v61  ;;  %v4591_v37 = vpop.f32.mrb[135].mxu1  ;;  %v7097_v21 = vpack.c.bf16 %v7746_v18, %v7738_v11  ;;  %5799 = vmatprep.mubr.f32.mxu1 %v5378_v15 }
 0x2b7   : > { %v4691_v27 = vadd.f32 %v4690_v39, %v9116_v62  ;;  %v4692_v5 = vpop.f32.mrb[135].mxu0  ;;  %v4592_v35 = vadd.f32 %v4591_v37, %v9084_v13  ;;  %7092 = vmatpush3.bf16.msra.mxu0 %v7091_v63  ;;  %v9752_v20 = vpop.eup %7747 }
 0x2b8   : > { %v4693_v50 = vadd.f32 %v4692_v5, %v9116_v62  ;;  %7763 = vtanh.f32 %v4590_v49  ;;  %7094 = vmatprep.subr.bf16.mxu0 %v7093_v38  ;;  %v9754_v46 = vpop.eup %7749 }
 0x2b9   : > { %7765 = vtanh.f32 %v4691_v27  ;;  %v4595_v44 = vpop.f32.mrb[136].mxu1  ;;  %v4696_v59 = vpop.f32.mrb[136].mxu0 }
 0x2ba   : > { %v9756_v25 = vpop.eup %7751  ;;  %7767 = vtanh.f32 %v4592_v35  ;;  %v4596_v10 = vadd.f32 %v4595_v44, %v9102_v58  ;;  %v4697_v45 = vadd.f32 %v4696_v59, %v9127_v56  ;;  %v4597_v1 = vpop.f32.mrb[137].mxu1 }
 0x2bb   : > { %v4698_v7 = vpop.f32.mrb[137].mxu0  ;;  %v9760_v33 = vpop.eup %7753  ;;  %7769 = vtanh.f32 %v4693_v50  ;;  %v4598_v29 = vadd.f32 %v4597_v1, %v9102_v58  ;;  %7096 = vmatpush3.bf16.msra.mxu0 %v7095_v14  ;;  %v7107_v57 = vpack.c.bf16 %v9756_v25, %v9752_v20 }
 0x2bc   : > { %v4699_v63 = vadd.f32 %v4698_v7, %v9127_v56  ;;  %v9769_v40 = vpop.eup %7755  ;;  %7771 = vtanh.f32 %v4596_v10  ;;  %7098 = vmatprep.subr.bf16.mxu0 %v7097_v21 }
 0x2bd   : > { %v9771_v53 = vpop.eup %7757  ;;  %7773 = vtanh.f32 %v4697_v45  ;;  %v4601_v17 = vpop.f32.mrb[138].mxu1  ;;  %v7115_v6 = vpack.c.bf16 %v9769_v40, %v9754_v46 }
 0x2be   : > { %v9775_v38 = vpop.eup %7759  ;;  %7775 = vtanh.f32 %v4598_v29  ;;  %v4602_v4 = vadd.f32 %v4601_v17, %v9116_v62  ;;  %v4603_v54 = vpop.f32.mrb[139].mxu1 }
 0x2bf   : > { %v9778_v14 = vpop.eup %7761  ;;  %7777 = vtanh.f32 %v4699_v63  ;;  %v4604_v55 = vadd.f32 %v4603_v54, %v9116_v62  ;;  %7100 = vmatpush3.bf16.msra.mxu0 %v7099_v36  ;;  %v7119_v3 = vpack.c.bf16 %v9775_v38, %v9760_v33  ;;  %v7937_v38 = vmov 0.0|0.0  }
 0x2c0   : > { %v7127_v19 = vpack.c.bf16 %v9778_v14, %v9771_v53  ;;  %7779 = vtanh.f32 %v4602_v4 }
 0x2c1   : > { %v4607_v60 = vpop.f32.mrb[140].mxu1  ;;  %v4856_v8 = vpop.f32.mrb[138].mxu0  ;;  %7781 = vtanh.f32 %v4604_v55 }
 0x2c2   : > { %v7764_v9 = vpop.eup %7763  ;;  %v4608_v26 = vadd.f32 %v4607_v60, %v9127_v56  ;;  %v4857_v52 = vadd.f32 %v4856_v8, %v9084_v13  ;;  %v4609_v31 = vpop.f32.mrb[141].mxu1 }
 0x2c3   : > { %v4858_v11 = vpop.f32.mrb[139].mxu0  ;;  %v9790_v22 = vpop.eup %7765  ;;  %v4610_v32 = vadd.f32 %v4609_v31, %v9127_v56 }
 0x2c4   : > { %v4859_v16 = vadd.f32 %v4858_v11, %v9084_v13  ;;  %v7768_v36 = vpop.eup %7767  ;;  %7783 = vtanh.f32 %v4608_v26 }
 0x2c5   : > { %v9794_v48 = vpop.eup %7769  ;;  %7785 = vtanh.f32 %v4857_v52  ;;  %v4862_v23 = vpop.f32.mrb[140].mxu0 }
 0x2c6   : > { %v7772_v15 = vpop.eup %7771  ;;  %7787 = vtanh.f32 %v4610_v32  ;;  %v4863_v28 = vadd.f32 %v4862_v23, %v9102_v58  ;;  %v4864_v41 = vpop.f32.mrb[141].mxu0 }
 0x2c7   : > { %v9797_v61 = vpop.eup %7773  ;;  %7789 = vtanh.f32 %v4859_v16  ;;  %v4865_v18 = vadd.f32 %v4864_v41, %v9102_v58  ;;  %v7101_v47 = vpack.c.bf16 %v7772_v15, %v7764_v9 }
 0x2c8   : > { %v7776_v39 = vpop.eup %7775  ;;  %7791 = vtanh.f32 %v4863_v28  ;;  %v7123_v49 = vpack.c.bf16 %v9797_v61, %v9790_v22 }
 0x2c9   : > { %v9802_v27 = vpop.eup %7777  ;;  %7793 = vtanh.f32 %v4865_v18  ;;  %v4767_v37 = vpop.f32.mrb[142].mxu1  ;;  %7102 = vmatprep.subr.bf16.mxu0 %v7101_v47  ;;  %v7109_v21 = vpack.c.bf16 %v7776_v39, %v7768_v36 }
 0x2ca   : > { %v4868_v5 = vpop.f32.mrb[142].mxu0  ;;  %v4768_v35 = vadd.f32 %v4767_v37, %v9084_v13  ;;  %v4769_v44 = vpop.f32.mrb[143].mxu1  ;;  %7104 = vmatpush3.bf16.msra.mxu0 %v7103_v42  ;;  %v7131_v10 = vpack.c.bf16 %v9802_v27, %v9794_v48 }
 0x2cb   : > { %v4869_v50 = vadd.f32 %v4868_v5, %v9116_v62  ;;  %v4870_v59 = vpop.f32.mrb[143].mxu0  ;;  %v4770_v45 = vadd.f32 %v4769_v44, %v9084_v13  ;;  %v7780_v7 = vpop.eup %7779 }
 0x2cc   : > { %v4871_v1 = vadd.f32 %v4870_v59, %v9116_v62  ;;  %7795 = vtanh.f32 %v4768_v35  ;;  %v7782_v29 = vpop.eup %7781 }
 0x2cd   : > { %7797 = vtanh.f32 %v4869_v50  ;;  %v4773_v63 = vpop.f32.mrb[144].mxu1  ;;  %v4874_v17 = vpop.f32.mrb[144].mxu0 }
 0x2ce   : > { %v7784_v4 = vpop.eup %7783  ;;  %7799 = vtanh.f32 %v4770_v45  ;;  %v4774_v54 = vadd.f32 %v4773_v63, %v9102_v58  ;;  %v4875_v2 = vadd.f32 %v4874_v17, %v9127_v56  ;;  %v4775_v30 = vpop.f32.mrb[145].mxu1 }
 0x2cf   : > { %v4876_v42 = vpop.f32.mrb[145].mxu0  ;;  %v7786_v55 = vpop.eup %7785  ;;  %7801 = vtanh.f32 %v4871_v1  ;;  %v4776_v60 = vadd.f32 %v4775_v30, %v9102_v58  ;;  %v7105_v9 = vpack.c.bf16 %v7784_v4, %v7780_v7 }
 0x2d0   : > { %v4877_v8 = vadd.f32 %v4876_v42, %v9127_v56  ;;  %v7788_v26 = vpop.eup %7787  ;;  %7803 = vtanh.f32 %v4774_v54 }
 0x2d1   : > { %v9817_v52 = vpop.eup %7789  ;;  %7805 = vtanh.f32 %v4875_v2  ;;  %v4779_v31 = vpop.f32.mrb[146].mxu1  ;;  %7106 = vmatprep.subr.bf16.mxu0 %v7105_v9  ;;  %v7113_v11 = vpack.c.bf16 %v7788_v26, %v7782_v29 }
 0x2d2   : > { %v7792_v32 = vpop.eup %7791  ;;  %7807 = vtanh.f32 %v4776_v60  ;;  %v4780_v16 = vadd.f32 %v4779_v31, %v9116_v62  ;;  %v4781_v36 = vpop.f32.mrb[147].mxu1  ;;  %7108 = vmatpush3.bf16.msra.mxu0 %v7107_v57 }
 0x2d3   : > { %v7794_v23 = vpop.eup %7793  ;;  %7809 = vtanh.f32 %v4877_v8  ;;  %v4782_v15 = vadd.f32 %v4781_v36, %v9116_v62  ;;  %7110 = vmatprep.subr.bf16.mxu0 %v7109_v21  ;;  %v7117_v28 = vpack.c.bf16 %v7792_v32, %v7786_v55 }
 0x2d4   : > { %v7125_v41 = vpack.c.bf16 %v7794_v23, %v9817_v52  ;;  %7811 = vtanh.f32 %v4780_v16 }
 0x2d5   : > { %v4785_v18 = vpop.f32.mrb[148].mxu1  ;;  %v5034_v47 = vpop.f32.mrb[146].mxu0  ;;  %7118 = vmatprep.subr.bf16.mxu1 %v7117_v28  ;;  %7813 = vtanh.f32 %v4782_v15 }
 0x2d6   : > { %v9825_v39 = vpop.eup %7795  ;;  %v4786_v37 = vadd.f32 %v4785_v18, %v9127_v56  ;;  %v5035_v5 = vadd.f32 %v5034_v47, %v9084_v13  ;;  %v4787_v20 = vpop.f32.mrb[149].mxu1  ;;  %7112 = vmatpush3.bf16.msra.mxu0 %v7111_v34  ;;  %7120 = vmatpush3.bf16.msra.mxu1 %v7119_v3 }
 0x2d7   : > { %v5036_v25 = vpop.f32.mrb[147].mxu0  ;;  %v7798_v57 = vpop.eup %7797  ;;  %v4788_v21 = vadd.f32 %v4787_v20, %v9127_v56  ;;  %7114 = vmatprep.subr.bf16.mxu0 %v7113_v11 }
 0x2d8   : > { %v5037_v35 = vadd.f32 %v5036_v25, %v9084_v13  ;;  %v9837_v50 = vpop.eup %7799  ;;  %7815 = vtanh.f32 %v4786_v37 }
 0x2d9   : > { %v7802_v44 = vpop.eup %7801  ;;  %7817 = vtanh.f32 %v5035_v5  ;;  %v5040_v59 = vpop.f32.mrb[148].mxu0 }
 0x2da   : > { %v9839_v45 = vpop.eup %7803  ;;  %7819 = vtanh.f32 %v4788_v21  ;;  %v5041_v51 = vadd.f32 %v5040_v59, %v9102_v58  ;;  %v5042_v24 = vpop.f32.mrb[149].mxu0  ;;  %7116 = vmatpush3.bf16.msra.mxu0 %v7115_v6 }
 0x2db   : > { %v7806_v34 = vpop.eup %7805  ;;  %7821 = vtanh.f32 %v5037_v35  ;;  %v5043_v33 = vadd.f32 %v5042_v24, %v9102_v58  ;;  %7149 = vmatprep.subr.bf16.mxu0 %v7937_v38  ;;  %v7135_v3 = vpack.c.bf16 %v9839_v45, %v9825_v39 }
 0x2dc   : > { %v9849_v1 = vpop.eup %7807  ;;  %7823 = vtanh.f32 %v5041_v51  ;;  %v7121_v7 = vpack.c.bf16 %v7806_v34, %v7798_v57 }
 0x2dd   : > { %v7810_v29 = vpop.eup %7809  ;;  %7825 = vtanh.f32 %v5043_v33  ;;  %v4945_v63 = vpop.f32.mrb[150].mxu1  ;;  %5730 = vmatmul.mubr.f32.vlgmr.msra.gmra.mrb[158].mxu0 %v9610_v43  ;;  %v7143_v46 = vpack.c.bf16 %v9849_v1, %v9837_v50 }
 0x2de   : > { %v5046_v17 = vpop.f32.mrb[150].mxu0  ;;  %v4946_v40 = vadd.f32 %v4945_v63, %v9084_v13  ;;  %7122 = vmatprep.subr.bf16.mxu1 %v7121_v7  ;;  %v4947_v4 = vpop.f32.mrb[151].mxu1  ;;  %v7129_v2 = vpack.c.bf16 %v7810_v29, %v7802_v44  ;;  %6434 = vmatprep.mubr.msk.f32.mxu0 %vm7938_vm3, %v7935_v0 }
 0x2df   : > { %v5047_v6 = vadd.f32 %v5046_v17, %v9116_v62  ;;  %v5048_v54 = vpop.f32.mrb[151].mxu0  ;;  %v4948_v30 = vadd.f32 %v4947_v4, %v9084_v13  ;;  %7124 = vmatpush3.bf16.msra.mxu1 %v7123_v49  ;;  %v9862_v43 = vpop.eup %7811 }
 0x2e0   : > { %v5049_v42 = vadd.f32 %v5048_v54, %v9116_v62  ;;  %7827 = vtanh.f32 %v4946_v40  ;;  %7126 = vmatprep.subr.bf16.mxu1 %v7125_v41  ;;  %v9864_v55 = vpop.eup %7813 }
 0x2e1   : > { %7829 = vtanh.f32 %v5047_v6  ;;  %v4951_v60 = vpop.f32.mrb[152].mxu1  ;;  %v5052_v8 = vpop.f32.mrb[152].mxu0 }
 0x2e2   : > { %v9866_v9 = vpop.eup %7815  ;;  %7831 = vtanh.f32 %v4948_v30  ;;  %v4952_v0 = vadd.f32 %v4951_v60, %v9102_v58  ;;  %v5053_v26 = vadd.f32 %v5052_v8, %v9127_v56  ;;  %v4953_v52 = vpop.f32.mrb[153].mxu1 }
 0x2e3   : > { %v5054_v31 = vpop.f32.mrb[153].mxu0  ;;  %v7818_v22 = vpop.eup %7817  ;;  %7833 = vtanh.f32 %v5049_v42  ;;  %v4954_v61 = vadd.f32 %v4953_v52, %v9102_v58  ;;  %7128 = vmatpush3.bf16.msra.mxu1 %v7127_v19  ;;  %v7139_v11 = vpack.c.bf16 %v9866_v9, %v9862_v43 }
 0x2e4   : > { %v5055_v49 = vadd.f32 %v5054_v31, %v9127_v56  ;;  %v9877_v32 = vpop.eup %7819  ;;  %7835 = vtanh.f32 %v4952_v0  ;;  %7130 = vmatprep.subr.bf16.mxu1 %v7129_v2 }
 0x2e5   : > { %v7822_v16 = vpop.eup %7821  ;;  %7837 = vtanh.f32 %v5053_v26  ;;  %v4957_v36 = vpop.f32.mrb[154].mxu1  ;;  %v7147_v23 = vpack.c.bf16 %v9877_v32, %v9864_v55 }
 0x2e6   : > { %v7824_v15 = vpop.eup %7823  ;;  %7839 = vtanh.f32 %v4954_v61  ;;  %v4958_v28 = vadd.f32 %v4957_v36, %v9116_v62  ;;  %v4959_v41 = vpop.f32.mrb[155].mxu1 }
 0x2e7   : > { %v7826_v53 = vpop.eup %7825  ;;  %7841 = vtanh.f32 %v5055_v49  ;;  %v4960_v14 = vadd.f32 %v4959_v41, %v9116_v62  ;;  %7132 = vmatpush3.bf16.msra.mxu1 %v7131_v10  ;;  %v7150_v19 = vpack.c.bf16 %v7824_v15, %v7818_v22 }
 0x2e8   : > { %v7156_v18 = vpack.c.bf16 %v7826_v53, %v7822_v16  ;;  %7843 = vtanh.f32 %v4958_v28 }
 0x2e9   : > { %v4963_v47 = vpop.f32.mrb[156].mxu1  ;;  %7151 = vmatpush3.bf16.msra.mxu0 %v7150_v19  ;;  %7845 = vtanh.f32 %v4960_v14 }
 0x2ea   : > { %v7828_v37 = vpop.eup %7827  ;;  %v4964_v5 = vadd.f32 %v4963_v47, %v9127_v56  ;;  %v4965_v20 = vpop.f32.mrb[157].mxu1  ;;  %7152 = vmatprep.subr.bf16.mxu0 %v7937_v38 }
 0x2eb   : > { %v7830_v25 = vpop.eup %7829  ;;  %v4966_v57 = vadd.f32 %v4965_v20, %v9127_v56 }
 0x2ec   : > { %v7832_v21 = vpop.eup %7831  ;;  %7847 = vtanh.f32 %v4964_v5 }
 0x2ed   : > { %v7834_v35 = vpop.eup %7833  ;;  %7849 = vtanh.f32 %v4966_v57 }
 0x2ee   : > { %v7836_v48 = vpop.eup %7835 }
 0x2ef   : > { %v7838_v27 = vpop.eup %7837  ;;  %v7133_v10 = vpack.c.bf16 %v7836_v48, %v7828_v37 }
 0x2f0   : > { %v7840_v44 = vpop.eup %7839  ;;  %v7153_v59 = vpack.c.bf16 %v7838_v27, %v7830_v25 }
 0x2f1   : > { %v7842_v51 = vpop.eup %7841  ;;  %v5123_v24 = vpop.f32.mrb[158].mxu1  ;;  %7134 = vmatprep.subr.bf16.mxu1 %v7133_v10  ;;  %v7141_v34 = vpack.c.bf16 %v7840_v44, %v7832_v21 }
 0x2f2   : > { %v5124_v33 = vadd.f32 %v5123_v24, %v9084_v13  ;;  %7154 = vmatpush3.bf16.msra.mxu0 %v7153_v59  ;;  %v5125_v7 = vpop.f32.mrb[159].mxu1  ;;  %7136 = vmatpush3.bf16.msra.mxu1 %v7135_v3  ;;  %v7159_v29 = vpack.c.bf16 %v7842_v51, %v7834_v35  ;;  %v7844_v17 = vpop.eup %7843 }
 0x2f3   : > { %v5126_v63 = vadd.f32 %v5125_v7, %v9084_v13  ;;  %7155 = vmatprep.subr.bf16.mxu0 %v7937_v38  ;;  %v7846_v40 = vpop.eup %7845 }
 0x2f4   : > { %7851 = vtanh.f32 %v5124_v33 }
 0x2f5   : > { %v5129_v6 = vpop.f32.mrb[160].mxu1  ;;  %7853 = vtanh.f32 %v5126_v63 }
 0x2f6   : > { %v7848_v4 = vpop.eup %7847  ;;  %v5130_v54 = vadd.f32 %v5129_v6, %v9102_v58  ;;  %7157 = vmatpush3.bf16.msra.mxu0 %v7156_v18  ;;  %v5131_v2 = vpop.f32.mrb[161].mxu1 }
 0x2f7   : > { %v7850_v30 = vpop.eup %7849  ;;  %v5132_v42 = vadd.f32 %v5131_v2, %v9102_v58  ;;  %7158 = vmatprep.subr.bf16.mxu0 %v7937_v38  ;;  %v7137_v39 = vpack.c.bf16 %v7848_v4, %v7844_v17 }
 0x2f8   : > { %7855 = vtanh.f32 %v5130_v54  ;;  %v7145_v13 = vpack.c.bf16 %v7850_v30, %v7846_v40 }
 0x2f9   : > { %7857 = vtanh.f32 %v5132_v42  ;;  %v5135_v45 = vpop.f32.mrb[162].mxu1  ;;  %7138 = vmatprep.subr.bf16.mxu1 %v7137_v39 }
 0x2fa   : > { %v5136_v3 = vadd.f32 %v5135_v45, %v9116_v62  ;;  %7160 = vmatpush3.bf16.msra.mxu0 %v7159_v29  ;;  %v5137_v60 = vpop.f32.mrb[163].mxu1  ;;  %7140 = vmatpush3.bf16.msra.mxu1 %v7139_v11 }
 0x2fb   : > { %v5138_v8 = vadd.f32 %v5137_v60, %v9116_v62  ;;  %7142 = vmatprep.subr.bf16.mxu1 %v7141_v34  ;;  %7161 = vmatprep.subr.bf16.mxu0 %v7937_v38 }
 0x2fc   : > { %7859 = vtanh.f32 %v5136_v3 }
 0x2fd   : > { %v5141_v58 = vpop.f32.mrb[164].mxu1  ;;  %7861 = vtanh.f32 %v5138_v8 }
 0x2fe   : > { %v5142_v0 = vadd.f32 %v5141_v58, %v9127_v56  ;;  %v5143_v26 = vpop.f32.mrb[165].mxu1  ;;  %7144 = vmatpush3.bf16.msra.mxu1 %v7143_v46  ;;  %v7852_v43 = vpop.eup %7851 }
 0x2ff   : > { %v5144_v52 = vadd.f32 %v5143_v26, %v9127_v56  ;;  %7146 = vmatprep.subr.bf16.mxu1 %v7145_v13  ;;  %v7854_v9 = vpop.eup %7853 }
 0x300   : > { %7863 = vtanh.f32 %v5142_v0 }
 0x301   : > { %7865 = vtanh.f32 %v5144_v52 }
 0x302   : > { %v7856_v62 = vpop.eup %7855  ;;  %7148 = vmatpush3.bf16.msra.mxu1 %v7147_v23  ;;  %v5365_v23 = vpop.permute.xlu0 %5364 }
 0x303   : > { %v7858_v31 = vpop.eup %7857  ;;  %v7162_v22 = vpack.c.bf16 %v7856_v62, %v7852_v43 }
 0x304   : > { %v7168_v61 = vpack.c.bf16 %v7858_v31, %v7854_v9 }
 0x305   : > { %5800 = vmatmul.mubr.f32.vlgmr.msra.gmra.mrb[170].mxu1 %v9725_v12  ;;  %7163 = vmatpush3.bf16.msra.mxu0 %v7162_v22  ;;  %v5360_v12 = vld [vmem:[%s9971_s5 + $0x30] sm:$0xf] }
 0x306   : > { %7164 = vmatprep.subr.bf16.mxu0 %v7937_v38  ;;  %v7860_v50 = vpop.eup %7859 }
 0x307   : > { %v7862_v56 = vpop.eup %7861 }
 0x30a   : > { %v7864_v1 = vpop.eup %7863 }
 0x30b   : > { %v7866_v46 = vpop.eup %7865  ;;  %v7165_v49 = vpack.c.bf16 %v7864_v1, %v7860_v50 }
 0x30c   : > { %v7171_v11 = vpack.c.bf16 %v7866_v46, %v7862_v56 }
 0x30d   : > { %7166 = vmatpush3.bf16.msra.mxu0 %v7165_v49 }
 0x30e   : > { %7167 = vmatprep.subr.bf16.mxu0 %v7937_v38 }
 0x310   : > { %v6207_v16 = vpop.f32.mrb[154].mxu0 }
 0x311   : > { %v6208_v55 = vpop.f32.mrb[155].mxu0  ;;  %7169 = vmatpush3.bf16.msra.mxu0 %v7168_v61 }
 0x312   : > { %v6209_v32 = vadd.f32 %v6208_v55, %v6207_v16  ;;  %7170 = vmatprep.subr.bf16.mxu0 %v7937_v38 }
 0x314   : > { %v5452_v28 = vadd.f32 %v6209_v32, %v5365_v23 }
 0x315   : > { %7172 = vmatpush3.bf16.msra.mxu0 %v7171_v11 }
 0x318   : > { %6435 = vmatmul.mubr.f32.vlgmr.msra.gmra.mrb[160].mxu0 %v5360_v12 }
 0x338   : > { %v6242_v36 = vpop.f32.mrb[166].mxu1 }
 0x339   : > { %v6243_v15 = vpop.f32.mrb[167].mxu1 }
 0x33a   : > { %v6244_v41 = vadd.f32 %v6243_v15, %v6242_v36 }
 0x33c   : > { %v5522_v53 = vadd.f32 %v6244_v41, %v5452_v28 }
 0x360   : > { %v6277_v14 = vpop.f32.mrb[156].mxu0 }
 0x361   : > { %v6278_v19 = vpop.f32.mrb[157].mxu0 }
 0x362   : > { %v6279_v18 = vadd.f32 %v6278_v19, %v6277_v14 }
 0x364   : > { %v5592_v47 = vadd.f32 %v6279_v18, %v5522_v53 }
 0x388   : > { %v6312_v37 = vpop.f32.mrb[168].mxu1 }
 0x389   : > { %v6313_v38 = vpop.f32.mrb[169].mxu1 }
 0x38a   : > { %v6314_v5 = vadd.f32 %v6313_v38, %v6312_v37 }
 0x38c   : > { %v5662_v20 = vadd.f32 %v6314_v5, %v5592_v47 }
 0x3b0   : > { %v6347_v25 = vpop.f32.mrb[158].mxu0 }
 0x3b1   : > { %v6348_v57 = vpop.f32.mrb[159].mxu0 }
 0x3b2   : > { %v6349_v21 = vadd.f32 %v6348_v57, %v6347_v25 }
 0x3b4   : > { %v5732_v35 = vadd.f32 %v6349_v21, %v5662_v20 }
 0x3d8   : > { %v6382_v48 = vpop.f32.mrb[170].mxu1 }
 0x3d9   : > { %v6383_v27 = vpop.f32.mrb[171].mxu1 }
 0x3da   : > { %v6384_v10 = vadd.f32 %v6383_v27, %v6382_v48 }
 0x3dc   : > { %v5802_v44 = vadd.f32 %v6384_v10, %v5732_v35 }
 0x3eb   : > { %v5871_v59 = vpop.f32.mrb[160].mxu0 }
 0x3ec   : > { %v5872_v51 = vadd.f32 %v5871_v59, %v5802_v44  ;;  %v6436_v24 = vpop.f32.mrb[161].mxu0 }
 0x3ee   : > { %5875 = vst [vmem:[%s271_s13] sm:$0xf] %v5872_v51 }
 0x3ef   : > { %7884 = shalt.err (!%p7881_p3)
}
 0x3f0   : > { %s7885_s22 = scalar_lea.hbm %s9924_s17, 64  ;;  %s7889_s8 = scalar_lea.hbm %s9973_s7, 128 }
 0x3f1   : > { %p7886_p4 = scmp.ne.s32.totalorder %s9924_s17, %s7885_s22  ;;  %p7890_p9 = scmp.lt.u32.totalorder %s9924_s17, %s9973_s7 }
 0x3f2   : > { %p7891_p10 = scmp.lt.u32.totalorder %s7889_s8, %s7885_s22  ;;  %p7893_p12 = scmp.lt.u32.totalorder %s7885_s22, %s9924_s17 }
 0x3f3   : > { %p7887_p7 = pnand %p7886_p4, %p8018_p5 }
 0x3f4   : > { %p7892_p11 = por %p7891_p10, %p7890_p9 }
 0x3f5   : > { %p7888_p8 = pneg %p7887_p7 }
 0x3f6   : > { %p7894_p13 = por %p7893_p12, %p7892_p11 }
 0x3f8   : > { %p7895_p0 = pnand %p7894_p13, %p7888_p8 }
 0x3fa   : > { %7898 = shalt.err (!%p7895_p0)
}
 0x3fb   : > { %7176 = dma.vmem_to_hbm [thread:$0]  (%p8018_p5), %s9926_s14, 64, %s9924_s17, %s5877_s18  }
 0x3fc PF: > { %p7182_p1 = scmp.ge.s32.totalorder %s7933_s27, 2  ;;  %s5902_s15 = sand.u32 1, %s7921_s24  }
 0x3fd   : > { %s5903_s16 = scalar_lea.sflag [#allocation3], %s5902_s15 }
 0x3fe   : > { %p7179_p2 = pnand %p7182_p1, %p8022_p6 }
 0x400   : > { %7916 = dma.done.wait (!%p7179_p2), %s5903_s16, 64  }
 0x401   : > { %7918 = vsyncadd (!%p7179_p2), %s5903_s16, 4294967232  ;;  %p17_p3 = scmp.ge.s32.totalorder %s8005_s30, 4   ;;  %s9976_s24 = smov %s7925_s25 }
 0x402   : > { %s9977_s25 = smov %s7929_s26  ;;  %s9978_s26 = smov %s8016_s10 }
 0x403   : > { %s9979_s27 = smov %s8005_s30  ;;  %19 = sbr.rel (!%p17_p3) target bundleno = 3 (0x3), region = 83 }
 0x40a   :  { %5908 = vsyncpa [#allocation3], 1 }
 0x40b   :  { %5910 = vsyncpa [#allocation3 + $0x1], 1 }

</bundles_post_ra>
